<compile_context>
chip_gen: v5e
topology: v5e:2x2
jax: 0.10.0
libtpu: 0.0.40
codegen_flags: <defaults>
</compile_context>

<pallas_src>
import functools

import jax
import jax.numpy as jnp
from jax.experimental import pallas as pl
from jax.experimental.pallas import tpu as pltpu


def attention_flow_kernel(x_ref, w_in_ref, b_in_ref,
                          w_qkv_ref, b_qkv_ref,
                          wo_ref, bo_ref,
                          w_out_ref, b_out_ref,
                          y_ref, o_scr, *, n_heads):
    """One batch block per grid step; all layer weights resident in VMEM.

    Grid = (B // block_b,).  o_scr is a (N, E) f32 VMEM scratch used to assemble the
    per-head attention outputs (the head-concat) before the full (E, E) W_o matmul.
    """
    Bt, S, dim = x_ref.shape
    N = Bt * S
    E = w_in_ref.shape[1]
    n_layers = wo_ref.shape[0]
    hd = E // n_heads
    scale = 1.0 / (hd ** 0.5)
    cdt = jnp.bfloat16            # MXU operand dtype; accumulation stays f32

    # ---- input projection: all Bt*S rows at once ----
    x2 = x_ref[...].reshape(N, dim).astype(cdt)        # leading-dim merge: layout no-op
    h = jnp.dot(x2, w_in_ref[...], preferred_element_type=jnp.float32) + b_in_ref[...]

    # ---- attention layers (weights resident; static Python loop) ----
    for l in range(n_layers):
        hb = h.astype(cdt)
        # fused Q|K|V projection: one (N, E) x (E, 3E) matmul per layer
        qkv = (jnp.dot(hb, w_qkv_ref[l], preferred_element_type=jnp.float32)
               + b_qkv_ref[l])                          # (N, 3E) f32

        # TODO(synk): convert to lax.fori_loop for large n_heads to bound code size;
        # for small n_heads the unrolled form equals fori_loop(unroll=True).
        for hh in range(n_heads):
            q = qkv[:, hh * hd:(hh + 1) * hd]
            k = qkv[:, E + hh * hd:E + (hh + 1) * hd]
            v = qkv[:, 2 * E + hh * hd:2 * E + (hh + 1) * hd]

            q3 = q.reshape(Bt, S, hd).astype(cdt)       # leading-dim split: layout no-op
            k3 = k.reshape(Bt, S, hd).astype(cdt)
            v3 = v.reshape(Bt, S, hd).astype(cdt)

            # batched over the Bt batch elements in this block
            s = jnp.einsum('bqd,bkd->bqk', q3, k3,
                           preferred_element_type=jnp.float32) * scale   # (Bt, S, S)
            s = s - jnp.max(s, axis=-1, keepdims=True)  # f32 softmax (v5e: no bf16 VPU/EUP)
            p = jnp.exp(s)
            p = p * pl.reciprocal(jnp.sum(p, axis=-1, keepdims=True), approx=True)

            o = jnp.einsum('bqk,bkd->bqd', p.astype(cdt), v3,
                           preferred_element_type=jnp.float32)           # (Bt, S, hd)
            # head-concat is staged through VMEM scratch, not a live vreg accumulator
            o_scr[:, hh * hd:(hh + 1) * hd] = o.reshape(N, hd)

        # layer output projection: one full-width (N, E) x (E, E) matmul
        h = (jnp.dot(o_scr[...].astype(cdt), wo_ref[l],
                     preferred_element_type=jnp.float32) + bo_ref[l])

    # ---- output projection + store ----
    y = (jnp.dot(h.astype(cdt), w_out_ref[...], preferred_element_type=jnp.float32)
         + b_out_ref[...])                              # (N, dim)
    y_ref[...] = y.reshape(Bt, S, dim).astype(y_ref.dtype)


def _act_vmem_bytes(block_b, S, dim, E):
    """Rough per-grid-step activation VMEM: h/qkv/o_scr slabs, per-head score slab,
    and the lane-padded, double-buffered x/y tiles (f32 bytes)."""
    N = block_b * S
    return (6 * N * E + 2 * block_b * S * S + 4 * block_b * S * max(dim, 128)) * 4


def _pick_block_b(B, S, dim, E, *, act_budget_bytes=24 << 20):
    """Batch-block heuristic: (a) stay under an activation budget safe inside v7x's
    64 MiB VMEM, (b) keep >= 2 grid blocks so the 'parallel' axis can shard across
    v7x's 2 TensorCores, (c) reach N = block_b*S >= 256 when the batch allows, to fill
    the 256-row MXU on v6e/v7x (128 rows already suffice on v5e)."""
    divisors = [d for d in range(1, B + 1) if B % d == 0]
    feasible = [d for d in divisors if _act_vmem_bytes(d, S, dim, E) <= act_budget_bytes] or [1]
    multi = [d for d in feasible if B // d >= 2] or feasible
    big = [d for d in multi if d * S >= 256]
    return min(big) if big else max(multi)


def _vmem_limit_bytes(block_b, S, dim, E, n_layers):
    """Scoped-VMEM request derived from the actual footprint (activations + double-
    buffered bf16 weights + margin), clamped to [32 MiB, 100 MiB].  v5e/v6e have
    128 MiB physical; v7x stays small because block_b is budget-derived."""
    act = _act_vmem_bytes(block_b, S, dim, E)
    wts = 2 * 2 * (n_layers * 4 * E * E + 2 * dim * E)   # bf16, double-buffered
    est = 2 * (act + wts) + (4 << 20)
    return int(min(100 << 20, max(32 << 20, est)))


def attention_flow_forward(x, t, params, n_heads, *, block_b=None):
    """x: (B, S_x, dim), t: (B, S_t, 1). Returns (B, S, dim)."""
    if x.shape[-2] != t.shape[-2]:
        # TODO(synk): fold the repeat_interleave into the x BlockSpec index_map
        # (row index -> row // t_len) instead of materializing the repeated x in HBM.
        x = jnp.repeat(x, t.shape[-2], axis=-2)

    B, S, dim = x.shape
    n_layers, E, _ = params['wq'].shape
    cdt = jnp.bfloat16

    if block_b is None:
        block_b = _pick_block_b(B, S, dim, E)
    assert B % block_b == 0

    # ---- parameter prep (plain JAX, outside the kernel): fused QKV + bf16 casts ----
    w_qkv = jnp.concatenate([params['wq'], params['wk'], params['wv']], axis=-1).astype(cdt)
    b_qkv = jnp.concatenate([params['bq'], params['bk'], params['bv']], axis=-1)   # (L,1,3E) f32
    wo, bo = params['wo'].astype(cdt), params['bo']
    w_in, b_in = params['w_in'].astype(cdt), params['b_in']
    w_out, b_out = params['w_out'].astype(cdt), params['b_out']

    # TODO(synk): if n_layers * 4*E^2 bf16 exceeds the per-generation VMEM budget,
    # re-introduce a layer grid axis and stream per-layer weights instead.

    kernel = functools.partial(attention_flow_kernel, n_heads=n_heads)

    out = pl.pallas_call(
        kernel,
        out_shape=jax.ShapeDtypeStruct((B, S, dim), x.dtype),
        grid=(B // block_b,),
        in_specs=[
            pl.BlockSpec((block_b, S, dim), lambda b: (b, 0, 0)),       # x
            pl.BlockSpec((dim, E), lambda b: (0, 0)),                   # w_in
            pl.BlockSpec((1, E), lambda b: (0, 0)),                     # b_in
            pl.BlockSpec((n_layers, E, 3 * E), lambda b: (0, 0, 0)),    # w_qkv (fused)
            pl.BlockSpec((n_layers, 1, 3 * E), lambda b: (0, 0, 0)),    # b_qkv
            pl.BlockSpec((n_layers, E, E), lambda b: (0, 0, 0)),        # wo (full)
            pl.BlockSpec((n_layers, 1, E), lambda b: (0, 0, 0)),        # bo
            pl.BlockSpec((E, dim), lambda b: (0, 0)),                   # w_out
            pl.BlockSpec((1, dim), lambda b: (0, 0)),                   # b_out
        ],
        out_specs=pl.BlockSpec((block_b, S, dim), lambda b: (b, 0, 0)),
        scratch_shapes=[pltpu.VMEM((block_b * S, E), jnp.float32)],     # head-concat staging
        compiler_params=pltpu.CompilerParams(
            dimension_semantics=("parallel",),
            vmem_limit_bytes=_vmem_limit_bytes(block_b, S, dim, E, n_layers)),
    )(x, w_in, b_in, w_qkv, b_qkv, wo, bo, w_out, b_out)
    return out


def reference_forward(x, t, params, n_heads):
    """Pure-JAX f32 reference mirroring the PyTorch module semantics."""
    if x.shape[-2] != t.shape[-2]:
        x = jnp.repeat(x, t.shape[-2], axis=-2)
    h = x @ params['w_in'] + params['b_in'][0]
    n_layers = params['wq'].shape[0]
    E = h.shape[-1]
    hd = E // n_heads
    scale = 1.0 / (hd ** 0.5)
    for l in range(n_layers):
        q = h @ params['wq'][l] + params['bq'][l, 0]
        k = h @ params['wk'][l] + params['bk'][l, 0]
        v = h @ params['wv'][l] + params['bv'][l, 0]
        B, S, _ = q.shape
        qh = q.reshape(B, S, n_heads, hd).transpose(0, 2, 1, 3)
        kh = k.reshape(B, S, n_heads, hd).transpose(0, 2, 1, 3)
        vh = v.reshape(B, S, n_heads, hd).transpose(0, 2, 1, 3)
        s = jnp.einsum('bhqd,bhkd->bhqk', qh, kh) * scale
        p = jax.nn.softmax(s, axis=-1)
        o = jnp.einsum('bhqk,bhkd->bhqd', p, vh)
        o = o.transpose(0, 2, 1, 3).reshape(B, S, E)
        h = o @ params['wo'][l] + params['bo'][l, 0]
    return h @ params['w_out'] + params['b_out'][0]


if __name__ == "__main__":
    B, S, dim = 16, 8, 4
    hidden_dim, n_heads, n_layers = 32, 4, 2

    key = jax.random.PRNGKey(0)
    keys = jax.random.split(key, 16)
    sc = 0.1

    x = jax.random.normal(keys[0], (B, S, dim), jnp.float32)
    t = jax.random.normal(keys[1], (B, S, 1), jnp.float32)  # same seq len -> no repeat path

    params = {
        'w_in':  jax.random.normal(keys[2],  (dim, hidden_dim), jnp.float32) * sc,
        'b_in':  jax.random.normal(keys[3],  (1, hidden_dim), jnp.float32) * sc,
        'wq':    jax.random.normal(keys[4],  (n_layers, hidden_dim, hidden_dim), jnp.float32) * sc,
        'wk':    jax.random.normal(keys[5],  (n_layers, hidden_dim, hidden_dim), jnp.float32) * sc,
        'wv':    jax.random.normal(keys[6],  (n_layers, hidden_dim, hidden_dim), jnp.float32) * sc,
        'bq':    jax.random.normal(keys[7],  (n_layers, 1, hidden_dim), jnp.float32) * sc,
        'bk':    jax.random.normal(keys[8],  (n_layers, 1, hidden_dim), jnp.float32) * sc,
        'bv':    jax.random.normal(keys[9],  (n_layers, 1, hidden_dim), jnp.float32) * sc,
        'wo':    jax.random.normal(keys[10], (n_layers, hidden_dim, hidden_dim), jnp.float32) * sc,
        'bo':    jax.random.normal(keys[11], (n_layers, 1, hidden_dim), jnp.float32) * sc,
        'w_out': jax.random.normal(keys[12], (hidden_dim, dim), jnp.float32) * sc,
        'b_out': jax.random.normal(keys[13], (1, dim), jnp.float32) * sc,
    }

    y = attention_flow_forward(x, t, params, n_heads)
    y = jax.block_until_ready(y)

    y_ref = reference_forward(x, t, params, n_heads)
    assert y.shape == (B, S, dim)
    # bf16 MXU operands (f32 accumulation) -> loosened tolerance vs the f32 reference.
    err = float(jnp.max(jnp.abs(y - y_ref)))
    assert jnp.allclose(y, y_ref, atol=3e-2, rtol=3e-2), err

    print("KERNEL_OK")
</pallas_src>

<mosaic_0001>
module attributes {stable_mosaic.version = 11 : i64} {
  func.func @attention_flow_kernel(%arg0: i32, %arg1: memref<8x8x4xf32, #tpu.memory_space<vmem>>, %arg2: memref<4x32xbf16, #tpu.memory_space<vmem>>, %arg3: memref<1x32xf32, #tpu.memory_space<vmem>>, %arg4: memref<2x32x96xbf16, #tpu.memory_space<vmem>>, %arg5: memref<2x1x96xf32, #tpu.memory_space<vmem>>, %arg6: memref<2x32x32xbf16, #tpu.memory_space<vmem>>, %arg7: memref<2x1x32xf32, #tpu.memory_space<vmem>>, %arg8: memref<32x4xbf16, #tpu.memory_space<vmem>>, %arg9: memref<1x4xf32, #tpu.memory_space<vmem>>, %arg10: memref<8x8x4xf32, #tpu.memory_space<vmem>>, %arg11: memref<64x32xf32, #tpu.memory_space<vmem>>) attributes {dimension_semantics = [#tpu.dimension_semantics<parallel>], iteration_bounds = array<i64: 2>, scalar_prefetch = 0 : i64, scratch_operands = 1 : i64, tpu.core_type = #tpu.core_type<tc>, window_params = [{transform_indices = @transform_0, window_bounds = array<i64: 8, 8, 4>}, {pipeline_mode = #tpu.pipeline_mode<synchronous>, transform_indices = @transform_1, window_bounds = array<i64: 4, 32>}, {pipeline_mode = #tpu.pipeline_mode<synchronous>, transform_indices = @transform_2, window_bounds = array<i64: 1, 32>}, {pipeline_mode = #tpu.pipeline_mode<synchronous>, transform_indices = @transform_3, window_bounds = array<i64: 2, 32, 96>}, {pipeline_mode = #tpu.pipeline_mode<synchronous>, transform_indices = @transform_4, window_bounds = array<i64: 2, 1, 96>}, {pipeline_mode = #tpu.pipeline_mode<synchronous>, transform_indices = @transform_5, window_bounds = array<i64: 2, 32, 32>}, {pipeline_mode = #tpu.pipeline_mode<synchronous>, transform_indices = @transform_6, window_bounds = array<i64: 2, 1, 32>}, {pipeline_mode = #tpu.pipeline_mode<synchronous>, transform_indices = @transform_7, window_bounds = array<i64: 32, 4>}, {pipeline_mode = #tpu.pipeline_mode<synchronous>, transform_indices = @transform_8, window_bounds = array<i64: 1, 4>}, {transform_indices = @transform_9, window_bounds = array<i64: 8, 8, 4>}]} {
    %c0 = arith.constant 0 : index
    %c0_0 = arith.constant 0 : index
    %c0_1 = arith.constant 0 : index
    %0 = vector.load %arg1[%c0, %c0_0, %c0_1] : memref<8x8x4xf32, #tpu.memory_space<vmem>>, vector<8x8x4xf32>
    %1 = vector.shape_cast %0 : vector<8x8x4xf32> to vector<64x4xf32>
    %2 = arith.truncf %1 : vector<64x4xf32> to vector<64x4xbf16>
    %c0_2 = arith.constant 0 : index
    %c0_3 = arith.constant 0 : index
    %3 = vector.load %arg2[%c0_2, %c0_3] : memref<4x32xbf16, #tpu.memory_space<vmem>>, vector<4x32xbf16>
    %cst = arith.constant dense<0.000000e+00> : vector<64x32xf32>
    %4 = tpu.matmul %2, %3, %cst {dimension_numbers = #tpu.dot_dimension_numbers<[1], [0], [0], [1], [0, 0, 1, 1], [], []>} : vector<64x4xbf16>, vector<4x32xbf16>, vector<64x32xf32> -> vector<64x32xf32>
    %c0_4 = arith.constant 0 : index
    %c0_5 = arith.constant 0 : index
    %5 = vector.load %arg3[%c0_4, %c0_5] : memref<1x32xf32, #tpu.memory_space<vmem>>, vector<1x32xf32>
    %6 = vector.broadcast %5 : vector<1x32xf32> to vector<64x32xf32>
    %7 = arith.addf %4, %6 : vector<64x32xf32>
    %8 = arith.truncf %7 : vector<64x32xf32> to vector<64x32xbf16>
    %c0_6 = arith.constant 0 : index
    %c0_7 = arith.constant 0 : index
    %c0_8 = arith.constant 0 : index
    %9 = vector.load %arg4[%c0_6, %c0_7, %c0_8] : memref<2x32x96xbf16, #tpu.memory_space<vmem>>, vector<1x32x96xbf16>
    %10 = vector.shape_cast %9 : vector<1x32x96xbf16> to vector<32x96xbf16>
    %cst_9 = arith.constant dense<0.000000e+00> : vector<64x96xf32>
    %11 = tpu.matmul %8, %10, %cst_9 {dimension_numbers = #tpu.dot_dimension_numbers<[1], [0], [0], [1], [0, 0, 1, 1], [], []>} : vector<64x32xbf16>, vector<32x96xbf16>, vector<64x96xf32> -> vector<64x96xf32>
    %c0_10 = arith.constant 0 : index
    %c0_11 = arith.constant 0 : index
    %c0_12 = arith.constant 0 : index
    %12 = vector.load %arg5[%c0_10, %c0_11, %c0_12] : memref<2x1x96xf32, #tpu.memory_space<vmem>>, vector<1x1x96xf32>
    %13 = vector.shape_cast %12 : vector<1x1x96xf32> to vector<1x96xf32>
    %14 = vector.broadcast %13 : vector<1x96xf32> to vector<64x96xf32>
    %15 = arith.addf %11, %14 : vector<64x96xf32>
    %16 = vector.extract_strided_slice %15 {offsets = [0, 0], sizes = [64, 8], strides = [1, 1]} : vector<64x96xf32> to vector<64x8xf32>
    %17 = vector.extract_strided_slice %15 {offsets = [0, 32], sizes = [64, 8], strides = [1, 1]} : vector<64x96xf32> to vector<64x8xf32>
    %18 = vector.extract_strided_slice %15 {offsets = [0, 64], sizes = [64, 8], strides = [1, 1]} : vector<64x96xf32> to vector<64x8xf32>
    %19 = vector.shape_cast %16 : vector<64x8xf32> to vector<8x8x8xf32>
    %20 = arith.truncf %19 : vector<8x8x8xf32> to vector<8x8x8xbf16>
    %21 = vector.shape_cast %17 : vector<64x8xf32> to vector<8x8x8xf32>
    %22 = arith.truncf %21 : vector<8x8x8xf32> to vector<8x8x8xbf16>
    %23 = vector.shape_cast %18 : vector<64x8xf32> to vector<8x8x8xf32>
    %24 = arith.truncf %23 : vector<8x8x8xf32> to vector<8x8x8xbf16>
    "tpu.trace_start"() <{level = 10 : i32, message = "bqd,bkd->bqk"}> : () -> ()
    %cst_13 = arith.constant dense<0.000000e+00> : vector<8x8x8xf32>
    %25 = tpu.matmul %20, %22, %cst_13 {dimension_numbers = #tpu.dot_dimension_numbers<[2], [2], [1], [1], [0, 0, 0, 1, 1, 1], [0], [0]>} : vector<8x8x8xbf16>, vector<8x8x8xbf16>, vector<8x8x8xf32> -> vector<8x8x8xf32>
    "tpu.trace_stop"() : () -> ()
    %cst_14 = arith.constant 0.353553385 : f32
    %26 = vector.broadcast %cst_14 : f32 to vector<8x8x8xf32>
    %27 = arith.mulf %25, %26 : vector<8x8x8xf32>
    %cst_15 = arith.constant dense<0xFF800000> : vector<8x8xf32>
    %28 = vector.multi_reduction <maximumf>, %27, %cst_15 [2] : vector<8x8x8xf32> to vector<8x8xf32>
    %29 = vector.shape_cast %28 : vector<8x8xf32> to vector<8x8x1xf32>
    %30 = vector.broadcast %29 : vector<8x8x1xf32> to vector<8x8x8xf32>
    %31 = arith.subf %27, %30 : vector<8x8x8xf32>
    %32 = math.exp %31 : vector<8x8x8xf32>
    %cst_16 = arith.constant dense<0.000000e+00> : vector<8x8xf32>
    %33 = vector.multi_reduction <add>, %32, %cst_16 [2] : vector<8x8x8xf32> to vector<8x8xf32>
    %34 = vector.shape_cast %33 : vector<8x8xf32> to vector<8x8x1xf32>
    %35 = tpu.reciprocal %34 {approx = true} : vector<8x8x1xf32> -> vector<8x8x1xf32>
    %36 = vector.broadcast %35 : vector<8x8x1xf32> to vector<8x8x8xf32>
    %37 = arith.mulf %32, %36 : vector<8x8x8xf32>
    %38 = arith.truncf %37 : vector<8x8x8xf32> to vector<8x8x8xbf16>
    "tpu.trace_start"() <{level = 10 : i32, message = "bqk,bkd->bqd"}> : () -> ()
    %cst_17 = arith.constant dense<0.000000e+00> : vector<8x8x8xf32>
    %39 = tpu.matmul %38, %24, %cst_17 {dimension_numbers = #tpu.dot_dimension_numbers<[2], [1], [1], [2], [0, 0, 0, 1, 1, 2], [0], [0]>} : vector<8x8x8xbf16>, vector<8x8x8xbf16>, vector<8x8x8xf32> -> vector<8x8x8xf32>
    "tpu.trace_stop"() : () -> ()
    %40 = vector.shape_cast %39 : vector<8x8x8xf32> to vector<64x8xf32>
    %c0_18 = arith.constant 0 : index
    %c0_19 = arith.constant 0 : index
    %41 = vector.load %arg11[%c0_18, %c0_19] : memref<64x32xf32, #tpu.memory_space<vmem>>, vector<64x8xf32>
    tpu.vector_store %arg11[%c0_18, %c0_19], %40 {strides = array<i32>} : memref<64x32xf32, #tpu.memory_space<vmem>>, vector<64x8xf32>,
    %42 = vector.extract_strided_slice %15 {offsets = [0, 8], sizes = [64, 8], strides = [1, 1]} : vector<64x96xf32> to vector<64x8xf32>
    %43 = vector.extract_strided_slice %15 {offsets = [0, 40], sizes = [64, 8], strides = [1, 1]} : vector<64x96xf32> to vector<64x8xf32>
    %44 = vector.extract_strided_slice %15 {offsets = [0, 72], sizes = [64, 8], strides = [1, 1]} : vector<64x96xf32> to vector<64x8xf32>
    %45 = vector.shape_cast %42 : vector<64x8xf32> to vector<8x8x8xf32>
    %46 = arith.truncf %45 : vector<8x8x8xf32> to vector<8x8x8xbf16>
    %47 = vector.shape_cast %43 : vector<64x8xf32> to vector<8x8x8xf32>
    %48 = arith.truncf %47 : vector<8x8x8xf32> to vector<8x8x8xbf16>
    %49 = vector.shape_cast %44 : vector<64x8xf32> to vector<8x8x8xf32>
    %50 = arith.truncf %49 : vector<8x8x8xf32> to vector<8x8x8xbf16>
    "tpu.trace_start"() <{level = 10 : i32, message = "bqd,bkd->bqk"}> : () -> ()
    %cst_20 = arith.constant dense<0.000000e+00> : vector<8x8x8xf32>
    %51 = tpu.matmul %46, %48, %cst_20 {dimension_numbers = #tpu.dot_dimension_numbers<[2], [2], [1], [1], [0, 0, 0, 1, 1, 1], [0], [0]>} : vector<8x8x8xbf16>, vector<8x8x8xbf16>, vector<8x8x8xf32> -> vector<8x8x8xf32>
    "tpu.trace_stop"() : () -> ()
    %cst_21 = arith.constant 0.353553385 : f32
    %52 = vector.broadcast %cst_21 : f32 to vector<8x8x8xf32>
    %53 = arith.mulf %51, %52 : vector<8x8x8xf32>
    %cst_22 = arith.constant dense<0xFF800000> : vector<8x8xf32>
    %54 = vector.multi_reduction <maximumf>, %53, %cst_22 [2] : vector<8x8x8xf32> to vector<8x8xf32>
    %55 = vector.shape_cast %54 : vector<8x8xf32> to vector<8x8x1xf32>
    %56 = vector.broadcast %55 : vector<8x8x1xf32> to vector<8x8x8xf32>
    %57 = arith.subf %53, %56 : vector<8x8x8xf32>
    %58 = math.exp %57 : vector<8x8x8xf32>
    %cst_23 = arith.constant dense<0.000000e+00> : vector<8x8xf32>
    %59 = vector.multi_reduction <add>, %58, %cst_23 [2] : vector<8x8x8xf32> to vector<8x8xf32>
    %60 = vector.shape_cast %59 : vector<8x8xf32> to vector<8x8x1xf32>
    %61 = tpu.reciprocal %60 {approx = true} : vector<8x8x1xf32> -> vector<8x8x1xf32>
    %62 = vector.broadcast %61 : vector<8x8x1xf32> to vector<8x8x8xf32>
    %63 = arith.mulf %58, %62 : vector<8x8x8xf32>
    %64 = arith.truncf %63 : vector<8x8x8xf32> to vector<8x8x8xbf16>
    "tpu.trace_start"() <{level = 10 : i32, message = "bqk,bkd->bqd"}> : () -> ()
    %cst_24 = arith.constant dense<0.000000e+00> : vector<8x8x8xf32>
    %65 = tpu.matmul %64, %50, %cst_24 {dimension_numbers = #tpu.dot_dimension_numbers<[2], [1], [1], [2], [0, 0, 0, 1, 1, 2], [0], [0]>} : vector<8x8x8xbf16>, vector<8x8x8xbf16>, vector<8x8x8xf32> -> vector<8x8x8xf32>
    "tpu.trace_stop"() : () -> ()
    %66 = vector.shape_cast %65 : vector<8x8x8xf32> to vector<64x8xf32>
    %c0_25 = arith.constant 0 : index
    %c8 = arith.constant 8 : index
    %67 = vector.load %arg11[%c0_25, %c8] : memref<64x32xf32, #tpu.memory_space<vmem>>, vector<64x8xf32>
    tpu.vector_store %arg11[%c0_25, %c8], %66 {strides = array<i32>} : memref<64x32xf32, #tpu.memory_space<vmem>>, vector<64x8xf32>,
    %68 = vector.extract_strided_slice %15 {offsets = [0, 16], sizes = [64, 8], strides = [1, 1]} : vector<64x96xf32> to vector<64x8xf32>
    %69 = vector.extract_strided_slice %15 {offsets = [0, 48], sizes = [64, 8], strides = [1, 1]} : vector<64x96xf32> to vector<64x8xf32>
    %70 = vector.extract_strided_slice %15 {offsets = [0, 80], sizes = [64, 8], strides = [1, 1]} : vector<64x96xf32> to vector<64x8xf32>
    %71 = vector.shape_cast %68 : vector<64x8xf32> to vector<8x8x8xf32>
    %72 = arith.truncf %71 : vector<8x8x8xf32> to vector<8x8x8xbf16>
    %73 = vector.shape_cast %69 : vector<64x8xf32> to vector<8x8x8xf32>
    %74 = arith.truncf %73 : vector<8x8x8xf32> to vector<8x8x8xbf16>
    %75 = vector.shape_cast %70 : vector<64x8xf32> to vector<8x8x8xf32>
    %76 = arith.truncf %75 : vector<8x8x8xf32> to vector<8x8x8xbf16>
    "tpu.trace_start"() <{level = 10 : i32, message = "bqd,bkd->bqk"}> : () -> ()
    %cst_26 = arith.constant dense<0.000000e+00> : vector<8x8x8xf32>
    %77 = tpu.matmul %72, %74, %cst_26 {dimension_numbers = #tpu.dot_dimension_numbers<[2], [2], [1], [1], [0, 0, 0, 1, 1, 1], [0], [0]>} : vector<8x8x8xbf16>, vector<8x8x8xbf16>, vector<8x8x8xf32> -> vector<8x8x8xf32>
    "tpu.trace_stop"() : () -> ()
    %cst_27 = arith.constant 0.353553385 : f32
    %78 = vector.broadcast %cst_27 : f32 to vector<8x8x8xf32>
    %79 = arith.mulf %77, %78 : vector<8x8x8xf32>
    %cst_28 = arith.constant dense<0xFF800000> : vector<8x8xf32>
    %80 = vector.multi_reduction <maximumf>, %79, %cst_28 [2] : vector<8x8x8xf32> to vector<8x8xf32>
    %81 = vector.shape_cast %80 : vector<8x8xf32> to vector<8x8x1xf32>
    %82 = vector.broadcast %81 : vector<8x8x1xf32> to vector<8x8x8xf32>
    %83 = arith.subf %79, %82 : vector<8x8x8xf32>
    %84 = math.exp %83 : vector<8x8x8xf32>
    %cst_29 = arith.constant dense<0.000000e+00> : vector<8x8xf32>
    %85 = vector.multi_reduction <add>, %84, %cst_29 [2] : vector<8x8x8xf32> to vector<8x8xf32>
    %86 = vector.shape_cast %85 : vector<8x8xf32> to vector<8x8x1xf32>
    %87 = tpu.reciprocal %86 {approx = true} : vector<8x8x1xf32> -> vector<8x8x1xf32>
    %88 = vector.broadcast %87 : vector<8x8x1xf32> to vector<8x8x8xf32>
    %89 = arith.mulf %84, %88 : vector<8x8x8xf32>
    %90 = arith.truncf %89 : vector<8x8x8xf32> to vector<8x8x8xbf16>
    "tpu.trace_start"() <{level = 10 : i32, message = "bqk,bkd->bqd"}> : () -> ()
    %cst_30 = arith.constant dense<0.000000e+00> : vector<8x8x8xf32>
    %91 = tpu.matmul %90, %76, %cst_30 {dimension_numbers = #tpu.dot_dimension_numbers<[2], [1], [1], [2], [0, 0, 0, 1, 1, 2], [0], [0]>} : vector<8x8x8xbf16>, vector<8x8x8xbf16>, vector<8x8x8xf32> -> vector<8x8x8xf32>
    "tpu.trace_stop"() : () -> ()
    %92 = vector.shape_cast %91 : vector<8x8x8xf32> to vector<64x8xf32>
    %c0_31 = arith.constant 0 : index
    %c16 = arith.constant 16 : index
    %93 = vector.load %arg11[%c0_31, %c16] : memref<64x32xf32, #tpu.memory_space<vmem>>, vector<64x8xf32>
    tpu.vector_store %arg11[%c0_31, %c16], %92 {strides = array<i32>} : memref<64x32xf32, #tpu.memory_space<vmem>>, vector<64x8xf32>,
    %94 = vector.extract_strided_slice %15 {offsets = [0, 24], sizes = [64, 8], strides = [1, 1]} : vector<64x96xf32> to vector<64x8xf32>
    %95 = vector.extract_strided_slice %15 {offsets = [0, 56], sizes = [64, 8], strides = [1, 1]} : vector<64x96xf32> to vector<64x8xf32>
    %96 = vector.extract_strided_slice %15 {offsets = [0, 88], sizes = [64, 8], strides = [1, 1]} : vector<64x96xf32> to vector<64x8xf32>
    %97 = vector.shape_cast %94 : vector<64x8xf32> to vector<8x8x8xf32>
    %98 = arith.truncf %97 : vector<8x8x8xf32> to vector<8x8x8xbf16>
    %99 = vector.shape_cast %95 : vector<64x8xf32> to vector<8x8x8xf32>
    %100 = arith.truncf %99 : vector<8x8x8xf32> to vector<8x8x8xbf16>
    %101 = vector.shape_cast %96 : vector<64x8xf32> to vector<8x8x8xf32>
    %102 = arith.truncf %101 : vector<8x8x8xf32> to vector<8x8x8xbf16>
    "tpu.trace_start"() <{level = 10 : i32, message = "bqd,bkd->bqk"}> : () -> ()
    %cst_32 = arith.constant dense<0.000000e+00> : vector<8x8x8xf32>
    %103 = tpu.matmul %98, %100, %cst_32 {dimension_numbers = #tpu.dot_dimension_numbers<[2], [2], [1], [1], [0, 0, 0, 1, 1, 1], [0], [0]>} : vector<8x8x8xbf16>, vector<8x8x8xbf16>, vector<8x8x8xf32> -> vector<8x8x8xf32>
    "tpu.trace_stop"() : () -> ()
    %cst_33 = arith.constant 0.353553385 : f32
    %104 = vector.broadcast %cst_33 : f32 to vector<8x8x8xf32>
    %105 = arith.mulf %103, %104 : vector<8x8x8xf32>
    %cst_34 = arith.constant dense<0xFF800000> : vector<8x8xf32>
    %106 = vector.multi_reduction <maximumf>, %105, %cst_34 [2] : vector<8x8x8xf32> to vector<8x8xf32>
    %107 = vector.shape_cast %106 : vector<8x8xf32> to vector<8x8x1xf32>
    %108 = vector.broadcast %107 : vector<8x8x1xf32> to vector<8x8x8xf32>
    %109 = arith.subf %105, %108 : vector<8x8x8xf32>
    %110 = math.exp %109 : vector<8x8x8xf32>
    %cst_35 = arith.constant dense<0.000000e+00> : vector<8x8xf32>
    %111 = vector.multi_reduction <add>, %110, %cst_35 [2] : vector<8x8x8xf32> to vector<8x8xf32>
    %112 = vector.shape_cast %111 : vector<8x8xf32> to vector<8x8x1xf32>
    %113 = tpu.reciprocal %112 {approx = true} : vector<8x8x1xf32> -> vector<8x8x1xf32>
    %114 = vector.broadcast %113 : vector<8x8x1xf32> to vector<8x8x8xf32>
    %115 = arith.mulf %110, %114 : vector<8x8x8xf32>
    %116 = arith.truncf %115 : vector<8x8x8xf32> to vector<8x8x8xbf16>
    "tpu.trace_start"() <{level = 10 : i32, message = "bqk,bkd->bqd"}> : () -> ()
    %cst_36 = arith.constant dense<0.000000e+00> : vector<8x8x8xf32>
    %117 = tpu.matmul %116, %102, %cst_36 {dimension_numbers = #tpu.dot_dimension_numbers<[2], [1], [1], [2], [0, 0, 0, 1, 1, 2], [0], [0]>} : vector<8x8x8xbf16>, vector<8x8x8xbf16>, vector<8x8x8xf32> -> vector<8x8x8xf32>
    "tpu.trace_stop"() : () -> ()
    %118 = vector.shape_cast %117 : vector<8x8x8xf32> to vector<64x8xf32>
    %c0_37 = arith.constant 0 : index
    %c24 = arith.constant 24 : index
    %119 = vector.load %arg11[%c0_37, %c24] : memref<64x32xf32, #tpu.memory_space<vmem>>, vector<64x8xf32>
    tpu.vector_store %arg11[%c0_37, %c24], %118 {strides = array<i32>} : memref<64x32xf32, #tpu.memory_space<vmem>>, vector<64x8xf32>,
    %c0_38 = arith.constant 0 : index
    %c0_39 = arith.constant 0 : index
    %120 = vector.load %arg11[%c0_38, %c0_39] : memref<64x32xf32, #tpu.memory_space<vmem>>, vector<64x32xf32>
    %121 = arith.truncf %120 : vector<64x32xf32> to vector<64x32xbf16>
    %c0_40 = arith.constant 0 : index
    %c0_41 = arith.constant 0 : index
    %c0_42 = arith.constant 0 : index
    %122 = vector.load %arg6[%c0_40, %c0_41, %c0_42] : memref<2x32x32xbf16, #tpu.memory_space<vmem>>, vector<1x32x32xbf16>
    %123 = vector.shape_cast %122 : vector<1x32x32xbf16> to vector<32x32xbf16>
    %cst_43 = arith.constant dense<0.000000e+00> : vector<64x32xf32>
    %124 = tpu.matmul %121, %123, %cst_43 {dimension_numbers = #tpu.dot_dimension_numbers<[1], [0], [0], [1], [0, 0, 1, 1], [], []>} : vector<64x32xbf16>, vector<32x32xbf16>, vector<64x32xf32> -> vector<64x32xf32>
    %c0_44 = arith.constant 0 : index
    %c0_45 = arith.constant 0 : index
    %c0_46 = arith.constant 0 : index
    %125 = vector.load %arg7[%c0_44, %c0_45, %c0_46] : memref<2x1x32xf32, #tpu.memory_space<vmem>>, vector<1x1x32xf32>
    %126 = vector.shape_cast %125 : vector<1x1x32xf32> to vector<1x32xf32>
    %127 = vector.broadcast %126 : vector<1x32xf32> to vector<64x32xf32>
    %128 = arith.addf %124, %127 : vector<64x32xf32>
    %129 = arith.truncf %128 : vector<64x32xf32> to vector<64x32xbf16>
    %c1 = arith.constant 1 : index
    %c0_47 = arith.constant 0 : index
    %c0_48 = arith.constant 0 : index
    %130 = vector.load %arg4[%c1, %c0_47, %c0_48] : memref<2x32x96xbf16, #tpu.memory_space<vmem>>, vector<1x32x96xbf16>
    %131 = vector.shape_cast %130 : vector<1x32x96xbf16> to vector<32x96xbf16>
    %cst_49 = arith.constant dense<0.000000e+00> : vector<64x96xf32>
    %132 = tpu.matmul %129, %131, %cst_49 {dimension_numbers = #tpu.dot_dimension_numbers<[1], [0], [0], [1], [0, 0, 1, 1], [], []>} : vector<64x32xbf16>, vector<32x96xbf16>, vector<64x96xf32> -> vector<64x96xf32>
    %c1_50 = arith.constant 1 : index
    %c0_51 = arith.constant 0 : index
    %c0_52 = arith.constant 0 : index
    %133 = vector.load %arg5[%c1_50, %c0_51, %c0_52] : memref<2x1x96xf32, #tpu.memory_space<vmem>>, vector<1x1x96xf32>
    %134 = vector.shape_cast %133 : vector<1x1x96xf32> to vector<1x96xf32>
    %135 = vector.broadcast %134 : vector<1x96xf32> to vector<64x96xf32>
    %136 = arith.addf %132, %135 : vector<64x96xf32>
    %137 = vector.extract_strided_slice %136 {offsets = [0, 0], sizes = [64, 8], strides = [1, 1]} : vector<64x96xf32> to vector<64x8xf32>
    %138 = vector.extract_strided_slice %136 {offsets = [0, 32], sizes = [64, 8], strides = [1, 1]} : vector<64x96xf32> to vector<64x8xf32>
    %139 = vector.extract_strided_slice %136 {offsets = [0, 64], sizes = [64, 8], strides = [1, 1]} : vector<64x96xf32> to vector<64x8xf32>
    %140 = vector.shape_cast %137 : vector<64x8xf32> to vector<8x8x8xf32>
    %141 = arith.truncf %140 : vector<8x8x8xf32> to vector<8x8x8xbf16>
    %142 = vector.shape_cast %138 : vector<64x8xf32> to vector<8x8x8xf32>
    %143 = arith.truncf %142 : vector<8x8x8xf32> to vector<8x8x8xbf16>
    %144 = vector.shape_cast %139 : vector<64x8xf32> to vector<8x8x8xf32>
    %145 = arith.truncf %144 : vector<8x8x8xf32> to vector<8x8x8xbf16>
    "tpu.trace_start"() <{level = 10 : i32, message = "bqd,bkd->bqk"}> : () -> ()
    %cst_53 = arith.constant dense<0.000000e+00> : vector<8x8x8xf32>
    %146 = tpu.matmul %141, %143, %cst_53 {dimension_numbers = #tpu.dot_dimension_numbers<[2], [2], [1], [1], [0, 0, 0, 1, 1, 1], [0], [0]>} : vector<8x8x8xbf16>, vector<8x8x8xbf16>, vector<8x8x8xf32> -> vector<8x8x8xf32>
    "tpu.trace_stop"() : () -> ()
    %cst_54 = arith.constant 0.353553385 : f32
    %147 = vector.broadcast %cst_54 : f32 to vector<8x8x8xf32>
    %148 = arith.mulf %146, %147 : vector<8x8x8xf32>
    %cst_55 = arith.constant dense<0xFF800000> : vector<8x8xf32>
    %149 = vector.multi_reduction <maximumf>, %148, %cst_55 [2] : vector<8x8x8xf32> to vector<8x8xf32>
    %150 = vector.shape_cast %149 : vector<8x8xf32> to vector<8x8x1xf32>
    %151 = vector.broadcast %150 : vector<8x8x1xf32> to vector<8x8x8xf32>
    %152 = arith.subf %148, %151 : vector<8x8x8xf32>
    %153 = math.exp %152 : vector<8x8x8xf32>
    %cst_56 = arith.constant dense<0.000000e+00> : vector<8x8xf32>
    %154 = vector.multi_reduction <add>, %153, %cst_56 [2] : vector<8x8x8xf32> to vector<8x8xf32>
    %155 = vector.shape_cast %154 : vector<8x8xf32> to vector<8x8x1xf32>
    %156 = tpu.reciprocal %155 {approx = true} : vector<8x8x1xf32> -> vector<8x8x1xf32>
    %157 = vector.broadcast %156 : vector<8x8x1xf32> to vector<8x8x8xf32>
    %158 = arith.mulf %153, %157 : vector<8x8x8xf32>
    %159 = arith.truncf %158 : vector<8x8x8xf32> to vector<8x8x8xbf16>
    "tpu.trace_start"() <{level = 10 : i32, message = "bqk,bkd->bqd"}> : () -> ()
    %cst_57 = arith.constant dense<0.000000e+00> : vector<8x8x8xf32>
    %160 = tpu.matmul %159, %145, %cst_57 {dimension_numbers = #tpu.dot_dimension_numbers<[2], [1], [1], [2], [0, 0, 0, 1, 1, 2], [0], [0]>} : vector<8x8x8xbf16>, vector<8x8x8xbf16>, vector<8x8x8xf32> -> vector<8x8x8xf32>
    "tpu.trace_stop"() : () -> ()
    %161 = vector.shape_cast %160 : vector<8x8x8xf32> to vector<64x8xf32>
    %c0_58 = arith.constant 0 : index
    %c0_59 = arith.constant 0 : index
    %162 = vector.load %arg11[%c0_58, %c0_59] : memref<64x32xf32, #tpu.memory_space<vmem>>, vector<64x8xf32>
    tpu.vector_store %arg11[%c0_58, %c0_59], %161 {strides = array<i32>} : memref<64x32xf32, #tpu.memory_space<vmem>>, vector<64x8xf32>,
    %163 = vector.extract_strided_slice %136 {offsets = [0, 8], sizes = [64, 8], strides = [1, 1]} : vector<64x96xf32> to vector<64x8xf32>
    %164 = vector.extract_strided_slice %136 {offsets = [0, 40], sizes = [64, 8], strides = [1, 1]} : vector<64x96xf32> to vector<64x8xf32>
    %165 = vector.extract_strided_slice %136 {offsets = [0, 72], sizes = [64, 8], strides = [1, 1]} : vector<64x96xf32> to vector<64x8xf32>
    %166 = vector.shape_cast %163 : vector<64x8xf32> to vector<8x8x8xf32>
    %167 = arith.truncf %166 : vector<8x8x8xf32> to vector<8x8x8xbf16>
    %168 = vector.shape_cast %164 : vector<64x8xf32> to vector<8x8x8xf32>
    %169 = arith.truncf %168 : vector<8x8x8xf32> to vector<8x8x8xbf16>
    %170 = vector.shape_cast %165 : vector<64x8xf32> to vector<8x8x8xf32>
    %171 = arith.truncf %170 : vector<8x8x8xf32> to vector<8x8x8xbf16>
    "tpu.trace_start"() <{level = 10 : i32, message = "bqd,bkd->bqk"}> : () -> ()
    %cst_60 = arith.constant dense<0.000000e+00> : vector<8x8x8xf32>
    %172 = tpu.matmul %167, %169, %cst_60 {dimension_numbers = #tpu.dot_dimension_numbers<[2], [2], [1], [1], [0, 0, 0, 1, 1, 1], [0], [0]>} : vector<8x8x8xbf16>, vector<8x8x8xbf16>, vector<8x8x8xf32> -> vector<8x8x8xf32>
    "tpu.trace_stop"() : () -> ()
    %cst_61 = arith.constant 0.353553385 : f32
    %173 = vector.broadcast %cst_61 : f32 to vector<8x8x8xf32>
    %174 = arith.mulf %172, %173 : vector<8x8x8xf32>
    %cst_62 = arith.constant dense<0xFF800000> : vector<8x8xf32>
    %175 = vector.multi_reduction <maximumf>, %174, %cst_62 [2] : vector<8x8x8xf32> to vector<8x8xf32>
    %176 = vector.shape_cast %175 : vector<8x8xf32> to vector<8x8x1xf32>
    %177 = vector.broadcast %176 : vector<8x8x1xf32> to vector<8x8x8xf32>
    %178 = arith.subf %174, %177 : vector<8x8x8xf32>
    %179 = math.exp %178 : vector<8x8x8xf32>
    %cst_63 = arith.constant dense<0.000000e+00> : vector<8x8xf32>
    %180 = vector.multi_reduction <add>, %179, %cst_63 [2] : vector<8x8x8xf32> to vector<8x8xf32>
    %181 = vector.shape_cast %180 : vector<8x8xf32> to vector<8x8x1xf32>
    %182 = tpu.reciprocal %181 {approx = true} : vector<8x8x1xf32> -> vector<8x8x1xf32>
    %183 = vector.broadcast %182 : vector<8x8x1xf32> to vector<8x8x8xf32>
    %184 = arith.mulf %179, %183 : vector<8x8x8xf32>
    %185 = arith.truncf %184 : vector<8x8x8xf32> to vector<8x8x8xbf16>
    "tpu.trace_start"() <{level = 10 : i32, message = "bqk,bkd->bqd"}> : () -> ()
    %cst_64 = arith.constant dense<0.000000e+00> : vector<8x8x8xf32>
    %186 = tpu.matmul %185, %171, %cst_64 {dimension_numbers = #tpu.dot_dimension_numbers<[2], [1], [1], [2], [0, 0, 0, 1, 1, 2], [0], [0]>} : vector<8x8x8xbf16>, vector<8x8x8xbf16>, vector<8x8x8xf32> -> vector<8x8x8xf32>
    "tpu.trace_stop"() : () -> ()
    %187 = vector.shape_cast %186 : vector<8x8x8xf32> to vector<64x8xf32>
    %c0_65 = arith.constant 0 : index
    %c8_66 = arith.constant 8 : index
    %188 = vector.load %arg11[%c0_65, %c8_66] : memref<64x32xf32, #tpu.memory_space<vmem>>, vector<64x8xf32>
    tpu.vector_store %arg11[%c0_65, %c8_66], %187 {strides = array<i32>} : memref<64x32xf32, #tpu.memory_space<vmem>>, vector<64x8xf32>,
    %189 = vector.extract_strided_slice %136 {offsets = [0, 16], sizes = [64, 8], strides = [1, 1]} : vector<64x96xf32> to vector<64x8xf32>
    %190 = vector.extract_strided_slice %136 {offsets = [0, 48], sizes = [64, 8], strides = [1, 1]} : vector<64x96xf32> to vector<64x8xf32>
    %191 = vector.extract_strided_slice %136 {offsets = [0, 80], sizes = [64, 8], strides = [1, 1]} : vector<64x96xf32> to vector<64x8xf32>
    %192 = vector.shape_cast %189 : vector<64x8xf32> to vector<8x8x8xf32>
    %193 = arith.truncf %192 : vector<8x8x8xf32> to vector<8x8x8xbf16>
    %194 = vector.shape_cast %190 : vector<64x8xf32> to vector<8x8x8xf32>
    %195 = arith.truncf %194 : vector<8x8x8xf32> to vector<8x8x8xbf16>
    %196 = vector.shape_cast %191 : vector<64x8xf32> to vector<8x8x8xf32>
    %197 = arith.truncf %196 : vector<8x8x8xf32> to vector<8x8x8xbf16>
    "tpu.trace_start"() <{level = 10 : i32, message = "bqd,bkd->bqk"}> : () -> ()
    %cst_67 = arith.constant dense<0.000000e+00> : vector<8x8x8xf32>
    %198 = tpu.matmul %193, %195, %cst_67 {dimension_numbers = #tpu.dot_dimension_numbers<[2], [2], [1], [1], [0, 0, 0, 1, 1, 1], [0], [0]>} : vector<8x8x8xbf16>, vector<8x8x8xbf16>, vector<8x8x8xf32> -> vector<8x8x8xf32>
    "tpu.trace_stop"() : () -> ()
    %cst_68 = arith.constant 0.353553385 : f32
    %199 = vector.broadcast %cst_68 : f32 to vector<8x8x8xf32>
    %200 = arith.mulf %198, %199 : vector<8x8x8xf32>
    %cst_69 = arith.constant dense<0xFF800000> : vector<8x8xf32>
    %201 = vector.multi_reduction <maximumf>, %200, %cst_69 [2] : vector<8x8x8xf32> to vector<8x8xf32>
    %202 = vector.shape_cast %201 : vector<8x8xf32> to vector<8x8x1xf32>
    %203 = vector.broadcast %202 : vector<8x8x1xf32> to vector<8x8x8xf32>
    %204 = arith.subf %200, %203 : vector<8x8x8xf32>
    %205 = math.exp %204 : vector<8x8x8xf32>
    %cst_70 = arith.constant dense<0.000000e+00> : vector<8x8xf32>
    %206 = vector.multi_reduction <add>, %205, %cst_70 [2] : vector<8x8x8xf32> to vector<8x8xf32>
    %207 = vector.shape_cast %206 : vector<8x8xf32> to vector<8x8x1xf32>
    %208 = tpu.reciprocal %207 {approx = true} : vector<8x8x1xf32> -> vector<8x8x1xf32>
    %209 = vector.broadcast %208 : vector<8x8x1xf32> to vector<8x8x8xf32>
    %210 = arith.mulf %205, %209 : vector<8x8x8xf32>
    %211 = arith.truncf %210 : vector<8x8x8xf32> to vector<8x8x8xbf16>
    "tpu.trace_start"() <{level = 10 : i32, message = "bqk,bkd->bqd"}> : () -> ()
    %cst_71 = arith.constant dense<0.000000e+00> : vector<8x8x8xf32>
    %212 = tpu.matmul %211, %197, %cst_71 {dimension_numbers = #tpu.dot_dimension_numbers<[2], [1], [1], [2], [0, 0, 0, 1, 1, 2], [0], [0]>} : vector<8x8x8xbf16>, vector<8x8x8xbf16>, vector<8x8x8xf32> -> vector<8x8x8xf32>
    "tpu.trace_stop"() : () -> ()
    %213 = vector.shape_cast %212 : vector<8x8x8xf32> to vector<64x8xf32>
    %c0_72 = arith.constant 0 : index
    %c16_73 = arith.constant 16 : index
    %214 = vector.load %arg11[%c0_72, %c16_73] : memref<64x32xf32, #tpu.memory_space<vmem>>, vector<64x8xf32>
    tpu.vector_store %arg11[%c0_72, %c16_73], %213 {strides = array<i32>} : memref<64x32xf32, #tpu.memory_space<vmem>>, vector<64x8xf32>,
    %215 = vector.extract_strided_slice %136 {offsets = [0, 24], sizes = [64, 8], strides = [1, 1]} : vector<64x96xf32> to vector<64x8xf32>
    %216 = vector.extract_strided_slice %136 {offsets = [0, 56], sizes = [64, 8], strides = [1, 1]} : vector<64x96xf32> to vector<64x8xf32>
    %217 = vector.extract_strided_slice %136 {offsets = [0, 88], sizes = [64, 8], strides = [1, 1]} : vector<64x96xf32> to vector<64x8xf32>
    %218 = vector.shape_cast %215 : vector<64x8xf32> to vector<8x8x8xf32>
    %219 = arith.truncf %218 : vector<8x8x8xf32> to vector<8x8x8xbf16>
    %220 = vector.shape_cast %216 : vector<64x8xf32> to vector<8x8x8xf32>
    %221 = arith.truncf %220 : vector<8x8x8xf32> to vector<8x8x8xbf16>
    %222 = vector.shape_cast %217 : vector<64x8xf32> to vector<8x8x8xf32>
    %223 = arith.truncf %222 : vector<8x8x8xf32> to vector<8x8x8xbf16>
    "tpu.trace_start"() <{level = 10 : i32, message = "bqd,bkd->bqk"}> : () -> ()
    %cst_74 = arith.constant dense<0.000000e+00> : vector<8x8x8xf32>
    %224 = tpu.matmul %219, %221, %cst_74 {dimension_numbers = #tpu.dot_dimension_numbers<[2], [2], [1], [1], [0, 0, 0, 1, 1, 1], [0], [0]>} : vector<8x8x8xbf16>, vector<8x8x8xbf16>, vector<8x8x8xf32> -> vector<8x8x8xf32>
    "tpu.trace_stop"() : () -> ()
    %cst_75 = arith.constant 0.353553385 : f32
    %225 = vector.broadcast %cst_75 : f32 to vector<8x8x8xf32>
    %226 = arith.mulf %224, %225 : vector<8x8x8xf32>
    %cst_76 = arith.constant dense<0xFF800000> : vector<8x8xf32>
    %227 = vector.multi_reduction <maximumf>, %226, %cst_76 [2] : vector<8x8x8xf32> to vector<8x8xf32>
    %228 = vector.shape_cast %227 : vector<8x8xf32> to vector<8x8x1xf32>
    %229 = vector.broadcast %228 : vector<8x8x1xf32> to vector<8x8x8xf32>
    %230 = arith.subf %226, %229 : vector<8x8x8xf32>
    %231 = math.exp %230 : vector<8x8x8xf32>
    %cst_77 = arith.constant dense<0.000000e+00> : vector<8x8xf32>
    %232 = vector.multi_reduction <add>, %231, %cst_77 [2] : vector<8x8x8xf32> to vector<8x8xf32>
    %233 = vector.shape_cast %232 : vector<8x8xf32> to vector<8x8x1xf32>
    %234 = tpu.reciprocal %233 {approx = true} : vector<8x8x1xf32> -> vector<8x8x1xf32>
    %235 = vector.broadcast %234 : vector<8x8x1xf32> to vector<8x8x8xf32>
    %236 = arith.mulf %231, %235 : vector<8x8x8xf32>
    %237 = arith.truncf %236 : vector<8x8x8xf32> to vector<8x8x8xbf16>
    "tpu.trace_start"() <{level = 10 : i32, message = "bqk,bkd->bqd"}> : () -> ()
    %cst_78 = arith.constant dense<0.000000e+00> : vector<8x8x8xf32>
    %238 = tpu.matmul %237, %223, %cst_78 {dimension_numbers = #tpu.dot_dimension_numbers<[2], [1], [1], [2], [0, 0, 0, 1, 1, 2], [0], [0]>} : vector<8x8x8xbf16>, vector<8x8x8xbf16>, vector<8x8x8xf32> -> vector<8x8x8xf32>
    "tpu.trace_stop"() : () -> ()
    %239 = vector.shape_cast %238 : vector<8x8x8xf32> to vector<64x8xf32>
    %c0_79 = arith.constant 0 : index
    %c24_80 = arith.constant 24 : index
    %240 = vector.load %arg11[%c0_79, %c24_80] : memref<64x32xf32, #tpu.memory_space<vmem>>, vector<64x8xf32>
    tpu.vector_store %arg11[%c0_79, %c24_80], %239 {strides = array<i32>} : memref<64x32xf32, #tpu.memory_space<vmem>>, vector<64x8xf32>,
    %c0_81 = arith.constant 0 : index
    %c0_82 = arith.constant 0 : index
    %241 = vector.load %arg11[%c0_81, %c0_82] : memref<64x32xf32, #tpu.memory_space<vmem>>, vector<64x32xf32>
    %242 = arith.truncf %241 : vector<64x32xf32> to vector<64x32xbf16>
    %c1_83 = arith.constant 1 : index
    %c0_84 = arith.constant 0 : index
    %c0_85 = arith.constant 0 : index
    %243 = vector.load %arg6[%c1_83, %c0_84, %c0_85] : memref<2x32x32xbf16, #tpu.memory_space<vmem>>, vector<1x32x32xbf16>
    %244 = vector.shape_cast %243 : vector<1x32x32xbf16> to vector<32x32xbf16>
    %cst_86 = arith.constant dense<0.000000e+00> : vector<64x32xf32>
    %245 = tpu.matmul %242, %244, %cst_86 {dimension_numbers = #tpu.dot_dimension_numbers<[1], [0], [0], [1], [0, 0, 1, 1], [], []>} : vector<64x32xbf16>, vector<32x32xbf16>, vector<64x32xf32> -> vector<64x32xf32>
    %c1_87 = arith.constant 1 : index
    %c0_88 = arith.constant 0 : index
    %c0_89 = arith.constant 0 : index
    %246 = vector.load %arg7[%c1_87, %c0_88, %c0_89] : memref<2x1x32xf32, #tpu.memory_space<vmem>>, vector<1x1x32xf32>
    %247 = vector.shape_cast %246 : vector<1x1x32xf32> to vector<1x32xf32>
    %248 = vector.broadcast %247 : vector<1x32xf32> to vector<64x32xf32>
    %249 = arith.addf %245, %248 : vector<64x32xf32>
    %250 = arith.truncf %249 : vector<64x32xf32> to vector<64x32xbf16>
    %c0_90 = arith.constant 0 : index
    %c0_91 = arith.constant 0 : index
    %251 = vector.load %arg8[%c0_90, %c0_91] : memref<32x4xbf16, #tpu.memory_space<vmem>>, vector<32x4xbf16>
    %cst_92 = arith.constant dense<0.000000e+00> : vector<64x4xf32>
    %252 = tpu.matmul %250, %251, %cst_92 {dimension_numbers = #tpu.dot_dimension_numbers<[1], [0], [0], [1], [0, 0, 1, 1], [], []>} : vector<64x32xbf16>, vector<32x4xbf16>, vector<64x4xf32> -> vector<64x4xf32>
    %c0_93 = arith.constant 0 : index
    %c0_94 = arith.constant 0 : index
    %253 = vector.load %arg9[%c0_93, %c0_94] : memref<1x4xf32, #tpu.memory_space<vmem>>, vector<1x4xf32>
    %254 = vector.broadcast %253 : vector<1x4xf32> to vector<64x4xf32>
    %255 = arith.addf %252, %254 : vector<64x4xf32>
    %256 = vector.shape_cast %255 : vector<64x4xf32> to vector<8x8x4xf32>
    %c0_95 = arith.constant 0 : index
    %c0_96 = arith.constant 0 : index
    %c0_97 = arith.constant 0 : index
    %257 = vector.load %arg10[%c0_95, %c0_96, %c0_97] : memref<8x8x4xf32, #tpu.memory_space<vmem>>, vector<8x8x4xf32>
    tpu.vector_store %arg10[%c0_95, %c0_96, %c0_97], %256 {strides = array<i32>} : memref<8x8x4xf32, #tpu.memory_space<vmem>>, vector<8x8x4xf32>,
    return
  }
  func.func @transform_0(%arg0: i32) -> (i32, i32, i32) {
    %c0_i32 = arith.constant 0 : i32
    %c0_i32_0 = arith.constant 0 : i32
    %c0_i32_1 = arith.constant 0 : i32
    return %arg0, %c0_i32, %c0_i32_0 : i32, i32, i32
  }
  func.func @transform_1(%arg0: i32) -> (i32, i32) {
    %c0_i32 = arith.constant 0 : i32
    %c0_i32_0 = arith.constant 0 : i32
    %c0_i32_1 = arith.constant 0 : i32
    return %c0_i32, %c0_i32_0 : i32, i32
  }
  func.func @transform_2(%arg0: i32) -> (i32, i32) {
    %c0_i32 = arith.constant 0 : i32
    %c0_i32_0 = arith.constant 0 : i32
    %c0_i32_1 = arith.constant 0 : i32
    return %c0_i32, %c0_i32_0 : i32, i32
  }
  func.func @transform_3(%arg0: i32) -> (i32, i32, i32) {
    %c0_i32 = arith.constant 0 : i32
    %c0_i32_0 = arith.constant 0 : i32
    %c0_i32_1 = arith.constant 0 : i32
    %c0_i32_2 = arith.constant 0 : i32
    return %c0_i32, %c0_i32_0, %c0_i32_1 : i32, i32, i32
  }
  func.func @transform_4(%arg0: i32) -> (i32, i32, i32) {
    %c0_i32 = arith.constant 0 : i32
    %c0_i32_0 = arith.constant 0 : i32
    %c0_i32_1 = arith.constant 0 : i32
    %c0_i32_2 = arith.constant 0 : i32
    return %c0_i32, %c0_i32_0, %c0_i32_1 : i32, i32, i32
  }
  func.func @transform_5(%arg0: i32) -> (i32, i32, i32) {
    %c0_i32 = arith.constant 0 : i32
    %c0_i32_0 = arith.constant 0 : i32
    %c0_i32_1 = arith.constant 0 : i32
    %c0_i32_2 = arith.constant 0 : i32
    return %c0_i32, %c0_i32_0, %c0_i32_1 : i32, i32, i32
  }
  func.func @transform_6(%arg0: i32) -> (i32, i32, i32) {
    %c0_i32 = arith.constant 0 : i32
    %c0_i32_0 = arith.constant 0 : i32
    %c0_i32_1 = arith.constant 0 : i32
    %c0_i32_2 = arith.constant 0 : i32
    return %c0_i32, %c0_i32_0, %c0_i32_1 : i32, i32, i32
  }
  func.func @transform_7(%arg0: i32) -> (i32, i32) {
    %c0_i32 = arith.constant 0 : i32
    %c0_i32_0 = arith.constant 0 : i32
    %c0_i32_1 = arith.constant 0 : i32
    return %c0_i32, %c0_i32_0 : i32, i32
  }
  func.func @transform_8(%arg0: i32) -> (i32, i32) {
    %c0_i32 = arith.constant 0 : i32
    %c0_i32_0 = arith.constant 0 : i32
    %c0_i32_1 = arith.constant 0 : i32
    return %c0_i32, %c0_i32_0 : i32, i32
  }
  func.func @transform_9(%arg0: i32) -> (i32, i32, i32) {
    %c0_i32 = arith.constant 0 : i32
    %c0_i32_0 = arith.constant 0 : i32
    %c0_i32_1 = arith.constant 0 : i32
    return %arg0, %c0_i32, %c0_i32_0 : i32, i32, i32
  }
}

</mosaic_0001>

<bundles_post_ra>
// kernel: tpu_custom_call.1
= control target key start
LH: loop header
LB: loop body
LE: loop exit
PB: predicated region body
PF: predicated region fallthrough
CT: control target
= control target key end

     0   :  { %s5333_s30 = smov 0   ;;  %s6789_s0 = inlined_call_operand.vmem [shape: f32[16,8,4], index: 0, kind: input, shape index: {}]   ;;  %s6790_s1 = inlined_call_operand.vmem [shape: bf16[4,32], index: 1, kind: input, shape index: {}]   ;;  %s6791_s2 = inlined_call_operand.vmem [shape: f32[1,32], index: 2, kind: input, shape index: {}]   ;;  %s6792_s3 = inlined_call_operand.vmem [shape: bf16[2,32,96], index: 3, kind: input, shape index: {}]   ;;  %s6793_s4 = inlined_call_operand.vmem [shape: f32[2,1,96], index: 4, kind: input, shape index: {}]   ;;  %s6794_s5 = inlined_call_operand.vmem [shape: bf16[2,32,32], index: 5, kind: input, shape index: {}]   ;;  %s6795_s6 = inlined_call_operand.vmem [shape: f32[2,1,32], index: 6, kind: input, shape index: {}]   ;;  %s6796_s7 = inlined_call_operand.vmem [shape: bf16[32,4], index: 7, kind: input, shape index: {}]   ;;  %s6797_s8 = inlined_call_operand.vmem [shape: f32[1,4], index: 8, kind: input, shape index: {}]   ;;  %s6798_s9 = inlined_call_operand.vmem [shape: f32[16,8,4], index: 9, kind: output, shape index: {}]  }
   0x1 LB: > { %s4751_s10 = sadd.s32 4294967295, %s5267_s30   ;;  %p4755_p0 = scmp.ge.s32.totalorder %s5267_s30, 1  ;;  %s5267_s30 = sphi %s5333_s30, %s19_s30  }
   0x2   : > { %p288_p1 = scmp.lt.s32.totalorder %s5267_s30, 3 }
   0x4   : > { %p289_p2 = pnand %p4755_p0, %p288_p1 }
   0x5   : > { %s4756_s13 = sshll.u32 (!%p289_p2), %s4751_s10, 3  ;;  %s5269_s26 = smov (!%p289_p2), 96  }
   0x6   : > { %292 = sbr.rel (%p289_p2) target bundleno = 5276 (0x149c), region = 56  ;;  %p325_p3 = scmp.lt.s32.totalorder (!%p289_p2), %s4756_s13, 15 }
   0x7   : > { %s5270_s27 = smov (!%p289_p2), 64   ;;  %s5271_s28 = smov (!%p289_p2), 88  }
   0x8   : > { %s5272_s29 = smov (!%p289_p2), 120   ;;  %s5273_s10 = smov (!%p289_p2), 56  }
   0x9   : > { %s5274_s11 = smov (!%p289_p2), 80   ;;  %s5275_s12 = smov (!%p289_p2), 112  }
   0xa   : > { %s5276_s15 = smov (!%p289_p2), 48   ;;  %s5277_s16 = smov (!%p289_p2), 72  }
   0xb   : > { %v349_v0 = vld [vmem:[%s6790_s1] sm:$0x3]  ;;  %vm367_vm0 = vcmask 1041408   ;;  %s6805_s13 = smov (!%p325_p3, %s4756_s13), 15  ;;  %vm354_vm1 = vcmask 31744   ;;  %v4965_v14 = vld [vmem:[%s6792_s3 + $0x8] sm:$0xff] }
   0xc   : > { %v369_v1 = vsel %vm367_vm0, %v349_v0, 0  ;;  %s6799_s14 = sshll.u32 %s6805_s13, 3  ;;  %443 = vmatpush.bf16.msra.mxu1 %v4965_v14  ;;  %4975 = vmatpush.bf16.msra.mxu2 %v4965_v14  ;;  %v4964_v15 = vld [vmem:[%s6792_s3] sm:$0xff]  ;;  %vm424_vm2 = vcmask 261120   ;;  %vm479_vm3 = vcmask 64512   ;;  %vm776_vm4 = vcmask 1043456  }
   0xd   : > { %378 = vmatpush.bf16.msra.mxu0 %v369_v1  ;;  %4974 = vmatpush.bf16.msra.mxu3 %v369_v1  ;;  %s328_s17 = scalar_lea.vmem %s6789_s0, %s6799_s14  ;;  %v4999_v17 = vld [vmem:[%s6791_s2] ss:$0 sm:$0xff]  ;;  %s5279_s18 = smov 40   ;;  %vm1436_vm5 = vcmask 130112   ;;  %vm1933_vm6 = vcmask 195712   ;;  %vm2430_vm7 = vcmask 261312  }
   0xe   : > { %v337_v2 = vld [vmem:[%s328_s17] sm:$0xff]  ;;  %v338_v3 = vld [vmem:[%s328_s17 + $0x8] sm:$0xff]  ;;  %v339_v4 = vld [vmem:[%s328_s17 + $0x10] sm:$0xff]  ;;  %s5280_s19 = smov 8   ;;  %s5281_s20 = smov 16  }
   0xf   : > { %v345_v5 = vpack.c.bf16 %v338_v3, %v337_v2  ;;  %v340_v6 = vld [vmem:[%s328_s17 + $0x18] sm:$0xff]  ;;  %v341_v8 = vld [vmem:[%s328_s17 + $0x20] sm:$0xff]  ;;  %v342_v9 = vld [vmem:[%s328_s17 + $0x28] sm:$0xff]  ;;  %s6800_s21 = smov 24   ;;  %s6803_s22 = sshll.u32 %s6805_s13, 3 }
  0x10   : > { %v346_v7 = vpack.c.bf16 %v340_v6, %v339_v4  ;;  %v347_v10 = vpack.c.bf16 %v342_v9, %v341_v8  ;;  %v343_v11 = vld [vmem:[%s328_s17 + $0x30] sm:$0xff]  ;;  %v344_v12 = vld [vmem:[%s328_s17 + $0x38] sm:$0xff]  ;;  %444 = vmatpush.bf16.msra.mxu1 %v4964_v15  ;;  %4976 = vmatpush.bf16.msra.mxu2 %v4964_v15  ;;  %v5000_v37 = vld [vmem:[%s6793_s4] ss:$0 sm:$0xff]  ;;  %s5278_s17 = smov 104   ;;  %s334_s25 = scalar_lea.vmem %s6798_s9, %s6803_s22 }
  0x11   : > { %4760 = vmatmul.msk.bf16.vlgmr.msra.gmra.mxu0 %vm354_vm1, %v345_v5  ;;  %v348_v13 = vpack.c.bf16 %v344_v12, %v343_v11 }
  0x12   : > { %4761 = vmatmul.msk.bf16.vlgmr.msra.gmra.mxu3 %vm354_vm1, %v346_v7 }
  0x22   : > { %4762 = vmatmul.msk.bf16.gmra.mxu3 %vm354_vm1, %v347_v10 }
  0x32   : > { %4763 = vmatmul.msk.bf16.gmra.mxu3 %vm354_vm1, %v348_v13 }
  0x8e   : > { %v380_v16 = vpop.f32.mrf.mxu0 }
  0x8f   : > { %v381_v20 = vadd.f32 %v4999_v17, %v380_v16 }
  0x95   : > { %v385_v18 = vpop.f32.mrf.mxu3 }
  0x96   : > { %v382_v19 = vpop.f32.mrf.mxu0  ;;  %v386_v24 = vadd.f32 %v4999_v17, %v385_v18 }
  0x97   : > { %v383_v21 = vadd.f32 %v4999_v17, %v382_v19 }
  0x99   : > { %v400_v22 = vpack.c.bf16 %v383_v21, %v381_v20 }
  0x9b   : > { %4772 = vmatmul.msk.bf16.vlgmr.msra.gmra.mxu1 %vm424_vm2, %v400_v22 }
  0x9d   : > { %v387_v23 = vpop.f32.mrf.mxu3 }
  0x9e   : > { %v388_v25 = vadd.f32 %v4999_v17, %v387_v23 }
  0xa0   : > { %v401_v27 = vpack.c.bf16 %v388_v25, %v386_v24 }
  0xa5   : > { %v390_v26 = vpop.f32.mrf.mxu3 }
  0xa6   : > { %v391_v28 = vadd.f32 %v4999_v17, %v390_v26 }
  0xab   : > { %4773 = vmatmul.msk.bf16.gmra.mxu1 %vm424_vm2, %v401_v27 }
  0xad   : > { %v392_v29 = vpop.f32.mrf.mxu3 }
  0xae   : > { %v393_v30 = vadd.f32 %v4999_v17, %v392_v29 }
  0xb0   : > { %v402_v31 = vpack.c.bf16 %v393_v30, %v391_v28 }
  0xb2   : > { %4774 = vmatmul.msk.bf16.vlgmr.msra.gmra.mxu2 %vm424_vm2, %v402_v31 }
  0xb5   : > { %v395_v32 = vpop.f32.mrf.mxu3 }
  0xb6   : > { %v396_v33 = vadd.f32 %v4999_v17, %v395_v32 }
  0xbd   : > { %v397_v34 = vpop.f32.mrf.mxu3 }
  0xbe   : > { %v398_v35 = vadd.f32 %v4999_v17, %v397_v34 }
  0xc0   : > { %v403_v36 = vpack.c.bf16 %v398_v35, %v396_v33 }
  0xc2   : > { %4775 = vmatmul.msk.bf16.gmra.mxu2 %vm424_vm2, %v403_v36 }
 0x118   : > { %v446_v38 = vpop.f32.mrf.mxu1 }
 0x119   : > { %v447_v39 = vadd.f32 %v5000_v37, %v446_v38 }
 0x11b   : > { %v5372_v40 = vpack.c.bf16 %v447_v39, %v447_v39 }
 0x11d   : > { %v475_v41 = vunpack.c.l.b16 %v5372_v40 }
 0x11f   : > { %v5375_v42 = vpack.c.b16 %v475_v41, %v475_v41 }
 0x120   : > { %v448_v43 = vpop.f32.mrf.mxu1 }
 0x121   : > { %477 = vrot.lane.b32.xlu0 %v5375_v42, %s5269_s26  ;;  %v449_v61 = vadd.f32 %v5000_v37, %v448_v43 }
 0x123   : > { %v467_v0 = vpack.c.bf16 %v449_v61, %v449_v61 }
 0x125   : > { %v500_v4 = vunpack.c.l.b16 %v467_v0 }
 0x127   : > { %v5410_v7 = vpack.c.b16 %v500_v4, %v500_v4 }
 0x128   : > { %v451_v44 = vpop.f32.mrf.mxu1 }
 0x129   : > { %v452_v45 = vadd.f32 %v5000_v37, %v451_v44 }
 0x12b   : > { %v5379_v46 = vpack.c.bf16 %v452_v45, %v452_v45 }
 0x12d   : > { %v524_v47 = vunpack.c.l.b16 %v5379_v46 }
 0x12f   : > { %v5382_v48 = vpack.c.b16 %v524_v47, %v524_v47 }
 0x130   : > { %v453_v49 = vpop.f32.mrf.mxu1 }
 0x131   : > { %v454_v50 = vadd.f32 %v5000_v37, %v453_v49  ;;  %526 = vrot.lane.b32.xlu0 %v5382_v48, %s5269_s26 }
 0x133   : > { %v5386_v51 = vpack.c.bf16 %v454_v50, %v454_v50 }
 0x135   : > { %v548_v52 = vunpack.c.l.b16 %v5386_v51  ;;  %v456_v53 = vpop.f32.mrf.mxu2 }
 0x136   : > { %v457_v54 = vadd.f32 %v5000_v37, %v456_v53 }
 0x137   : > { %v5389_v55 = vpack.c.b16 %v548_v52, %v548_v52 }
 0x138   : > { %v5391_v56 = vpack.c.bf16 %v457_v54, %v457_v54 }
 0x139   : > { %550 = vrot.lane.b32.xlu1 %v5389_v55, %s5269_s26 }
 0x13a   : > { %v572_v57 = vunpack.c.l.b16 %v5391_v56 }
 0x13c   : > { %v5396_v58 = vpack.c.b16 %v572_v57, %v572_v57 }
 0x13d   : > { %v458_v59 = vpop.f32.mrf.mxu2 }
 0x13e   : > { %v459_v60 = vadd.f32 %v5000_v37, %v458_v59 }
 0x140   : > { %v5398_v62 = vpack.c.bf16 %v459_v60, %v459_v60 }
 0x141   : > { %574 = vrot.lane.b32.xlu1 %v5396_v58, %s5269_s26 }
 0x142   : > { %v596_v63 = vunpack.c.l.b16 %v5398_v62 }
 0x144   : > { %v5403_v1 = vpack.c.b16 %v596_v63, %v596_v63 }
 0x145   : > { %v461_v2 = vpop.f32.mrf.mxu2 }
 0x146   : > { %v462_v3 = vadd.f32 %v5000_v37, %v461_v2  ;;  %598 = vrot.lane.b32.xlu2 %v5403_v1, %s5269_s26 }
 0x148   : > { %v5407_v5 = vpack.c.bf16 %v462_v3, %v462_v3 }
 0x14a   : > { %v620_v6 = vunpack.c.l.b16 %v5407_v5 }
 0x14c   : > { %v5412_v8 = vpack.c.b16 %v620_v6, %v620_v6 }
 0x14d   : > { %v463_v9 = vpop.f32.mrf.mxu2 }
 0x14e   : > { %v464_v10 = vadd.f32 %v5000_v37, %v463_v9  ;;  %502 = vrot.lane.b32.xlu2 %v5410_v7, %s5269_s26  ;;  %622 = vrot.lane.b32.xlu0 %v5412_v8, %s5269_s26 }
 0x150   : > { %v5418_v11 = vpack.c.bf16 %v464_v10, %v464_v10 }
 0x152   : > { %v644_v12 = vunpack.c.l.b16 %v5418_v11 }
 0x154   : > { %v5421_v13 = vpack.c.b16 %v644_v12, %v644_v12 }
 0x156   : > { %646 = vrot.lane.b32.xlu1 %v5421_v13, %s5269_s26  ;;  %835 = vrot.lane.b32.xlu2 %v5389_v55, %s5270_s27 }
 0x157   : > { %771 = vrot.lane.b32.xlu0 %v5375_v42, %s5270_s27 }
 0x15e   : > { %814 = vrot.lane.b32.xlu1 %v5382_v48, %s5270_s27  ;;  %996 = vrot.lane.b32.xlu2 %v5382_v48, %s5271_s28 }
 0x15f   : > { %898 = vrot.lane.b32.xlu0 %v5412_v8, %s5270_s27 }
 0x166   : > { %793 = vrot.lane.b32.xlu1 %v5410_v7, %s5270_s27  ;;  %1017 = vrot.lane.b32.xlu2 %v5389_v55, %s5272_s29 }
 0x167   : > { %856 = vrot.lane.b32.xlu0 %v5396_v58, %s5270_s27 }
 0x16e   : > { %1019 = vrot.lane.b32.xlu1 %v5389_v55, %s5271_s28 }
 0x16f   : > { %877 = vrot.lane.b32.xlu0 %v5403_v1, %s5270_s27 }
 0x177   : > { %950 = vrot.lane.b32.xlu0 %v5375_v42, %s5271_s28 }
 0x17f   : > { %973 = vrot.lane.b32.xlu0 %v5410_v7, %s5271_s28 }
 0x187   : > { %994 = vrot.lane.b32.xlu0 %v5382_v48, %s5272_s29 }
 0x18f   : > { %919 = vrot.lane.b32.xlu0 %v5421_v13, %s5270_s27 }
 0x193   : > { %v478_v14 = vpop.permute.xlu0 %477 }
 0x194   : > { %v484_v15 = vsel %vm479_vm3, %v478_v14, 0 }
 0x195   : > { %493 = vmatpush.bf16.xpose.msrb.mxu2 %v484_v15 }
 0x19c   : > { %4776 = vmatmul.msk.bf16.vlgmr.msrb.gmra.mxu2 %vm479_vm3, %v5372_v40 }
 0x1a0   : > { %v599_v16 = vpop.permute.xlu2 %598 }
 0x1a1   : > { %v604_v21 = vsel %vm479_vm3, %v599_v16, 0 }
 0x1a3   : > { %v527_v17 = vpop.permute.xlu0 %526 }
 0x1a4   : > { %v532_v18 = vsel %vm479_vm3, %v527_v17, 0 }
 0x1a5   : > { %541 = vmatpush.bf16.xpose.msra.mxu2 %v532_v18 }
 0x1a8   : > { %v503_v19 = vpop.permute.xlu2 %502 }
 0x1a9   : > { %v508_v20 = vsel %vm479_vm3, %v503_v19, 0 }
 0x1aa   : > { %517 = vmatpush.bf16.xpose.msrb.mxu0 %v508_v20 }
 0x1ab   : > { %v551_v22 = vpop.permute.xlu1 %550 }
 0x1ac   : > { %4778 = vmatmul.msk.bf16.vlgmr.msra.gmra.mxu2 %vm479_vm3, %v5379_v46  ;;  %v556_v23 = vsel %vm479_vm3, %v551_v22, 0 }
 0x1ad   : > { %565 = vmatpush.bf16.xpose.msrb.mxu3 %v556_v23 }
 0x1b0   : > { %v836_v28 = vpop.permute.xlu2 %835 }
 0x1b1   : > { %4777 = vmatmul.msk.bf16.vlgmr.msrb.gmra.mxu0 %vm479_vm3, %v467_v0  ;;  %v841_v32 = vsel %vm776_vm4, %v836_v28, 0 }
 0x1b3   : > { %v575_v24 = vpop.permute.xlu1 %574 }
 0x1b4   : > { %v580_v25 = vsel %vm479_vm3, %v575_v24, 0  ;;  %4779 = vmatmul.msk.bf16.vlgmr.msrb.gmra.mxu3 %vm479_vm3, %v5386_v51 }
 0x1b5   : > { %613 = vmatpush.bf16.xpose.msra.mxu3 %v604_v21  ;;  %589 = vmatpush.bf16.xpose.msrb.mxu2 %v580_v25 }
 0x1bc   : > { %4780 = vmatmul.msk.bf16.vlgmr.msrb.gmra.mxu2 %vm479_vm3, %v5391_v56 }
 0x1c0   : > { %v623_v26 = vpop.permute.xlu0 %622 }
 0x1c1   : > { %v628_v27 = vsel %vm479_vm3, %v623_v26, 0  ;;  %v5508_v26 = vpop.permute.xlu2 %996 }
 0x1c2   : > { %637 = vmatpush.bf16.xpose.msra.mxu2 %v628_v27 }
 0x1c4   : > { %4781 = vmatmul.msk.bf16.vlgmr.msra.gmra.mxu3 %vm479_vm3, %v5398_v62 }
 0x1c8   : > { %v647_v29 = vpop.permute.xlu1 %646 }
 0x1c9   : > { %v652_v30 = vsel %vm479_vm3, %v647_v29, 0  ;;  %v772_v31 = vpop.permute.xlu0 %771 }
 0x1ca   : > { %v778_v33 = vsel %vm776_vm4, %v772_v31, 0  ;;  %661 = vmatpush.bf16.xpose.msrb.mxu3 %v652_v30  ;;  %v5510_v30 = vpop.permute.xlu2 %1017 }
 0x1cb   : > { %787 = vmatpush.bf16.msra.mxu0 %v778_v33 }
 0x1cc   : > { %4782 = vmatmul.msk.bf16.vlgmr.msra.gmra.mxu2 %vm479_vm3, %v5407_v5 }
 0x1d0   : > { %v815_v34 = vpop.permute.xlu1 %814 }
 0x1d1   : > { %v820_v35 = vsel %vm776_vm4, %v815_v34, 0  ;;  %v899_v36 = vpop.permute.xlu0 %898 }
 0x1d2   : > { %850 = vmatpush.bf16.msra.mxu3 %v841_v32  ;;  %v904_v37 = vsel %vm776_vm4, %v899_v36, 0  ;;  %829 = vmatpush.bf16.msrb.mxu2 %v820_v35 }
 0x1d4   : > { %4783 = vmatmul.msk.bf16.vlgmr.msrb.gmra.mxu3 %vm479_vm3, %v5418_v11 }
 0x1d6   : > { %913 = vmatpush.bf16.msra.mxu2 %v904_v37 }
 0x1d8   : > { %v794_v38 = vpop.permute.xlu1 %793 }
 0x1d9   : > { %v857_v39 = vpop.permute.xlu0 %856  ;;  %v799_v40 = vsel %vm776_vm4, %v794_v38, 0 }
 0x1da   : > { %v862_v41 = vsel %vm776_vm4, %v857_v39, 0  ;;  %808 = vmatpush.bf16.msrb.mxu1 %v799_v40 }
 0x1db   : > { %871 = vmatpush.bf16.msrb.mxu0 %v862_v41 }
 0x1e0   : > { %v5506_v25 = vpop.permute.xlu1 %1019 }
 0x1e1   : > { %v878_v43 = vpop.permute.xlu0 %877 }
 0x1e2   : > { %v883_v44 = vsel %vm776_vm4, %v878_v43, 0 }
 0x1e3   : > { %892 = vmatpush.bf16.msra.mxu1 %v883_v44 }
 0x1e9   : > { %v5483_v45 = vpop.permute.xlu0 %950 }
 0x1f1   : > { %v5485_v46 = vpop.permute.xlu0 %973 }
 0x1f9   : > { %v5487_v47 = vpop.permute.xlu0 %994 }
 0x201   : > { %v920_v49 = vpop.permute.xlu0 %919 }
 0x202   : > { %v925_v50 = vsel %vm776_vm4, %v920_v49, 0 }
 0x203   : > { %934 = vmatpush.bf16.msrb.mxu3 %v925_v50 }
 0x21f   : > { %v495_v51 = vpop.f32.mrf.mxu2 }
 0x220   : > { %v667_v52 = vmul.f32 0.35355338, %v495_v51 }
 0x222   : > { %v675_v53 = vsel %vm479_vm3, %v667_v52, -inf }
 0x223   : > { %676 = vmax.xlane.f32.xlu1 %v675_v53 }
 0x227   : > { %v497_v54 = vpop.f32.mrf.mxu2 }
 0x22e   : > { %v519_v56 = vpop.f32.mrf.mxu0 }
 0x22f   : > { %v668_v57 = vmul.f32 0.35355338, %v519_v56  ;;  %v543_v59 = vpop.f32.mrf.mxu2 }
 0x230   : > { %v669_v61 = vmul.f32 0.35355338, %v543_v59 }
 0x231   : > { %v678_v60 = vsel %vm479_vm3, %v668_v57, -inf }
 0x232   : > { %679 = vmax.xlane.f32.xlu2 %v678_v60  ;;  %v681_v3 = vsel %vm479_vm3, %v669_v61, -inf }
 0x236   : > { %v521_v62 = vpop.f32.mrf.mxu0 }
 0x237   : > { %v545_v63 = vpop.f32.mrf.mxu2  ;;  %v567_v0 = vpop.f32.mrf.mxu3 }
 0x238   : > { %v670_v2 = vmul.f32 0.35355338, %v567_v0 }
 0x23a   : > { %682 = vmax.xlane.f32.xlu2 %v681_v3  ;;  %v684_v4 = vsel %vm479_vm3, %v670_v2, -inf }
 0x23b   : > { %685 = vmax.xlane.f32.xlu0 %v684_v4 }
 0x23f   : > { %v569_v5 = vpop.f32.mrf.mxu3  ;;  %v591_v6 = vpop.f32.mrf.mxu2 }
 0x240   : > { %v5494_v9 = vmul.f32 0.35355338, %v591_v6 }
 0x242   : > { %v687_v10 = vsel %vm479_vm3, %v5494_v9, -inf }
 0x243   : > { %688 = vmax.xlane.f32.xlu1 %v687_v10 }
 0x247   : > { %v593_v11 = vpop.f32.mrf.mxu2  ;;  %v615_v12 = vpop.f32.mrf.mxu3 }
 0x248   : > { %v5498_v14 = vmul.f32 0.35355338, %v615_v12 }
 0x24a   : > { %v690_v15 = vsel %vm479_vm3, %v5498_v14, -inf }
 0x24b   : > { %691 = vmax.xlane.f32.xlu2 %v690_v15 }
 0x24f   : > { %v617_v16 = vpop.f32.mrf.mxu3  ;;  %v639_v17 = vpop.f32.mrf.mxu2 }
 0x250   : > { %v673_v18 = vmul.f32 0.35355338, %v639_v17 }
 0x252   : > { %v693_v19 = vsel %vm479_vm3, %v673_v18, -inf }
 0x253   : > { %694 = vmax.xlane.f32.xlu2 %v693_v19 }
 0x257   : > { %v641_v20 = vpop.f32.mrf.mxu2  ;;  %v663_v21 = vpop.f32.mrf.mxu3 }
 0x258   : > { %v674_v22 = vmul.f32 0.35355338, %v663_v21  ;;  %v956_v20 = vsel %vm479_vm3, %v5483_v45, 0  ;;  %v979_v45 = vsel %vm479_vm3, %v5485_v46, 0  ;;  %v1025_v46 = vsel %vm479_vm3, %v5506_v25, 0 }
 0x25a   : > { %v696_v23 = vsel %vm479_vm3, %v674_v22, -inf }
 0x25b   : > { %697 = vmax.xlane.f32.xlu0 %v696_v23 }
 0x25f   : > { %v665_v24 = vpop.f32.mrf.mxu3 }
 0x26f   : > { %948 = vrot.lane.b32.xlu0 %v5375_v42, %s5272_s29 }
 0x296   : > { %v677_v27 = vpop.xlane.xlu1 %676 }
 0x297   : > { %v699_v28 = vsub.f32 %v667_v52, %v677_v27 }
 0x299   : > { %v707_v29 = vmul.f32 1.442695, %v699_v28 }
 0x29b   : > { %5005 = vpow2.f32 %v707_v29 }
 0x2a1   : > { %v5512_v31 = vpop.eup %5005 }
 0x2a2   : > { %v723_v32 = vsel %vm479_vm3, %v5512_v31, 0.0 }
 0x2a3   : > { %724 = vadd.xlane.f32.xlu2 %v723_v32 }
 0x2a5   : > { %v680_v33 = vpop.xlane.xlu2 %679 }
 0x2a6   : > { %v700_v34 = vsub.f32 %v668_v57, %v680_v33 }
 0x2a8   : > { %v709_v35 = vmul.f32 1.442695, %v700_v34 }
 0x2aa   : > { %5007 = vpow2.f32 %v709_v35 }
 0x2ad   : > { %v683_v36 = vpop.xlane.xlu2 %682 }
 0x2ae   : > { %v701_v37 = vsub.f32 %v669_v61, %v683_v36  ;;  %v686_v38 = vpop.xlane.xlu0 %685  ;;  %v1002_v36 = vsel %vm479_vm3, %v5508_v26, 0 }
 0x2af   : > { %v702_v39 = vsub.f32 %v670_v2, %v686_v38 }
 0x2b0   : > { %v5516_v40 = vpop.eup %5007  ;;  %v711_v41 = vmul.f32 1.442695, %v701_v37 }
 0x2b1   : > { %v713_v43 = vmul.f32 1.442695, %v702_v39  ;;  %v726_v44 = vsel %vm479_vm3, %v5516_v40, 0.0 }
 0x2b2   : > { %5009 = vpow2.f32 %v711_v41  ;;  %727 = vadd.xlane.f32.xlu0 %v726_v44 }
 0x2b3   : > { %5011 = vpow2.f32 %v713_v43 }
 0x2b6   : > { %v689_v60 = vpop.xlane.xlu1 %688 }
 0x2b7   : > { %v703_v0 = vsub.f32 %v5494_v9, %v689_v60 }
 0x2b8   : > { %v5520_v49 = vpop.eup %5009 }
 0x2b9   : > { %v5522_v50 = vpop.eup %5011  ;;  %v729_v51 = vsel %vm479_vm3, %v5520_v49, 0.0  ;;  %v715_v3 = vmul.f32 1.442695, %v703_v0 }
 0x2ba   : > { %730 = vadd.xlane.f32.xlu0 %v729_v51  ;;  %v732_v52 = vsel %vm479_vm3, %v5522_v50, 0.0 }
 0x2bb   : > { %1088 = vrot.lane.b32.xlu2 %v5412_v8, %s5271_s28  ;;  %733 = vadd.xlane.f32.xlu1 %v732_v52 }
 0x2be   : > { %v692_v53 = vpop.xlane.xlu2 %691 }
 0x2bf   : > { %v704_v10 = vsub.f32 %v5498_v14, %v692_v53 }
 0x2c1   : > { %v717_v11 = vmul.f32 1.442695, %v704_v10 }
 0x2c6   : > { %v695_v54 = vpop.xlane.xlu2 %694 }
 0x2c7   : > { %v705_v56 = vsub.f32 %v673_v18, %v695_v54 }
 0x2c9   : > { %v719_v57 = vmul.f32 1.442695, %v705_v56 }
 0x2cb   : > { %5013 = vpow2.f32 %v719_v57 }
 0x2ce   : > { %v698_v59 = vpop.xlane.xlu0 %697 }
 0x2cf   : > { %v706_v61 = vsub.f32 %v674_v22, %v698_v59 }
 0x2d1   : > { %v5530_v62 = vpop.eup %5013  ;;  %v721_v63 = vmul.f32 1.442695, %v706_v61 }
 0x2d2   : > { %v741_v2 = vsel %vm479_vm3, %v5530_v62, 0.0 }
 0x2d3   : > { %5015 = vpow2.f32 %v721_v63  ;;  %742 = vadd.xlane.f32.xlu0 %v741_v2 }
 0x2d4   : > { %971 = vrot.lane.b32.xlu1 %v5410_v7, %s5272_s29  ;;  %5017 = vpow2.f32 %v715_v3 }
 0x2d5   : > { %5019 = vpow2.f32 %v717_v11 }
 0x2d9   : > { %v5537_v4 = vpop.eup %5015 }
 0x2da   : > { %v744_v5 = vsel %vm479_vm3, %v5537_v4, 0.0  ;;  %v5541_v6 = vpop.eup %5017 }
 0x2db   : > { %745 = vadd.xlane.f32.xlu0 %v744_v5  ;;  %v735_v9 = vsel %vm479_vm3, %v5541_v6, 0.0  ;;  %v5550_v12 = vpop.eup %5019 }
 0x2dc   : > { %v738_v15 = vsel %vm479_vm3, %v5550_v12, 0.0 }
 0x2e1   : > { %v5574_v17 = vpop.permute.xlu0 %948 }
 0x2e4   : > { %736 = vadd.xlane.f32.xlu2 %v735_v9 }
 0x2ef   : > { %1111 = vrot.lane.b32.xlu0 %v5421_v13, %s5271_s28 }
 0x2f7   : > { %1086 = vrot.lane.b32.xlu0 %v5412_v8, %s5272_s29 }
 0x2fc   : > { %1065 = vrot.lane.b32.xlu2 %v5403_v1, %s5271_s28 }
 0x2fe   : > { %739 = vadd.xlane.f32.xlu1 %v738_v15 }
 0x2ff   : > { %1063 = vrot.lane.b32.xlu0 %v5403_v1, %s5272_s29 }
 0x304   : > { %1040 = vrot.lane.b32.xlu2 %v5396_v58, %s5272_s29 }
 0x307   : > { %1236 = vrot.lane.b32.xlu0 %v5375_v42, %s5273_s10 }
 0x30c   : > { %1299 = vrot.lane.b32.xlu2 %v5389_v55, %s5273_s10 }
 0x30f   : > { %1362 = vrot.lane.b32.xlu0 %v5412_v8, %s5273_s10 }
 0x314   : > { %1320 = vrot.lane.b32.xlu2 %v5396_v58, %s5273_s10 }
 0x316   : > { %v725_v14 = vpop.xlane.xlu2 %724 }
 0x317   : > { %5021 = vrcp.f32 %v725_v14  ;;  %1042 = vrot.lane.b32.xlu1 %v5396_v58, %s5271_s28  ;;  %1341 = vrot.lane.b32.xlu0 %v5403_v1, %s5273_s10 }
 0x31c   : > { %1447 = vrot.lane.b32.xlu2 %v5375_v42, %s5274_s11 }
 0x31d   : > { %v5022_v16 = vpop.eup %5021 }
 0x31e   : > { %v755_v18 = vmul.f32 %v5022_v16, %v5512_v31  ;;  %v1089_v41 = vpop.permute.xlu2 %1088 }
 0x31f   : > { %1109 = vrot.lane.b32.xlu1 %v5421_v13, %s5272_s29  ;;  %1493 = vrot.lane.b32.xlu0 %v5382_v48, %s5274_s11  ;;  %v1094_v26 = vsel %vm479_vm3, %v1089_v41, 0 }
 0x320   : > { %v763_v19 = vpack.c.bf16 %v755_v18, %v755_v18 }
 0x322   : > { %4784 = vmatmul.msk.bf16.vlgmr.msra.gmra.mxu0 %vm479_vm3, %v763_v19 }
 0x323   : > { %965 = vmatpush.bf16.xpose.msra.mxu0 %v956_v20 }
 0x325   : > { %v728_v21 = vpop.xlane.xlu0 %727 }
 0x326   : > { %5023 = vrcp.f32 %v728_v21 }
 0x327   : > { %1278 = vrot.lane.b32.xlu1 %v5382_v48, %s5273_s10 }
 0x32c   : > { %v5024_v22 = vpop.eup %5023 }
 0x32d   : > { %v731_v23 = vpop.xlane.xlu0 %730  ;;  %v756_v24 = vmul.f32 %v5024_v22, %v5516_v40 }
 0x32e   : > { %5025 = vrcp.f32 %v731_v23  ;;  %v734_v27 = vpop.xlane.xlu1 %733 }
 0x32f   : > { %5027 = vrcp.f32 %v734_v27  ;;  %1257 = vrot.lane.b32.xlu1 %v5410_v7, %s5273_s10  ;;  %v764_v28 = vpack.c.bf16 %v756_v24, %v756_v24 }
 0x331   : > { %4785 = vmatmul.msk.bf16.vlgmr.msrb.gmra.mxu1 %vm479_vm3, %v764_v28 }
 0x332   : > { %988 = vmatpush.bf16.xpose.msrb.mxu1 %v979_v45 }
 0x334   : > { %v5026_v29 = vpop.eup %5025 }
 0x335   : > { %v5028_v31 = vpop.eup %5027  ;;  %v757_v32 = vmul.f32 %v5026_v29, %v5520_v49 }
 0x336   : > { %v758_v33 = vmul.f32 %v5028_v31, %v5522_v50 }
 0x337   : > { %v765_v34 = vpack.c.bf16 %v757_v32, %v757_v32  ;;  %1383 = vrot.lane.b32.xlu1 %v5421_v13, %s5273_s10 }
 0x338   : > { %v766_v35 = vpack.c.bf16 %v758_v33, %v758_v33 }
 0x339   : > { %4786 = vmatmul.msk.bf16.vlgmr.msrb.gmra.mxu2 %vm479_vm3, %v765_v34 }
 0x33a   : > { %1011 = vmatpush.bf16.xpose.msrb.mxu2 %v1002_v36  ;;  %4787 = vmatmul.msk.bf16.vlgmr.msra.gmra.mxu3 %vm479_vm3, %v766_v35 }
 0x33b   : > { %1034 = vmatpush.bf16.xpose.msra.mxu3 %v1025_v46 }
 0x346   : > { %v743_v37 = vpop.xlane.xlu0 %742  ;;  %v972_v60 = vpop.permute.xlu1 %971 }
 0x347   : > { %5029 = vrcp.f32 %v743_v37 }
 0x34d   : > { %v5030_v38 = vpop.eup %5029 }
 0x34e   : > { %v761_v39 = vmul.f32 %v5030_v38, %v5530_v62  ;;  %v746_v40 = vpop.xlane.xlu0 %745 }
 0x34f   : > { %5031 = vrcp.f32 %v746_v40 }
 0x350   : > { %v769_v43 = vpack.c.bf16 %v761_v39, %v761_v39 }
 0x352   : > { %4790 = vmatmul.msk.bf16.vlgmr.msra.gmra.mxu2 %vm479_vm3, %v769_v43 }
 0x353   : > { %1103 = vmatpush.bf16.xpose.msra.mxu2 %v1094_v26 }
 0x355   : > { %v5032_v44 = vpop.eup %5031 }
 0x356   : > { %v762_v25 = vmul.f32 %v5032_v44, %v5537_v4 }
 0x357   : > { %v737_v49 = vpop.xlane.xlu2 %736 }
 0x358   : > { %v770_v50 = vpack.c.bf16 %v762_v25, %v762_v25  ;;  %5033 = vrcp.f32 %v737_v49 }
 0x35a   : > { %4791 = vmatmul.msk.bf16.vlgmr.msrb.gmra.mxu3 %vm479_vm3, %v770_v50 }
 0x35e   : > { %v5034_v51 = vpop.eup %5033 }
 0x35f   : > { %v759_v52 = vmul.f32 %v5034_v51, %v5541_v6  ;;  %v1066_v53 = vpop.permute.xlu2 %1065 }
 0x360   : > { %v1071_v4 = vsel %vm479_vm3, %v1066_v53, 0 }
 0x361   : > { %v767_v54 = vpack.c.bf16 %v759_v52, %v759_v52  ;;  %v1112_v56 = vpop.permute.xlu0 %1111 }
 0x362   : > { %v1117_v57 = vsel %vm479_vm3, %v1112_v56, 0  ;;  %4794 = vmatmul.msk.bf16.vlgmr.msrb.gmra.mxu2 %vm479_vm3, %v5487_v47 }
 0x363   : > { %4788 = vmatmul.msk.bf16.vlgmr.msrb.gmra.mxu0 %vm479_vm3, %v767_v54  ;;  %1126 = vmatpush.bf16.xpose.msrb.mxu3 %v1117_v57 }
 0x367   : > { %v1041_v59 = vpop.permute.xlu2 %1040 }
 0x369   : > { %v1087_v63 = vpop.permute.xlu0 %1086 }
 0x36a   : > { %4795 = vmatmul.msk.bf16.vlgmr.msra.gmra.mxu3 %vm479_vm3, %v5510_v30 }
 0x36f   : > { %v1300_v61 = vpop.permute.xlu2 %1299 }
 0x370   : > { %v1305_v62 = vsel %vm776_vm4, %v1300_v61, 0 }
 0x371   : > { %v740_v0 = vpop.xlane.xlu1 %739  ;;  %1314 = vmatpush.bf16.msra.mxu3 %v1305_v62  ;;  %v1064_v30 = vpop.permute.xlu0 %1063 }
 0x372   : > { %5035 = vrcp.f32 %v740_v0  ;;  %4798 = vmatmul.msk.bf16.vlgmr.msra.gmra.mxu2 %vm479_vm3, %v1087_v63 }
 0x373   : > { %4792 = vmatmul.msk.bf16.vlgmr.msra.gmra.mxu0 %vm479_vm3, %v5574_v17 }
 0x377   : > { %v1321_v11 = vpop.permute.xlu2 %1320 }
 0x378   : > { %v5036_v47 = vpop.eup %5035 }
 0x379   : > { %v760_v2 = vmul.f32 %v5036_v47, %v5550_v12  ;;  %v1237_v5 = vpop.permute.xlu0 %1236  ;;  %v1326_v12 = vsel %vm776_vm4, %v1321_v11, 0 }
 0x37a   : > { %v1242_v10 = vsel %vm776_vm4, %v1237_v5, 0 }
 0x37b   : > { %v768_v3 = vpack.c.bf16 %v760_v2, %v760_v2 }
 0x37d   : > { %4789 = vmatmul.msk.bf16.vlgmr.msra.gmra.mxu1 %vm479_vm3, %v768_v3 }
 0x37e   : > { %1080 = vmatpush.bf16.xpose.msra.mxu1 %v1071_v4 }
 0x381   : > { %v1363_v14 = vpop.permute.xlu0 %1362 }
 0x382   : > { %v1368_v18 = vsel %vm776_vm4, %v1363_v14, 0 }
 0x389   : > { %v1043_v6 = vpop.permute.xlu1 %1042  ;;  %v1342_v20 = vpop.permute.xlu0 %1341 }
 0x38a   : > { %v1048_v9 = vsel %vm479_vm3, %v1043_v6, 0  ;;  %v1347_v23 = vsel %vm776_vm4, %v1342_v20, 0 }
 0x38b   : > { %1057 = vmatpush.bf16.xpose.msrb.mxu0 %v1048_v9 }
 0x38d   : > { %4793 = vmatmul.msk.bf16.vlgmr.msrb.gmra.mxu1 %vm479_vm3, %v972_v60 }
 0x391   : > { %v1110_v15 = vpop.permute.xlu1 %1109 }
 0x392   : > { %4796 = vmatmul.msk.bf16.vlgmr.msrb.gmra.mxu0 %vm479_vm3, %v1041_v59  ;;  %4799 = vmatmul.msk.bf16.vlgmr.msrb.gmra.mxu3 %vm479_vm3, %v1110_v15 }
 0x393   : > { %1251 = vmatpush.bf16.msra.mxu0 %v1242_v10 }
 0x397   : > { %1335 = vmatpush.bf16.msrb.mxu0 %v1326_v12 }
 0x399   : > { %v1279_v16 = vpop.permute.xlu1 %1278 }
 0x39a   : > { %v1284_v17 = vsel %vm776_vm4, %v1279_v16, 0 }
 0x39b   : > { %1293 = vmatpush.bf16.msrb.mxu2 %v1284_v17  ;;  %v5659_v17 = vpop.permute.xlu0 %1493 }
 0x39d   : > { %4797 = vmatmul.msk.bf16.vlgmr.msra.gmra.mxu1 %vm479_vm3, %v1064_v30 }
 0x39f   : > { %1377 = vmatpush.bf16.msra.mxu2 %v1368_v18  ;;  %v789_v19 = vpop.f32.mrf.mxu0 }
 0x3a0   : > { %940 = vst.msk [vmem:[#allocation2] sm:$0xff] %vm479_vm3, %v789_v19 }
 0x3a1   : > { %v1258_v21 = vpop.permute.xlu1 %1257 }
 0x3a2   : > { %v1263_v22 = vsel %vm776_vm4, %v1258_v21, 0 }
 0x3a3   : > { %1272 = vmatpush.bf16.msrb.mxu1 %v1263_v22 }
 0x3a7   : > { %1356 = vmatpush.bf16.msra.mxu1 %v1347_v23  ;;  %v791_v24 = vpop.f32.mrf.mxu0 }
 0x3a9   : > { %v1384_v27 = vpop.permute.xlu1 %1383 }
 0x3aa   : > { %v1389_v28 = vsel %vm776_vm4, %v1384_v27, 0 }
 0x3ab   : > { %1398 = vmatpush.bf16.msrb.mxu3 %v1389_v28  ;;  %v5665_v28 = vpop.permute.xlu2 %1447 }
 0x3ae   : > { %v810_v45 = vpop.f32.mrf.mxu1 }
 0x3af   : > { %941 = vst.msk [vmem:[#allocation2 + $0x8] sm:$0xff] %vm479_vm3, %v810_v45 }
 0x3b6   : > { %v812_v29 = vpop.f32.mrf.mxu1 }
 0x3bc   : > { %v831_v31 = vpop.f32.mrf.mxu2 }
 0x3bd   : > { %942 = vst.msk [vmem:[#allocation2 + $0x10] sm:$0xff] %vm479_vm3, %v831_v31  ;;  %v852_v32 = vpop.f32.mrf.mxu3 }
 0x3be   : > { %943 = vst.msk [vmem:[#allocation2 + $0x18] sm:$0xff] %vm479_vm3, %v852_v32 }
 0x3c4   : > { %v833_v33 = vpop.f32.mrf.mxu2 }
 0x3c5   : > { %v854_v34 = vpop.f32.mrf.mxu3 }
 0x3d5   : > { %v915_v35 = vpop.f32.mrf.mxu2 }
 0x3d6   : > { %946 = vst.msk [vmem:[#allocation2 + $0x30] sm:$0xff] %vm479_vm3, %v915_v35 }
 0x3dd   : > { %v917_v36 = vpop.f32.mrf.mxu2  ;;  %v936_v46 = vpop.f32.mrf.mxu3 }
 0x3de   : > { %947 = vst.msk [vmem:[#allocation2 + $0x38] sm:$0xff] %vm479_vm3, %v936_v46 }
 0x3e0   : > { %v873_v37 = vpop.f32.mrf.mxu0 }
 0x3e1   : > { %944 = vst.msk [vmem:[#allocation2 + $0x20] sm:$0xff] %vm479_vm3, %v873_v37 }
 0x3e5   : > { %v938_v38 = vpop.f32.mrf.mxu3  ;;  %v1013_v39 = vpop.f32.mrf.mxu2 }
 0x3e6   : > { %v1134_v2 = vmul.f32 0.35355338, %v1013_v39 }
 0x3e8   : > { %v875_v40 = vpop.f32.mrf.mxu0  ;;  %v1146_v5 = vsel %vm479_vm3, %v1134_v2, -inf }
 0x3ed   : > { %v1015_v41 = vpop.f32.mrf.mxu2  ;;  %v1036_v43 = vpop.f32.mrf.mxu3 }
 0x3ee   : > { %v1135_v9 = vmul.f32 0.35355338, %v1036_v43 }
 0x3f0   : > { %v967_v26 = vpop.f32.mrf.mxu0  ;;  %v1149_v11 = vsel %vm479_vm3, %v1135_v9, -inf }
 0x3f1   : > { %v1132_v44 = vmul.f32 0.35355338, %v967_v26 }
 0x3f3   : > { %v1140_v25 = vsel %vm479_vm3, %v1132_v44, -inf }
 0x3f4   : > { %1141 = vmax.xlane.f32.xlu0 %v1140_v25 }
 0x3f5   : > { %v1038_v49 = vpop.f32.mrf.mxu3  ;;  %v1105_v50 = vpop.f32.mrf.mxu2 }
 0x3f6   : > { %v5649_v15 = vmul.f32 0.35355338, %v1105_v50 }
 0x3f8   : > { %v969_v51 = vpop.f32.mrf.mxu0  ;;  %v1158_v14 = vsel %vm479_vm3, %v5649_v15, -inf }
 0x3fa   : > { %v894_v52 = vpop.f32.mrf.mxu1 }
 0x3fb   : > { %945 = vst.msk [vmem:[#allocation2 + $0x28] sm:$0xff] %vm479_vm3, %v894_v52 }
 0x3fd   : > { %v1107_v53 = vpop.f32.mrf.mxu2 }
 0x402   : > { %v896_v54 = vpop.f32.mrf.mxu1 }
 0x408   : > { %1470 = vrot.lane.b32.xlu0 %v5410_v7, %s5274_s11 }
 0x40a   : > { %v990_v56 = vpop.f32.mrf.mxu1 }
 0x40b   : > { %v1133_v57 = vmul.f32 0.35355338, %v990_v56 }
 0x40d   : > { %v1143_v59 = vsel %vm479_vm3, %v1133_v57, -inf }
 0x40e   : > { %1144 = vmax.xlane.f32.xlu1 %v1143_v59 }
 0x40f   : > { %v1059_v60 = vpop.f32.mrf.mxu0 }
 0x410   : > { %v1136_v61 = vmul.f32 0.35355338, %v1059_v60 }
 0x412   : > { %v992_v62 = vpop.f32.mrf.mxu1  ;;  %v1152_v0 = vsel %vm479_vm3, %v1136_v61, -inf }
 0x415   : > { %v1128_v63 = vpop.f32.mrf.mxu3 }
 0x416   : > { %1153 = vmax.xlane.f32.xlu1 %v1152_v0  ;;  %v5651_v12 = vmul.f32 0.35355338, %v1128_v63 }
 0x417   : > { %v1061_v47 = vpop.f32.mrf.mxu0 }
 0x418   : > { %v1161_v16 = vsel %vm479_vm3, %v5651_v12, -inf }
 0x41a   : > { %v1082_v3 = vpop.f32.mrf.mxu1 }
 0x41b   : > { %v1137_v4 = vmul.f32 0.35355338, %v1082_v3 }
 0x41d   : > { %v1130_v30 = vpop.f32.mrf.mxu3  ;;  %v1155_v6 = vsel %vm479_vm3, %v1137_v4, -inf }
 0x41e   : > { %1147 = vmax.xlane.f32.xlu1 %v1146_v5  ;;  %1156 = vmax.xlane.f32.xlu2 %v1155_v6  ;;  %v1453_v5 = vsel %vm479_vm3, %v5665_v28, 0 }
 0x422   : > { %v1084_v10 = vpop.f32.mrf.mxu1 }
 0x426   : > { %1150 = vmax.xlane.f32.xlu2 %v1149_v11 }
 0x42e   : > { %1159 = vmax.xlane.f32.xlu2 %v1158_v14 }
 0x432   : > { %1162 = vmax.xlane.f32.xlu0 %v1161_v16 }
 0x437   : > { %1516 = vrot.lane.b32.xlu1 %v5389_v55, %s5274_s11 }
 0x467   : > { %v1142_v18 = vpop.xlane.xlu0 %1141 }
 0x468   : > { %v1164_v19 = vsub.f32 %v1132_v44, %v1142_v18 }
 0x46a   : > { %v1172_v20 = vmul.f32 1.442695, %v1164_v19 }
 0x46c   : > { %5037 = vpow2.f32 %v1172_v20 }
 0x472   : > { %v5661_v21 = vpop.eup %5037 }
 0x473   : > { %v1188_v22 = vsel %vm479_vm3, %v5661_v21, 0.0 }
 0x474   : > { %1189 = vadd.xlane.f32.xlu2 %v1188_v22 }
 0x47a   : > { %v1471_v53 = vpop.permute.xlu0 %1470 }
 0x47b   : > { %v1476_v14 = vsel %vm479_vm3, %v1471_v53, 0 }
 0x481   : > { %v1145_v23 = vpop.xlane.xlu1 %1144 }
 0x482   : > { %v1165_v24 = vsub.f32 %v1133_v57, %v1145_v23 }
 0x484   : > { %v1174_v27 = vmul.f32 1.442695, %v1165_v24 }
 0x486   : > { %5039 = vpow2.f32 %v1174_v27 }
 0x489   : > { %v1154_v45 = vpop.xlane.xlu1 %1153 }
 0x48a   : > { %v1168_v29 = vsub.f32 %v1136_v61, %v1154_v45 }
 0x48c   : > { %v5667_v31 = vpop.eup %5039  ;;  %v1180_v32 = vmul.f32 1.442695, %v1168_v29 }
 0x48d   : > { %v1191_v33 = vsel %vm479_vm3, %v5667_v31, 0.0 }
 0x48e   : > { %5041 = vpow2.f32 %v1180_v32  ;;  %1192 = vadd.xlane.f32.xlu0 %v1191_v33 }
 0x491   : > { %v1148_v34 = vpop.xlane.xlu1 %1147  ;;  %v1157_v35 = vpop.xlane.xlu2 %1156 }
 0x492   : > { %v1166_v36 = vsub.f32 %v1134_v2, %v1148_v34  ;;  %v1169_v46 = vsub.f32 %v1137_v4, %v1157_v35 }
 0x494   : > { %v5671_v37 = vpop.eup %5041  ;;  %v1176_v38 = vmul.f32 1.442695, %v1166_v36  ;;  %v1182_v39 = vmul.f32 1.442695, %v1169_v46 }
 0x495   : > { %v1200_v40 = vsel %vm479_vm3, %v5671_v37, 0.0 }
 0x496   : > { %5043 = vpow2.f32 %v1176_v38  ;;  %1201 = vadd.xlane.f32.xlu1 %v1200_v40 }
 0x497   : > { %5045 = vpow2.f32 %v1182_v39 }
 0x499   : > { %v1151_v41 = vpop.xlane.xlu2 %1150 }
 0x49a   : > { %v1167_v43 = vsub.f32 %v1135_v9, %v1151_v41 }
 0x49c   : > { %v5675_v26 = vpop.eup %5043  ;;  %v1178_v44 = vmul.f32 1.442695, %v1167_v43 }
 0x49d   : > { %v5677_v25 = vpop.eup %5045  ;;  %v1194_v49 = vsel %vm479_vm3, %v5675_v26, 0.0 }
 0x49e   : > { %5047 = vpow2.f32 %v1178_v44  ;;  %1195 = vadd.xlane.f32.xlu0 %v1194_v49  ;;  %v1203_v50 = vsel %vm479_vm3, %v5677_v25, 0.0 }
 0x49f   : > { %1204 = vadd.xlane.f32.xlu2 %v1203_v50 }
 0x4a1   : > { %v1160_v57 = vpop.xlane.xlu2 %1159 }
 0x4a2   : > { %v1170_v59 = vsub.f32 %v5649_v15, %v1160_v57 }
 0x4a4   : > { %v5683_v51 = vpop.eup %5047  ;;  %v1184_v61 = vmul.f32 1.442695, %v1170_v59 }
 0x4a5   : > { %v1197_v52 = vsel %vm479_vm3, %v5683_v51, 0.0  ;;  %v1163_v54 = vpop.xlane.xlu0 %1162 }
 0x4a6   : > { %1198 = vadd.xlane.f32.xlu1 %v1197_v52  ;;  %v1171_v56 = vsub.f32 %v5651_v12, %v1163_v54 }
 0x4a8   : > { %v1186_v60 = vmul.f32 1.442695, %v1171_v56 }
 0x4a9   : > { %v1517_v6 = vpop.permute.xlu1 %1516 }
 0x4aa   : > { %5049 = vpow2.f32 %v1186_v60  ;;  %v1522_v36 = vsel %vm479_vm3, %v1517_v6, 0 }
 0x4ab   : > { %5051 = vpow2.f32 %v1184_v61 }
 0x4b0   : > { %v5707_v62 = vpop.eup %5049 }
 0x4b1   : > { %v1209_v63 = vsel %vm479_vm3, %v5707_v62, 0.0  ;;  %v5711_v0 = vpop.eup %5051 }
 0x4b2   : > { %1445 = vrot.lane.b32.xlu0 %v5375_v42, %s5275_s12  ;;  %v1206_v47 = vsel %vm479_vm3, %v5711_v0, 0.0 }
 0x4b7   : > { %1514 = vrot.lane.b32.xlu2 %v5389_v55, %s5275_s12 }
 0x4ba   : > { %1608 = vrot.lane.b32.xlu0 %v5421_v13, %s5274_s11 }
 0x4bf   : > { %1585 = vrot.lane.b32.xlu2 %v5412_v8, %s5274_s11  ;;  %1491 = vrot.lane.b32.xlu1 %v5382_v48, %s5275_s12 }
 0x4c7   : > { %1468 = vrot.lane.b32.xlu1 %v5410_v7, %s5275_s12 }
 0x4cf   : > { %1539 = vrot.lane.b32.xlu1 %v5396_v58, %s5274_s11 }
 0x4d7   : > { %1606 = vrot.lane.b32.xlu1 %v5421_v13, %s5275_s12 }
 0x4df   : > { %1754 = vrot.lane.b32.xlu1 %v5410_v7, %s5276_s15 }
 0x4e4   : > { %1210 = vadd.xlane.f32.xlu0 %v1209_v63 }
 0x4e7   : > { %1859 = vrot.lane.b32.xlu1 %v5412_v8, %s5276_s15  ;;  %v1190_v2 = vpop.xlane.xlu2 %1189 }
 0x4e8   : > { %1207 = vadd.xlane.f32.xlu2 %v1206_v47  ;;  %5053 = vrcp.f32 %v1190_v2 }
 0x4ee   : > { %v5054_v3 = vpop.eup %5053 }
 0x4ef   : > { %v1220_v4 = vmul.f32 %v5054_v3, %v5661_v21 }
 0x4f1   : > { %v1228_v30 = vpack.c.bf16 %v1220_v4, %v1220_v4 }
 0x4f3   : > { %4800 = vmatmul.msk.bf16.vlgmr.msra.gmra.mxu0 %vm479_vm3, %v1228_v30 }
 0x4f4   : > { %1462 = vmatpush.bf16.xpose.msra.mxu0 %v1453_v5 }
 0x4f8   : > { %1583 = vrot.lane.b32.xlu0 %v5412_v8, %s5275_s12 }
 0x500   : > { %1562 = vrot.lane.b32.xlu2 %v5403_v1, %s5274_s11  ;;  %1560 = vrot.lane.b32.xlu0 %v5403_v1, %s5275_s12 }
 0x501   : > { %v1193_v9 = vpop.xlane.xlu0 %1192 }
 0x502   : > { %5055 = vrcp.f32 %v1193_v9 }
 0x508   : > { %v5056_v10 = vpop.eup %5055  ;;  %1537 = vrot.lane.b32.xlu2 %v5396_v58, %s5275_s12  ;;  %1775 = vrot.lane.b32.xlu0 %v5382_v48, %s5276_s15 }
 0x509   : > { %v1221_v11 = vmul.f32 %v5056_v10, %v5667_v31  ;;  %v1202_v15 = vpop.xlane.xlu1 %1201  ;;  %v1499_v31 = vsel %vm479_vm3, %v5659_v17, 0 }
 0x50a   : > { %5057 = vrcp.f32 %v1202_v15 }
 0x50b   : > { %v1229_v12 = vpack.c.bf16 %v1221_v11, %v1221_v11 }
 0x50d   : > { %4801 = vmatmul.msk.bf16.vlgmr.msrb.gmra.mxu1 %vm479_vm3, %v1229_v12 }
 0x50e   : > { %1485 = vmatpush.bf16.xpose.msrb.mxu1 %v1476_v14 }
 0x510   : > { %v5058_v16 = vpop.eup %5057  ;;  %1733 = vrot.lane.b32.xlu2 %v5375_v42, %s5276_s15  ;;  %1817 = vrot.lane.b32.xlu0 %v5396_v58, %s5276_s15 }
 0x511   : > { %v1224_v18 = vmul.f32 %v5058_v16, %v5671_v37  ;;  %v1196_v19 = vpop.xlane.xlu0 %1195 }
 0x512   : > { %v1205_v20 = vpop.xlane.xlu2 %1204  ;;  %5059 = vrcp.f32 %v1196_v19 }
 0x513   : > { %v1232_v21 = vpack.c.bf16 %v1224_v18, %v1224_v18  ;;  %5061 = vrcp.f32 %v1205_v20 }
 0x515   : > { %4804 = vmatmul.msk.bf16.vlgmr.msrb.gmra.mxu0 %vm479_vm3, %v1232_v21 }
 0x518   : > { %v5060_v22 = vpop.eup %5059  ;;  %1796 = vrot.lane.b32.xlu2 %v5389_v55, %s5276_s15  ;;  %1880 = vrot.lane.b32.xlu0 %v5421_v13, %s5276_s15 }
 0x519   : > { %v5062_v23 = vpop.eup %5061  ;;  %v1222_v24 = vmul.f32 %v5060_v22, %v5675_v26  ;;  %v1199_v27 = vpop.xlane.xlu1 %1198 }
 0x51a   : > { %v1225_v28 = vmul.f32 %v5062_v23, %v5677_v25  ;;  %5063 = vrcp.f32 %v1199_v27  ;;  %v1515_v39 = vpop.permute.xlu2 %1514 }
 0x51b   : > { %v1230_v45 = vpack.c.bf16 %v1222_v24, %v1222_v24 }
 0x51c   : > { %v1233_v29 = vpack.c.bf16 %v1225_v28, %v1225_v28 }
 0x51d   : > { %4802 = vmatmul.msk.bf16.vlgmr.msrb.gmra.mxu2 %vm479_vm3, %v1230_v45 }
 0x51e   : > { %4805 = vmatmul.msk.bf16.vlgmr.msra.gmra.mxu1 %vm479_vm3, %v1233_v29  ;;  %1508 = vmatpush.bf16.xpose.msrb.mxu2 %v1499_v31 }
 0x520   : > { %v5064_v32 = vpop.eup %5063  ;;  %1838 = vrot.lane.b32.xlu2 %v5403_v1, %s5276_s15 }
 0x521   : > { %v1223_v33 = vmul.f32 %v5064_v32, %v5683_v51 }
 0x522   : > { %v1586_v41 = vpop.permute.xlu2 %1585 }
 0x523   : > { %v1231_v34 = vpack.c.bf16 %v1223_v33, %v1223_v33  ;;  %v1591_v61 = vsel %vm479_vm3, %v1586_v41, 0 }
 0x524   : > { %v1446_v35 = vpop.permute.xlu0 %1445 }
 0x525   : > { %4803 = vmatmul.msk.bf16.vlgmr.msra.gmra.mxu3 %vm479_vm3, %v1231_v34  ;;  %4808 = vmatmul.msk.bf16.vlgmr.msra.gmra.mxu0 %vm479_vm3, %v1446_v35 }
 0x526   : > { %1531 = vmatpush.bf16.xpose.msra.mxu3 %v1522_v36 }
 0x52c   : > { %v1609_v40 = vpop.permute.xlu0 %1608 }
 0x52d   : > { %v1614_v53 = vsel %vm479_vm3, %v1609_v40, 0 }
 0x531   : > { %v1492_v17 = vpop.permute.xlu1 %1491 }
 0x539   : > { %v1469_v46 = vpop.permute.xlu1 %1468 }
 0x53a   : > { %4809 = vmatmul.msk.bf16.vlgmr.msrb.gmra.mxu1 %vm479_vm3, %v1469_v46 }
 0x541   : > { %v1540_v37 = vpop.permute.xlu1 %1539 }
 0x542   : > { %v1545_v38 = vsel %vm479_vm3, %v1540_v37, 0 }
 0x543   : > { %1554 = vmatpush.bf16.xpose.msrb.mxu0 %v1545_v38 }
 0x549   : > { %v1607_v26 = vpop.permute.xlu1 %1606 }
 0x551   : > { %v1755_v52 = vpop.permute.xlu1 %1754 }
 0x552   : > { %v1760_v59 = vsel %vm776_vm4, %v1755_v52, 0 }
 0x557   : > { %v1211_v43 = vpop.xlane.xlu0 %1210 }
 0x558   : > { %5065 = vrcp.f32 %v1211_v43 }
 0x559   : > { %v1860_v12 = vpop.permute.xlu1 %1859 }
 0x55a   : > { %v1865_v16 = vsel %vm776_vm4, %v1860_v12, 0 }
 0x55b   : > { %v1208_v44 = vpop.xlane.xlu2 %1207 }
 0x55c   : > { %5067 = vrcp.f32 %v1208_v44 }
 0x55e   : > { %v5066_v25 = vpop.eup %5065 }
 0x55f   : > { %v1227_v49 = vmul.f32 %v5066_v25, %v5707_v62 }
 0x561   : > { %v1235_v50 = vpack.c.bf16 %v1227_v49, %v1227_v49 }
 0x562   : > { %v5068_v51 = vpop.eup %5067 }
 0x563   : > { %v1226_v54 = vmul.f32 %v5068_v51, %v5711_v0  ;;  %v1563_v56 = vpop.permute.xlu2 %1562  ;;  %4807 = vmatmul.msk.bf16.vlgmr.msrb.gmra.mxu3 %vm479_vm3, %v1235_v50 }
 0x564   : > { %v1568_v57 = vsel %vm479_vm3, %v1563_v56, 0  ;;  %1623 = vmatpush.bf16.xpose.msrb.mxu3 %v1614_v53 }
 0x565   : > { %v1234_v60 = vpack.c.bf16 %v1226_v54, %v1226_v54  ;;  %1577 = vmatpush.bf16.xpose.msra.mxu1 %v1568_v57 }
 0x567   : > { %4806 = vmatmul.msk.bf16.vlgmr.msra.gmra.mxu2 %vm479_vm3, %v1234_v60 }
 0x568   : > { %1600 = vmatpush.bf16.xpose.msra.mxu2 %v1591_v61 }
 0x56a   : > { %v1584_v62 = vpop.permute.xlu0 %1583 }
 0x56b   : > { %v1538_v63 = vpop.permute.xlu2 %1537 }
 0x56c   : > { %4812 = vmatmul.msk.bf16.vlgmr.msrb.gmra.mxu0 %vm479_vm3, %v1538_v63 }
 0x56d   : > { %1769 = vmatpush.bf16.msrb.mxu1 %v1760_v59 }
 0x570   : > { %v5767_v0 = vpop.f32.mrf.mxu0 }
 0x572   : > { %v1561_v47 = vpop.permute.xlu0 %1560 }
 0x573   : > { %v1734_v2 = vpop.permute.xlu2 %1733  ;;  %4811 = vmatmul.msk.bf16.vlgmr.msra.gmra.mxu3 %vm479_vm3, %v1515_v39  ;;  %4813 = vmatmul.msk.bf16.vlgmr.msra.gmra.mxu1 %vm479_vm3, %v1561_v47 }
 0x574   : > { %v1739_v3 = vsel %vm776_vm4, %v1734_v2, 0 }
 0x575   : > { %1748 = vmatpush.bf16.msra.mxu0 %v1739_v3 }
 0x577   : > { %4810 = vmatmul.msk.bf16.vlgmr.msrb.gmra.mxu2 %vm479_vm3, %v1492_v17 }
 0x578   : > { %v1255_v4 = vpop.f32.mrf.mxu0 }
 0x57a   : > { %v1776_v30 = vpop.permute.xlu0 %1775 }
 0x57b   : > { %v1797_v5 = vpop.permute.xlu2 %1796  ;;  %v1781_v6 = vsel %vm776_vm4, %v1776_v30, 0 }
 0x57c   : > { %v1802_v9 = vsel %vm776_vm4, %v1797_v5, 0  ;;  %1790 = vmatpush.bf16.msrb.mxu2 %v1781_v6 }
 0x57d   : > { %1811 = vmatpush.bf16.msra.mxu3 %v1802_v9 }
 0x582   : > { %v1818_v10 = vpop.permute.xlu0 %1817 }
 0x583   : > { %v1839_v11 = vpop.permute.xlu2 %1838  ;;  %v1823_v15 = vsel %vm776_vm4, %v1818_v10, 0  ;;  %4815 = vmatmul.msk.bf16.vlgmr.msrb.gmra.mxu3 %vm479_vm3, %v1607_v26 }
 0x584   : > { %v1844_v14 = vsel %vm776_vm4, %v1839_v11, 0  ;;  %1832 = vmatpush.bf16.msrb.mxu0 %v1823_v15 }
 0x585   : > { %1853 = vmatpush.bf16.msra.mxu1 %v1844_v14 }
 0x587   : > { %4814 = vmatmul.msk.bf16.vlgmr.msra.gmra.mxu2 %vm479_vm3, %v1584_v62 }
 0x588   : > { %1874 = vmatpush.bf16.msra.mxu2 %v1865_v16 }
 0x58a   : > { %v5780_v18 = vpop.f32.mrf.mxu1  ;;  %v1881_v19 = vpop.permute.xlu0 %1880 }
 0x58b   : > { %v1886_v20 = vsel %vm776_vm4, %v1881_v19, 0 }
 0x58c   : > { %1895 = vmatpush.bf16.msrb.mxu3 %v1886_v20 }
 0x592   : > { %v1276_v21 = vpop.f32.mrf.mxu1  ;;  %v5783_v22 = vpop.f32.mrf.mxu0 }
 0x59a   : > { %v1339_v23 = vpop.f32.mrf.mxu0 }
 0x59b   : > { %v5785_v24 = vpop.f32.mrf.mxu1 }
 0x5a0   : > { %v5787_v27 = vpop.f32.mrf.mxu2 }
 0x5a2   : > { %v1464_v28 = vpop.f32.mrf.mxu0 }
 0x5a3   : > { %v1360_v45 = vpop.f32.mrf.mxu1  ;;  %v1629_v29 = vmul.f32 0.35355338, %v1464_v28 }
 0x5a5   : > { %v1637_v31 = vsel %vm479_vm3, %v1629_v29, -inf }
 0x5a6   : > { %1638 = vmax.xlane.f32.xlu1 %v1637_v31 }
 0x5a8   : > { %v1297_v32 = vpop.f32.mrf.mxu2  ;;  %v5790_v33 = vpop.f32.mrf.mxu3 }
 0x5aa   : > { %v1466_v34 = vpop.f32.mrf.mxu0 }
 0x5b0   : > { %v1318_v35 = vpop.f32.mrf.mxu3 }
 0x5b7   : > { %v1487_v36 = vpop.f32.mrf.mxu1 }
 0x5b8   : > { %v1630_v17 = vmul.f32 0.35355338, %v1487_v36 }
 0x5ba   : > { %v1640_v46 = vsel %vm479_vm3, %v1630_v17, -inf }
 0x5bb   : > { %1641 = vmax.xlane.f32.xlu2 %v1640_v46 }
 0x5bf   : > { %v1489_v37 = vpop.f32.mrf.mxu1 }
 0x5d3   : > { %1967 = vrot.lane.b32.xlu2 %v5410_v7, %s5277_s16 }
 0x5e6   : > { %v5795_v38 = vpop.f32.mrf.mxu3 }
 0x5e9   : > { %v1556_v39 = vpop.f32.mrf.mxu0 }
 0x5ea   : > { %v1633_v40 = vmul.f32 0.35355338, %v1556_v39  ;;  %v5797_v41 = vpop.f32.mrf.mxu2 }
 0x5ec   : > { %v1649_v43 = vsel %vm479_vm3, %v1633_v40, -inf }
 0x5ed   : > { %1650 = vmax.xlane.f32.xlu1 %v1649_v43 }
 0x5ee   : > { %v1402_v26 = vpop.f32.mrf.mxu3 }
 0x5f0   : > { %v1579_v44 = vpop.f32.mrf.mxu1 }
 0x5f1   : > { %v1558_v25 = vpop.f32.mrf.mxu0  ;;  %v1634_v49 = vmul.f32 0.35355338, %v1579_v44 }
 0x5f2   : > { %v1381_v50 = vpop.f32.mrf.mxu2 }
 0x5f3   : > { %v1652_v51 = vsel %vm479_vm3, %v1634_v49, -inf }
 0x5f4   : > { %1653 = vmax.xlane.f32.xlu0 %v1652_v51 }
 0x5f6   : > { %v1533_v52 = vpop.f32.mrf.mxu3 }
 0x5f7   : > { %v1632_v53 = vmul.f32 0.35355338, %v1533_v52 }
 0x5f8   : > { %v1581_v54 = vpop.f32.mrf.mxu1 }
 0x5f9   : > { %v1646_v59 = vsel %vm479_vm3, %v1632_v53, -inf }
 0x5fa   : > { %v1510_v56 = vpop.f32.mrf.mxu2 }
 0x5fb   : > { %v1631_v57 = vmul.f32 0.35355338, %v1510_v56 }
 0x5fc   : > { %1647 = vmax.xlane.f32.xlu2 %v1646_v59 }
 0x5fd   : > { %v1643_v60 = vsel %vm479_vm3, %v1631_v57, -inf }
 0x5fe   : > { %1644 = vmax.xlane.f32.xlu0 %v1643_v60  ;;  %v1535_v61 = vpop.f32.mrf.mxu3 }
 0x602   : > { %v1512_v62 = vpop.f32.mrf.mxu2 }
 0x606   : > { %v1625_v63 = vpop.f32.mrf.mxu3 }
 0x607   : > { %v1636_v47 = vmul.f32 0.35355338, %v1625_v63 }
 0x609   : > { %v1658_v2 = vsel %vm479_vm3, %v1636_v47, -inf }
 0x60a   : > { %v1602_v3 = vpop.f32.mrf.mxu2  ;;  %1659 = vmax.xlane.f32.xlu1 %v1658_v2 }
 0x60b   : > { %v1635_v4 = vmul.f32 0.35355338, %v1602_v3 }
 0x60d   : > { %v1655_v30 = vsel %vm479_vm3, %v1635_v4, -inf }
 0x60e   : > { %1656 = vmax.xlane.f32.xlu2 %v1655_v30  ;;  %v1627_v5 = vpop.f32.mrf.mxu3 }
 0x612   : > { %v1604_v6 = vpop.f32.mrf.mxu2  ;;  %1944 = vrot.lane.b32.xlu0 %v5375_v42, %s5277_s16 }
 0x619   : > { %v1639_v9 = vpop.xlane.xlu1 %1638 }
 0x61a   : > { %v1661_v10 = vsub.f32 %v1629_v29, %v1639_v9 }
 0x61c   : > { %v1669_v11 = vmul.f32 1.442695, %v1661_v10 }
 0x61e   : > { %5069 = vpow2.f32 %v1669_v11 }
 0x623   : > { %1990 = vrot.lane.b32.xlu1 %v5382_v48, %s5277_s16 }
 0x624   : > { %v5809_v16 = vpop.eup %5069 }
 0x625   : > { %v1685_v21 = vsel %vm479_vm3, %v5809_v16, 0.0 }
 0x62e   : > { %v1642_v15 = vpop.xlane.xlu2 %1641 }
 0x62f   : > { %v1662_v12 = vsub.f32 %v1630_v17, %v1642_v15 }
 0x631   : > { %v1671_v14 = vmul.f32 1.442695, %v1662_v12 }
 0x633   : > { %5071 = vpow2.f32 %v1671_v14 }
 0x636   : > { %v1968_v29 = vpop.permute.xlu2 %1967 }
 0x637   : > { %v1973_v11 = vsel %vm479_vm3, %v1968_v29, 0 }
 0x639   : > { %v5811_v19 = vpop.eup %5071 }
 0x63a   : > { %v1688_v20 = vsel %vm479_vm3, %v5811_v19, 0.0 }
 0x63b   : > { %1689 = vadd.xlane.f32.xlu2 %v1688_v20 }
 0x63c   : > { %1686 = vadd.xlane.f32.xlu0 %v1685_v21 }
 0x653   : > { %1942 = vrot.lane.b32.xlu2 %v5375_v42, %s5278_s17 }
 0x660   : > { %v1651_v23 = vpop.xlane.xlu1 %1650 }
 0x661   : > { %v1665_v28 = vsub.f32 %v1633_v40, %v1651_v23 }
 0x663   : > { %v1677_v45 = vmul.f32 1.442695, %v1665_v28 }
 0x665   : > { %5073 = vpow2.f32 %v1677_v45 }
 0x667   : > { %v1654_v31 = vpop.xlane.xlu0 %1653 }
 0x668   : > { %v1666_v32 = vsub.f32 %v1634_v49, %v1654_v31 }
 0x66a   : > { %v1679_v34 = vmul.f32 1.442695, %v1666_v32 }
 0x66b   : > { %v5819_v35 = vpop.eup %5073 }
 0x66c   : > { %5075 = vpow2.f32 %v1679_v34  ;;  %v1697_v36 = vsel %vm479_vm3, %v5819_v35, 0.0 }
 0x66d   : > { %1698 = vadd.xlane.f32.xlu1 %v1697_v36 }
 0x66f   : > { %v1648_v17 = vpop.xlane.xlu2 %1647 }
 0x670   : > { %v1664_v46 = vsub.f32 %v1632_v53, %v1648_v17 }
 0x671   : > { %v1645_v37 = vpop.xlane.xlu0 %1644 }
 0x672   : > { %v5823_v39 = vpop.eup %5075  ;;  %v1675_v43 = vmul.f32 1.442695, %v1664_v46  ;;  %v1663_v40 = vsub.f32 %v1631_v57, %v1645_v37 }
 0x673   : > { %v1700_v26 = vsel %vm479_vm3, %v5823_v39, 0.0 }
 0x674   : > { %5077 = vpow2.f32 %v1675_v43  ;;  %v1673_v44 = vmul.f32 1.442695, %v1663_v40  ;;  %1701 = vadd.xlane.f32.xlu0 %v1700_v26 }
 0x676   : > { %5079 = vpow2.f32 %v1673_v44 }
 0x67a   : > { %v5827_v25 = vpop.eup %5077 }
 0x67b   : > { %v1694_v49 = vsel %vm479_vm3, %v5827_v25, 0.0 }
 0x67c   : > { %v5831_v50 = vpop.eup %5079  ;;  %1695 = vadd.xlane.f32.xlu0 %v1694_v49 }
 0x67d   : > { %v1660_v51 = vpop.xlane.xlu1 %1659  ;;  %v1691_v52 = vsel %vm479_vm3, %v5831_v50, 0.0 }
 0x67e   : > { %v1668_v53 = vsub.f32 %v1636_v47, %v1660_v51  ;;  %1692 = vadd.xlane.f32.xlu1 %v1691_v52 }
 0x680   : > { %v1683_v54 = vmul.f32 1.442695, %v1668_v53 }
 0x681   : > { %v1657_v56 = vpop.xlane.xlu2 %1656 }
 0x682   : > { %5081 = vpow2.f32 %v1683_v54  ;;  %v1667_v57 = vsub.f32 %v1635_v4, %v1657_v56 }
 0x684   : > { %v1681_v59 = vmul.f32 1.442695, %v1667_v57  ;;  %v1945_v47 = vpop.permute.xlu0 %1944 }
 0x685   : > { %v1950_v15 = vsel %vm479_vm3, %v1945_v47, 0 }
 0x686   : > { %5083 = vpow2.f32 %v1681_v59 }
 0x688   : > { %v5835_v60 = vpop.eup %5081 }
 0x689   : > { %v1706_v61 = vsel %vm479_vm3, %v5835_v60, 0.0 }
 0x68a   : > { %1707 = vadd.xlane.f32.xlu1 %v1706_v61 }
 0x68c   : > { %v5839_v62 = vpop.eup %5083 }
 0x68d   : > { %v1703_v63 = vsel %vm479_vm3, %v5839_v62, 0.0 }
 0x68e   : > { %1704 = vadd.xlane.f32.xlu2 %v1703_v63 }
 0x690   : > { %2013 = vrot.lane.b32.xlu0 %v5389_v55, %s5277_s16 }
 0x695   : > { %v1991_v12 = vpop.permute.xlu1 %1990 }
 0x696   : > { %v1996_v37 = vsel %vm479_vm3, %v1991_v12, 0 }
 0x698   : > { %1988 = vrot.lane.b32.xlu0 %v5382_v48, %s5278_s17 }
 0x6a0   : > { %2059 = vrot.lane.b32.xlu0 %v5403_v1, %s5277_s16 }
 0x6a3   : > { %1965 = vrot.lane.b32.xlu1 %v5410_v7, %s5278_s17 }
 0x6a6   : > { %2011 = vrot.lane.b32.xlu2 %v5389_v55, %s5278_s17 }
 0x6a8   : > { %2034 = vrot.lane.b32.xlu0 %v5396_v58, %s5278_s17 }
 0x6ab   : > { %2036 = vrot.lane.b32.xlu1 %v5396_v58, %s5277_s16 }
 0x6ae   : > { %2082 = vrot.lane.b32.xlu2 %v5412_v8, %s5277_s16  ;;  %v1690_v2 = vpop.xlane.xlu2 %1689 }
 0x6af   : > { %5085 = vrcp.f32 %v1690_v2  ;;  %v1687_v3 = vpop.xlane.xlu0 %1686 }
 0x6b0   : > { %5087 = vrcp.f32 %v1687_v3  ;;  %2103 = vrot.lane.b32.xlu0 %v5421_v13, %s5278_s17 }
 0x6b3   : > { %2105 = vrot.lane.b32.xlu1 %v5421_v13, %s5277_s16 }
 0x6b5   : > { %v5086_v4 = vpop.eup %5085 }
 0x6b6   : > { %v5088_v30 = vpop.eup %5087  ;;  %v1718_v5 = vmul.f32 %v5086_v4, %v5811_v19  ;;  %2057 = vrot.lane.b32.xlu2 %v5403_v1, %s5278_s17  ;;  %v1943_v36 = vpop.permute.xlu2 %1942 }
 0x6b7   : > { %v1717_v6 = vmul.f32 %v5088_v30, %v5809_v16 }
 0x6b8   : > { %v1726_v9 = vpack.c.bf16 %v1718_v5, %v1718_v5 }
 0x6b9   : > { %v1725_v10 = vpack.c.bf16 %v1717_v6, %v1717_v6 }
 0x6ba   : > { %4817 = vmatmul.msk.bf16.vlgmr.msrb.gmra.mxu1 %vm479_vm3, %v1726_v9 }
 0x6bb   : > { %4816 = vmatmul.msk.bf16.vlgmr.msra.gmra.mxu0 %vm479_vm3, %v1725_v10  ;;  %1982 = vmatpush.bf16.xpose.msrb.mxu1 %v1973_v11 }
 0x6bc   : > { %1959 = vmatpush.bf16.xpose.msra.mxu0 %v1950_v15  ;;  %2080 = vrot.lane.b32.xlu1 %v5412_v8, %s5278_s17 }
 0x6c4   : > { %2230 = vrot.lane.b32.xlu1 %v5375_v42, %s5279_s18 }
 0x6e0   : > { %v1699_v14 = vpop.xlane.xlu1 %1698 }
 0x6e1   : > { %5089 = vrcp.f32 %v1699_v14 }
 0x6e7   : > { %v5090_v16 = vpop.eup %5089  ;;  %v1702_v19 = vpop.xlane.xlu0 %1701 }
 0x6e8   : > { %v1721_v20 = vmul.f32 %v5090_v16, %v5819_v35  ;;  %5091 = vrcp.f32 %v1702_v19 }
 0x6ea   : > { %v1729_v21 = vpack.c.bf16 %v1721_v20, %v1721_v20 }
 0x6ec   : > { %4820 = vmatmul.msk.bf16.vlgmr.msrb.gmra.mxu0 %vm479_vm3, %v1729_v21 }
 0x6ee   : > { %v5092_v23 = vpop.eup %5091 }
 0x6ef   : > { %v1722_v28 = vmul.f32 %v5092_v23, %v5823_v39  ;;  %v1696_v45 = vpop.xlane.xlu0 %1695 }
 0x6f0   : > { %5093 = vrcp.f32 %v1696_v45 }
 0x6f1   : > { %v1730_v29 = vpack.c.bf16 %v1722_v28, %v1722_v28  ;;  %v1693_v31 = vpop.xlane.xlu1 %1692 }
 0x6f2   : > { %5095 = vrcp.f32 %v1693_v31 }
 0x6f3   : > { %4821 = vmatmul.msk.bf16.vlgmr.msra.gmra.mxu1 %vm479_vm3, %v1730_v29 }
 0x6f6   : > { %v5094_v42 = vpop.eup %5093 }
 0x6f7   : > { %v1720_v32 = vmul.f32 %v5094_v42, %v5827_v25 }
 0x6f8   : > { %v5096_v34 = vpop.eup %5095 }
 0x6f9   : > { %v1728_v35 = vpack.c.bf16 %v1720_v32, %v1720_v32  ;;  %v1719_v17 = vmul.f32 %v5096_v34, %v5831_v50 }
 0x6fb   : > { %v1727_v46 = vpack.c.bf16 %v1719_v17, %v1719_v17  ;;  %4819 = vmatmul.msk.bf16.vlgmr.msra.gmra.mxu3 %vm479_vm3, %v1728_v35 }
 0x6fc   : > { %4824 = vmatmul.msk.bf16.vlgmr.msra.gmra.mxu0 %vm479_vm3, %v1943_v36 }
 0x6fd   : > { %4818 = vmatmul.msk.bf16.vlgmr.msrb.gmra.mxu2 %vm479_vm3, %v1727_v46  ;;  %v1708_v39 = vpop.xlane.xlu1 %1707 }
 0x6fe   : > { %2005 = vmatpush.bf16.xpose.msrb.mxu2 %v1996_v37  ;;  %5097 = vrcp.f32 %v1708_v39 }
 0x701   : > { %v1705_v43 = vpop.xlane.xlu2 %1704 }
 0x702   : > { %5099 = vrcp.f32 %v1705_v43  ;;  %v2014_v40 = vpop.permute.xlu0 %2013 }
 0x703   : > { %v2019_v26 = vsel %vm479_vm3, %v2014_v40, 0 }
 0x704   : > { %v5098_v44 = vpop.eup %5097  ;;  %2028 = vmatpush.bf16.xpose.msra.mxu3 %v2019_v26 }
 0x705   : > { %v1724_v25 = vmul.f32 %v5098_v44, %v5835_v60 }
 0x707   : > { %v1732_v50 = vpack.c.bf16 %v1724_v25, %v1724_v25 }
 0x708   : > { %v5100_v49 = vpop.eup %5099 }
 0x709   : > { %v1723_v51 = vmul.f32 %v5100_v49, %v5839_v62  ;;  %v2012_v52 = vpop.permute.xlu2 %2011 }
 0x70a   : > { %v1989_v53 = vpop.permute.xlu0 %1988 }
 0x70b   : > { %v1731_v54 = vpack.c.bf16 %v1723_v51, %v1723_v51  ;;  %4823 = vmatmul.msk.bf16.vlgmr.msrb.gmra.mxu3 %vm479_vm3, %v1732_v50 }
 0x70d   : > { %4822 = vmatmul.msk.bf16.vlgmr.msra.gmra.mxu2 %vm479_vm3, %v1731_v54 }
 0x711   : > { %v2083_v56 = vpop.permute.xlu2 %2082 }
 0x712   : > { %v2088_v57 = vsel %vm479_vm3, %v2083_v56, 0  ;;  %v2060_v59 = vpop.permute.xlu0 %2059 }
 0x713   : > { %2097 = vmatpush.bf16.xpose.msra.mxu2 %v2088_v57  ;;  %v2065_v61 = vsel %vm479_vm3, %v2060_v59, 0 }
 0x714   : > { %2074 = vmatpush.bf16.xpose.msra.mxu1 %v2065_v61 }
 0x715   : > { %v1966_v60 = vpop.permute.xlu1 %1965 }
 0x716   : > { %4825 = vmatmul.msk.bf16.vlgmr.msrb.gmra.mxu1 %vm479_vm3, %v1966_v60 }
 0x719   : > { %v2058_v2 = vpop.permute.xlu2 %2057 }
 0x71a   : > { %v2035_v47 = vpop.permute.xlu0 %2034 }
 0x71b   : > { %4827 = vmatmul.msk.bf16.vlgmr.msra.gmra.mxu3 %vm479_vm3, %v2012_v52 }
 0x71d   : > { %4826 = vmatmul.msk.bf16.vlgmr.msrb.gmra.mxu2 %vm479_vm3, %v1989_v53  ;;  %v2037_v62 = vpop.permute.xlu1 %2036 }
 0x71e   : > { %v2042_v63 = vsel %vm479_vm3, %v2037_v62, 0 }
 0x71f   : > { %2051 = vmatpush.bf16.xpose.msrb.mxu0 %v2042_v63 }
 0x722   : > { %v2104_v30 = vpop.permute.xlu0 %2103 }
 0x725   : > { %v2106_v3 = vpop.permute.xlu1 %2105 }
 0x726   : > { %v2111_v4 = vsel %vm479_vm3, %v2106_v3, 0  ;;  %4828 = vmatmul.msk.bf16.vlgmr.msrb.gmra.mxu0 %vm479_vm3, %v2035_v47  ;;  %4829 = vmatmul.msk.bf16.vlgmr.msra.gmra.mxu1 %vm479_vm3, %v2058_v2 }
 0x727   : > { %2120 = vmatpush.bf16.xpose.msrb.mxu3 %v2111_v4 }
 0x72e   : > { %v2081_v5 = vpop.permute.xlu1 %2080  ;;  %4831 = vmatmul.msk.bf16.vlgmr.msrb.gmra.mxu3 %vm479_vm3, %v2104_v30 }
 0x72f   : > { %4830 = vmatmul.msk.bf16.vlgmr.msra.gmra.mxu2 %vm479_vm3, %v2081_v5 }
 0x736   : > { %v2231_v6 = vpop.permute.xlu1 %2230 }
 0x737   : > { %v2236_v9 = vsel %vm776_vm4, %v2231_v6, 0  ;;  %v5902_v10 = vpop.f32.mrf.mxu1 }
 0x738   : > { %v5904_v11 = vpop.f32.mrf.mxu0  ;;  %2245 = vmatpush.bf16.msra.mxu0 %v2236_v9 }
 0x73f   : > { %v1773_v15 = vpop.f32.mrf.mxu1 }
 0x740   : > { %v1752_v12 = vpop.f32.mrf.mxu0 }
 0x769   : > { %v5906_v14 = vpop.f32.mrf.mxu0 }
 0x770   : > { %v5908_v16 = vpop.f32.mrf.mxu1 }
 0x771   : > { %v1836_v19 = vpop.f32.mrf.mxu0 }
 0x778   : > { %v1857_v20 = vpop.f32.mrf.mxu1 }
 0x779   : > { %v1961_v21 = vpop.f32.mrf.mxu0 }
 0x77a   : > { %v2126_v23 = vmul.f32 0.35355338, %v1961_v21 }
 0x77c   : > { %v2134_v28 = vsel %vm479_vm3, %v2126_v23, -inf }
 0x77d   : > { %2135 = vmax.xlane.f32.xlu2 %v2134_v28 }
 0x77e   : > { %v5911_v45 = vpop.f32.mrf.mxu3 }
 0x780   : > { %v5913_v29 = vpop.f32.mrf.mxu2 }
 0x781   : > { %v1963_v31 = vpop.f32.mrf.mxu0 }
 0x786   : > { %v1815_v42 = vpop.f32.mrf.mxu3 }
 0x788   : > { %v1794_v32 = vpop.f32.mrf.mxu2 }
 0x78e   : > { %v5915_v34 = vpop.f32.mrf.mxu3 }
 0x790   : > { %v5917_v36 = vpop.f32.mrf.mxu2 }
 0x793   : > { %v1984_v35 = vpop.f32.mrf.mxu1 }
 0x794   : > { %v2127_v17 = vmul.f32 0.35355338, %v1984_v35 }
 0x796   : > { %v1899_v46 = vpop.f32.mrf.mxu3  ;;  %v2137_v37 = vsel %vm479_vm3, %v2127_v17, -inf }
 0x797   : > { %2138 = vmax.xlane.f32.xlu1 %v2137_v37 }
 0x798   : > { %v1878_v39 = vpop.f32.mrf.mxu2 }
 0x79b   : > { %v1986_v43 = vpop.f32.mrf.mxu1 }
 0x79e   : > { %v2030_v40 = vpop.f32.mrf.mxu3 }
 0x79f   : > { %v2129_v59 = vmul.f32 0.35355338, %v2030_v40 }
 0x7a0   : > { %v2007_v26 = vpop.f32.mrf.mxu2 }
 0x7a1   : > { %v2128_v44 = vmul.f32 0.35355338, %v2007_v26  ;;  %v2143_v62 = vsel %vm479_vm3, %v2129_v59, -inf }
 0x7a3   : > { %v2140_v25 = vsel %vm479_vm3, %v2128_v44, -inf  ;;  %v2053_v49 = vpop.f32.mrf.mxu0  ;;  %v2076_v50 = vpop.f32.mrf.mxu1 }
 0x7a4   : > { %2141 = vmax.xlane.f32.xlu0 %v2140_v25  ;;  %v2130_v51 = vmul.f32 0.35355338, %v2053_v49  ;;  %v2131_v52 = vmul.f32 0.35355338, %v2076_v50 }
 0x7a6   : > { %v2032_v53 = vpop.f32.mrf.mxu3  ;;  %v2149_v54 = vsel %vm479_vm3, %v2131_v52, -inf  ;;  %v2146_v56 = vsel %vm479_vm3, %v2130_v51, -inf }
 0x7a7   : > { %2150 = vmax.xlane.f32.xlu2 %v2149_v54  ;;  %2147 = vmax.xlane.f32.xlu1 %v2146_v56 }
 0x7a8   : > { %v2009_v57 = vpop.f32.mrf.mxu2 }
 0x7ab   : > { %v2055_v61 = vpop.f32.mrf.mxu0  ;;  %v2078_v60 = vpop.f32.mrf.mxu1 }
 0x7af   : > { %2144 = vmax.xlane.f32.xlu2 %v2143_v62 }
 0x7b1   : > { %v2122_v63 = vpop.f32.mrf.mxu3 }
 0x7b2   : > { %v2099_v47 = vpop.f32.mrf.mxu2  ;;  %v2133_v2 = vmul.f32 0.35355338, %v2122_v63 }
 0x7b3   : > { %v5931_v5 = vmul.f32 0.35355338, %v2099_v47 }
 0x7b4   : > { %v2155_v3 = vsel %vm479_vm3, %v2133_v2, -inf }
 0x7b5   : > { %2156 = vmax.xlane.f32.xlu1 %v2155_v3  ;;  %v2152_v6 = vsel %vm479_vm3, %v5931_v5, -inf }
 0x7b8   : > { %2272 = vrot.lane.b32.xlu0 %v5382_v48, %s5279_s18 }
 0x7b9   : > { %v2124_v4 = vpop.f32.mrf.mxu3 }
 0x7ba   : > { %v2101_v30 = vpop.f32.mrf.mxu2 }
 0x7c7   : > { %2251 = vrot.lane.b32.xlu2 %v5410_v7, %s5279_s18 }
 0x7ce   : > { %2293 = vrot.lane.b32.xlu1 %v5389_v55, %s5279_s18 }
 0x7e2   : > { %2153 = vmax.xlane.f32.xlu0 %v2152_v6 }
 0x7f0   : > { %v2136_v9 = vpop.xlane.xlu2 %2135 }
 0x7f1   : > { %v2158_v15 = vsub.f32 %v2126_v23, %v2136_v9 }
 0x7f3   : > { %v2166_v12 = vmul.f32 1.442695, %v2158_v15 }
 0x7f5   : > { %5101 = vpow2.f32 %v2166_v12 }
 0x7f6   : > { %2314 = vrot.lane.b32.xlu0 %v5396_v58, %s5279_s18 }
 0x7fb   : > { %v5937_v48 = vpop.eup %5101 }
 0x7fc   : > { %v2182_v7 = vsel %vm479_vm3, %v5937_v48, 0.0 }
 0x7fd   : > { %2183 = vadd.xlane.f32.xlu2 %v2182_v7 }
 0x80a   : > { %v2139_v55 = vpop.xlane.xlu1 %2138 }
 0x80b   : > { %v2159_v19 = vsub.f32 %v2127_v17, %v2139_v55 }
 0x80d   : > { %v2168_v20 = vmul.f32 1.442695, %v2159_v19 }
 0x80f   : > { %5103 = vpow2.f32 %v2168_v20 }
 0x815   : > { %v5941_v46 = vpop.eup %5103 }
 0x816   : > { %v2185_v39 = vsel %vm479_vm3, %v5941_v46, 0.0 }
 0x817   : > { %v2142_v21 = vpop.xlane.xlu0 %2141 }
 0x818   : > { %v2160_v28 = vsub.f32 %v2128_v44, %v2142_v21 }
 0x81a   : > { %v2170_v31 = vmul.f32 1.442695, %v2160_v28  ;;  %v2151_v42 = vpop.xlane.xlu2 %2150  ;;  %v2148_v23 = vpop.xlane.xlu1 %2147 }
 0x81b   : > { %v2163_v32 = vsub.f32 %v2131_v52, %v2151_v42  ;;  %v2162_v35 = vsub.f32 %v2130_v51, %v2148_v23 }
 0x81c   : > { %5105 = vpow2.f32 %v2170_v31 }
 0x81d   : > { %v2176_v58 = vmul.f32 1.442695, %v2163_v32  ;;  %v2174_v37 = vmul.f32 1.442695, %v2162_v35 }
 0x81f   : > { %5107 = vpow2.f32 %v2176_v58 }
 0x820   : > { %5109 = vpow2.f32 %v2174_v37  ;;  %2186 = vadd.xlane.f32.xlu0 %v2185_v39 }
 0x822   : > { %v2145_v17 = vpop.xlane.xlu2 %2144  ;;  %v5945_v40 = vpop.eup %5105 }
 0x823   : > { %v2161_v43 = vsub.f32 %v2129_v59, %v2145_v17  ;;  %v2188_v51 = vsel %vm479_vm3, %v5945_v40, 0.0 }
 0x825   : > { %v5947_v26 = vpop.eup %5107  ;;  %v2172_v44 = vmul.f32 1.442695, %v2161_v43 }
 0x826   : > { %v5949_v25 = vpop.eup %5109  ;;  %v2197_v49 = vsel %vm479_vm3, %v5947_v26, 0.0 }
 0x827   : > { %5111 = vpow2.f32 %v2172_v44  ;;  %v2194_v50 = vsel %vm479_vm3, %v5949_v25, 0.0  ;;  %2198 = vadd.xlane.f32.xlu1 %v2197_v49 }
 0x828   : > { %2195 = vadd.xlane.f32.xlu2 %v2194_v50  ;;  %2189 = vadd.xlane.f32.xlu0 %v2188_v51  ;;  %v2157_v52 = vpop.xlane.xlu1 %2156 }
 0x829   : > { %v2165_v53 = vsub.f32 %v2133_v2, %v2157_v52 }
 0x82a   : > { %v2273_v54 = vpop.permute.xlu0 %2272  ;;  %v2252_v56 = vpop.permute.xlu2 %2251 }
 0x82b   : > { %v2180_v57 = vmul.f32 1.442695, %v2165_v53  ;;  %v2278_v59 = vsel %vm776_vm4, %v2273_v54, 0  ;;  %v2257_v61 = vsel %vm776_vm4, %v2252_v56, 0 }
 0x82c   : > { %2287 = vmatpush.bf16.msrb.mxu2 %v2278_v59  ;;  %2266 = vmatpush.bf16.msrb.mxu1 %v2257_v61 }
 0x82d   : > { %v5112_v60 = vpop.eup %5111  ;;  %5113 = vpow2.f32 %v2180_v57 }
 0x82e   : > { %v2191_v62 = vsel %vm479_vm3, %v5112_v60, 0.0 }
 0x830   : > { %2192 = vadd.xlane.f32.xlu0 %v2191_v62 }
 0x833   : > { %v5960_v63 = vpop.eup %5113 }
 0x834   : > { %v2203_v47 = vsel %vm479_vm3, %v5960_v63, 0.0 }
 0x835   : > { %2204 = vadd.xlane.f32.xlu2 %v2203_v47 }
 0x840   : > { %2356 = vrot.lane.b32.xlu1 %v5412_v8, %s5279_s18  ;;  %v2294_v2 = vpop.permute.xlu1 %2293 }
 0x841   : > { %v2299_v3 = vsel %vm776_vm4, %v2294_v2, 0 }
 0x842   : > { %2308 = vmatpush.bf16.msra.mxu3 %v2299_v3 }
 0x844   : > { %2335 = vrot.lane.b32.xlu0 %v5403_v1, %s5279_s18 }
 0x848   : > { %1414 = vrot.lane.b32.xlu1 %v5780_v18, %s5280_s19 }
 0x84d   : > { %2377 = vrot.lane.b32.xlu2 %v5421_v13, %s5279_s18 }
 0x850   : > { %1911 = vrot.lane.b32.xlu1 %v5902_v10, %s5281_s20 }
 0x855   : > { %1909 = vrot.lane.b32.xlu2 %v5904_v11, %s5281_s20  ;;  %v2154_v8 = vpop.xlane.xlu0 %2153 }
 0x856   : > { %v2164_v4 = vsub.f32 %v5931_v5, %v2154_v8 }
 0x858   : > { %v2178_v30 = vmul.f32 1.442695, %v2164_v4 }
 0x85a   : > { %5115 = vpow2.f32 %v2178_v30 }
 0x860   : > { %v5979_v9 = vpop.eup %5115 }
 0x861   : > { %v2200_v13 = vsel %vm479_vm3, %v5979_v9, 0.0 }
 0x868   : > { %v2315_v1 = vpop.permute.xlu0 %2314 }
 0x869   : > { %v2320_v6 = vsel %vm776_vm4, %v2315_v1, 0 }
 0x86a   : > { %2329 = vmatpush.bf16.msrb.mxu0 %v2320_v6 }
 0x86e   : > { %2201 = vadd.xlane.f32.xlu0 %v2200_v13  ;;  %v4966_v13 = vld [vmem:[%s6794_s5] sm:$0xff] }
 0x870   : > { %v2184_v18 = vpop.xlane.xlu2 %2183 }
 0x871   : > { %5117 = vrcp.f32 %v2184_v18 }
 0x877   : > { %v5118_v10 = vpop.eup %5117 }
 0x878   : > { %v2214_v11 = vmul.f32 %v5118_v10, %v5937_v48 }
 0x87a   : > { %v2222_v15 = vpack.c.bf16 %v2214_v11, %v2214_v11 }
 0x87c   : > { %4832 = vmatmul.msk.bf16.vlgmr.msra.gmra.mxu0 %vm479_vm3, %v2222_v15 }
 0x882   : > { %1412 = vrot.lane.b32.xlu0 %v5767_v0, %s5280_s19 }
 0x88a   : > { %1418 = vrot.lane.b32.xlu0 %v5790_v33, %s5280_s19 }
 0x893   : > { %v2187_v5 = vpop.xlane.xlu0 %2186 }
 0x894   : > { %5119 = vrcp.f32 %v2187_v5 }
 0x89a   : > { %v5120_v12 = vpop.eup %5119  ;;  %v2199_v32 = vpop.xlane.xlu1 %2198 }
 0x89b   : > { %v2215_v7 = vmul.f32 %v5120_v12, %v5941_v46  ;;  %v2196_v55 = vpop.xlane.xlu2 %2195  ;;  %v2190_v19 = vpop.xlane.xlu0 %2189 }
 0x89c   : > { %5121 = vrcp.f32 %v2196_v55 }
 0x89d   : > { %v2223_v20 = vpack.c.bf16 %v2215_v7, %v2215_v7  ;;  %5123 = vrcp.f32 %v2190_v19 }
 0x89f   : > { %4833 = vmatmul.msk.bf16.vlgmr.msrb.gmra.mxu1 %vm479_vm3, %v2223_v20 }
 0x8a2   : > { %v5122_v48 = vpop.eup %5121 }
 0x8a3   : > { %v5124_v21 = vpop.eup %5123  ;;  %v2218_v28 = vmul.f32 %v5122_v48, %v5949_v25  ;;  %v2193_v0 = vpop.xlane.xlu0 %2192 }
 0x8a4   : > { %v2216_v31 = vmul.f32 %v5124_v21, %v5945_v40  ;;  %5125 = vrcp.f32 %v2193_v0 }
 0x8a5   : > { %v2226_v33 = vpack.c.bf16 %v2218_v28, %v2218_v28  ;;  %5127 = vrcp.f32 %v2199_v32 }
 0x8a6   : > { %v2224_v42 = vpack.c.bf16 %v2216_v31, %v2216_v31 }
 0x8a7   : > { %4836 = vmatmul.msk.bf16.vlgmr.msrb.gmra.mxu0 %vm479_vm3, %v2226_v33 }
 0x8a8   : > { %4834 = vmatmul.msk.bf16.vlgmr.msrb.gmra.mxu2 %vm479_vm3, %v2224_v42  ;;  %v2205_v23 = vpop.xlane.xlu2 %2204 }
 0x8a9   : > { %5129 = vrcp.f32 %v2205_v23 }
 0x8aa   : > { %v5126_v35 = vpop.eup %5125 }
 0x8ab   : > { %v2217_v46 = vmul.f32 %v5126_v35, %v5112_v60  ;;  %v5128_v17 = vpop.eup %5127 }
 0x8ac   : > { %v2219_v44 = vmul.f32 %v5128_v17, %v5947_v26 }
 0x8ad   : > { %v2225_v58 = vpack.c.bf16 %v2217_v46, %v2217_v46 }
 0x8ae   : > { %v2227_v51 = vpack.c.bf16 %v2219_v44, %v2219_v44 }
 0x8af   : > { %4835 = vmatmul.msk.bf16.vlgmr.msra.gmra.mxu3 %vm479_vm3, %v2225_v58  ;;  %v5130_v25 = vpop.eup %5129 }
 0x8b0   : > { %v2378_v37 = vpop.permute.xlu2 %2377  ;;  %v2221_v52 = vmul.f32 %v5130_v25, %v5960_v63  ;;  %v4969_v25 = vld [vmem:[%s6792_s3 + $0x18] sm:$0xff] }
 0x8b1   : > { %v2383_v39 = vsel %vm776_vm4, %v2378_v37, 0 }
 0x8b2   : > { %2392 = vmatpush.bf16.msrb.mxu3 %v2383_v39  ;;  %v2357_v43 = vpop.permute.xlu1 %2356  ;;  %v2229_v54 = vpack.c.bf16 %v2221_v52, %v2221_v52 }
 0x8b3   : > { %v2362_v40 = vsel %vm776_vm4, %v2357_v43, 0 }
 0x8b4   : > { %2371 = vmatpush.bf16.msra.mxu2 %v2362_v40 }
 0x8b6   : > { %v2336_v49 = vpop.permute.xlu0 %2335 }
 0x8b7   : > { %v2341_v50 = vsel %vm776_vm4, %v2336_v49, 0  ;;  %v4968_v49 = vld [vmem:[%s6792_s3 + $0x10] sm:$0xff] }
 0x8b8   : > { %2350 = vmatpush.bf16.msra.mxu1 %v2341_v50  ;;  %v1910_v62 = vpop.permute.xlu2 %1909 }
 0x8ba   : > { %v1415_v53 = vpop.permute.xlu1 %1414 }
 0x8bb   : > { %1438 = vst.msk [vmem:[#allocation2 + $0x8] sm:$0xff] %vm1436_vm5, %v1415_v53  ;;  %4837 = vmatmul.msk.bf16.vlgmr.msra.gmra.mxu1 %vm479_vm3, %v2227_v51  ;;  %v5001_v51 = vld [vmem:[%s6795_s6] ss:$0 sm:$0xff] }
 0x8bc   : > { %2556 = vmatpush.bf16.msrb.mxu1 %v4969_v25 }
 0x8bf   : > { %4839 = vmatmul.msk.bf16.vlgmr.msrb.gmra.mxu3 %vm479_vm3, %v2229_v54 }
 0x8c0   : > { %2557 = vmatpush.bf16.msrb.mxu1 %v4968_v49 }
 0x8c2   : > { %v1912_v56 = vpop.permute.xlu1 %1911 }
 0x8c3   : > { %1935 = vst.msk [vmem:[#allocation2 + $0x8] sm:$0xff] %vm1933_vm6, %v1912_v56 }
 0x8e1   : > { %v2202_v26 = vpop.xlane.xlu0 %2201 }
 0x8e2   : > { %5131 = vrcp.f32 %v2202_v26 }
 0x8e8   : > { %v5132_v57 = vpop.eup %5131 }
 0x8e9   : > { %v2220_v59 = vmul.f32 %v5132_v57, %v5979_v9 }
 0x8eb   : > { %v2228_v61 = vpack.c.bf16 %v2220_v59, %v2220_v59 }
 0x8ed   : > { %4838 = vmatmul.msk.bf16.vlgmr.msra.gmra.mxu2 %vm479_vm3, %v2228_v61 }
 0x8f4   : > { %v1413_v60 = vpop.permute.xlu0 %1412 }
 0x8f5   : > { %1437 = vst.msk [vmem:[#allocation2] sm:$0xff] %vm1436_vm5, %v1413_v60 }
 0x8f6   : > { %1934 = vst.msk [vmem:[#allocation2] sm:$0xff] %vm1933_vm6, %v1910_v62 }
 0x8f9   : > { %v2247_v63 = vpop.f32.mrf.mxu0 }
 0x8fa   : > { %2406 = vrot.lane.b32.xlu2 %v2247_v63, %s6800_s21 }
 0x8fc   : > { %v1419_v47 = vpop.permute.xlu0 %1418 }
 0x8fd   : > { %1440 = vst.msk [vmem:[#allocation2 + $0x18] sm:$0xff] %vm1436_vm5, %v1419_v47 }
 0x901   : > { %v2249_v2 = vpop.f32.mrf.mxu0 }
 0x902   : > { %1416 = vrot.lane.b32.xlu2 %v5787_v27, %s5280_s19 }
 0x90a   : > { %1915 = vrot.lane.b32.xlu2 %v5911_v45, %s5281_s20 }
 0x912   : > { %1420 = vrot.lane.b32.xlu2 %v5783_v22, %s5280_s19 }
 0x91a   : > { %1919 = vrot.lane.b32.xlu2 %v5908_v16, %s5281_s20 }
 0x91c   : > { %v2268_v3 = vpop.f32.mrf.mxu1 }
 0x91d   : > { %2408 = vrot.lane.b32.xlu1 %v2268_v3, %s6800_s21 }
 0x922   : > { %1424 = vrot.lane.b32.xlu2 %v5797_v41, %s5280_s19 }
 0x924   : > { %v2270_v8 = vpop.f32.mrf.mxu1  ;;  %v2331_v4 = vpop.f32.mrf.mxu0 }
 0x925   : > { %1913 = vrot.lane.b32.xlu1 %v5913_v29, %s5281_s20 }
 0x92a   : > { %1923 = vrot.lane.b32.xlu2 %v5915_v34, %s5281_s20 }
 0x92b   : > { %v2289_v27 = vpop.f32.mrf.mxu2 }
 0x92c   : > { %2410 = vrot.lane.b32.xlu0 %v2289_v27, %s6800_s21  ;;  %v2333_v22 = vpop.f32.mrf.mxu0 }
 0x932   : > { %v2310_v45 = vpop.f32.mrf.mxu3 }
 0x933   : > { %v2291_v16 = vpop.f32.mrf.mxu2  ;;  %2412 = vrot.lane.b32.xlu1 %v2310_v45, %s6800_s21 }
 0x934   : > { %1422 = vrot.lane.b32.xlu0 %v5785_v24, %s5280_s19  ;;  %v5002_v16 = vld [vmem:[%s6793_s4 + $0x1] ss:$0 sm:$0xff] }
 0x938   : > { %v2352_v41 = vpop.f32.mrf.mxu1 }
 0x93a   : > { %v2312_v30 = vpop.f32.mrf.mxu3 }
 0x93b   : > { %1917 = vrot.lane.b32.xlu1 %v5906_v14, %s5281_s20 }
 0x93c   : > { %2414 = vrot.lane.b32.xlu0 %v2331_v4, %s6800_s21 }
 0x940   : > { %v2354_v29 = vpop.f32.mrf.mxu1 }
 0x942   : > { %v2394_v34 = vpop.f32.mrf.mxu3 }
 0x943   : > { %2416 = vrot.lane.b32.xlu1 %v2352_v41, %s6800_s21 }
 0x944   : > { %1426 = vrot.lane.b32.xlu0 %v5795_v38, %s5280_s19 }
 0x94a   : > { %v2396_v1 = vpop.f32.mrf.mxu3 }
 0x94b   : > { %1921 = vrot.lane.b32.xlu1 %v5917_v36, %s5281_s20  ;;  %v4967_v36 = vld [vmem:[%s6794_s5 + $0x8] sm:$0xff] }
 0x94c   : > { %2489 = vmatpush.bf16.msra.mxu0 %v4967_v36 }
 0x950   : > { %2490 = vmatpush.bf16.msra.mxu0 %v4966_v13 }
 0x953   : > { %2420 = vrot.lane.b32.xlu1 %v2394_v34, %s6800_s21 }
 0x954   : > { %v2407_v24 = vpop.permute.xlu2 %2406 }
 0x955   : > { %2431 = vst.msk [vmem:[#allocation2] sm:$0xff] %vm2430_vm7, %v2407_v24 }
 0x95c   : > { %v1417_v14 = vpop.permute.xlu2 %1416  ;;  %v2439_v12 = vld [vmem:[#allocation2] sm:$0xff] }
 0x95d   : > { %1439 = vst.msk [vmem:[#allocation2 + $0x10] sm:$0xff] %vm1436_vm5, %v1417_v14 }
 0x964   : > { %v1916_v6 = vpop.permute.xlu2 %1915 }
 0x965   : > { %1937 = vst.msk [vmem:[#allocation2 + $0x18] sm:$0xff] %vm1933_vm6, %v1916_v6 }
 0x96c   : > { %v1421_v9 = vpop.permute.xlu2 %1420 }
 0x96d   : > { %1441 = vst.msk [vmem:[#allocation2 + $0x20] sm:$0xff] %vm1436_vm5, %v1421_v9 }
 0x970   : > { %v2373_v38 = vpop.f32.mrf.mxu2 }
 0x971   : > { %2418 = vrot.lane.b32.xlu0 %v2373_v38, %s6800_s21 }
 0x974   : > { %v1920_v18 = vpop.permute.xlu2 %1919 }
 0x978   : > { %v2375_v10 = vpop.f32.mrf.mxu2 }
 0x97c   : > { %v1425_v11 = vpop.permute.xlu2 %1424 }
 0x97d   : > { %1443 = vst.msk [vmem:[#allocation2 + $0x30] sm:$0xff] %vm1436_vm5, %v1425_v11 }
 0x984   : > { %v1924_v32 = vpop.permute.xlu2 %1923 }
 0x98f   : > { %v2409_v15 = vpop.permute.xlu1 %2408 }
 0x990   : > { %2432 = vst.msk [vmem:[#allocation2 + $0x8] sm:$0xff] %vm2430_vm7, %v2409_v15 }
 0x997   : > { %v1914_v5 = vpop.permute.xlu1 %1913  ;;  %v2440_v7 = vld [vmem:[#allocation2 + $0x8] sm:$0xff] }
 0x998   : > { %1936 = vst.msk [vmem:[#allocation2 + $0x10] sm:$0xff] %vm1933_vm6, %v1914_v5  ;;  %v2447_v55 = vpack.c.bf16 %v2440_v7, %v2439_v12 }
 0x99a   : > { %4848 = vmatmul.msk.bf16.vlgmr.msra.gmra.mxu0 %vm424_vm2, %v2447_v55 }
 0x99e   : > { %v2411_v19 = vpop.permute.xlu0 %2410 }
 0x99f   : > { %2433 = vst.msk [vmem:[#allocation2 + $0x10] sm:$0xff] %vm2430_vm7, %v2411_v19 }
 0x9a5   : > { %v2413_v20 = vpop.permute.xlu1 %2412 }
 0x9a6   : > { %2434 = vst.msk [vmem:[#allocation2 + $0x18] sm:$0xff] %vm2430_vm7, %v2413_v20  ;;  %v1423_v48 = vpop.permute.xlu0 %1422  ;;  %v2441_v28 = vld [vmem:[#allocation2 + $0x10] sm:$0xff] }
 0x9a7   : > { %1442 = vst.msk [vmem:[#allocation2 + $0x28] sm:$0xff] %vm1436_vm5, %v1423_v48 }
 0x9a8   : > { %1939 = vst.msk [vmem:[#allocation2 + $0x28] sm:$0xff] %vm1933_vm6, %v1920_v18 }
 0x9ad   : > { %v1918_v21 = vpop.permute.xlu1 %1917  ;;  %v2442_v0 = vld [vmem:[#allocation2 + $0x18] sm:$0xff] }
 0x9ae   : > { %1938 = vst.msk [vmem:[#allocation2 + $0x20] sm:$0xff] %vm1933_vm6, %v1918_v21  ;;  %v2415_v31 = vpop.permute.xlu0 %2414  ;;  %v2448_v33 = vpack.c.bf16 %v2442_v0, %v2441_v28 }
 0x9af   : > { %2435 = vst.msk [vmem:[#allocation2 + $0x20] sm:$0xff] %vm2430_vm7, %v2415_v31 }
 0x9b0   : > { %4849 = vmatmul.msk.bf16.gmra.mxu0 %vm424_vm2, %v2448_v33 }
 0x9b5   : > { %v2417_v42 = vpop.permute.xlu1 %2416 }
 0x9b6   : > { %2436 = vst.msk [vmem:[#allocation2 + $0x28] sm:$0xff] %vm2430_vm7, %v2417_v42  ;;  %v1427_v23 = vpop.permute.xlu0 %1426  ;;  %v2443_v46 = vld [vmem:[#allocation2 + $0x20] sm:$0xff] }
 0x9b7   : > { %1444 = vst.msk [vmem:[#allocation2 + $0x38] sm:$0xff] %vm1436_vm5, %v1427_v23 }
 0x9b8   : > { %1941 = vst.msk [vmem:[#allocation2 + $0x38] sm:$0xff] %vm1933_vm6, %v1924_v32 }
 0x9bd   : > { %v1922_v35 = vpop.permute.xlu1 %1921  ;;  %v2444_v58 = vld [vmem:[#allocation2 + $0x28] sm:$0xff] }
 0x9be   : > { %1940 = vst.msk [vmem:[#allocation2 + $0x30] sm:$0xff] %vm1933_vm6, %v1922_v35  ;;  %v2449_v37 = vpack.c.bf16 %v2444_v58, %v2443_v46 }
 0x9c0   : > { %4850 = vmatmul.msk.bf16.gmra.mxu0 %vm424_vm2, %v2449_v37 }
 0x9c5   : > { %v2421_v39 = vpop.permute.xlu1 %2420 }
 0x9c6   : > { %2438 = vst.msk [vmem:[#allocation2 + $0x38] sm:$0xff] %vm2430_vm7, %v2421_v39 }
 0x9cd   : > { %v2446_v40 = vld [vmem:[#allocation2 + $0x38] sm:$0xff] }
 0x9e3   : > { %v2419_v17 = vpop.permute.xlu0 %2418 }
 0x9e4   : > { %2437 = vst.msk [vmem:[#allocation2 + $0x30] sm:$0xff] %vm2430_vm7, %v2419_v17 }
 0x9eb   : > { %v2445_v43 = vld [vmem:[#allocation2 + $0x30] sm:$0xff] }
 0x9ec   : > { %v2450_v44 = vpack.c.bf16 %v2446_v40, %v2445_v43 }
 0x9ee   : > { %4851 = vmatmul.msk.bf16.gmra.mxu0 %vm424_vm2, %v2450_v44 }
 0xa17   : > { %v2492_v50 = vpop.f32.mrf.mxu0 }
 0xa18   : > { %v2493_v53 = vadd.f32 %v5001_v51, %v2492_v50 }
 0xa1f   : > { %v2494_v52 = vpop.f32.mrf.mxu0 }
 0xa20   : > { %v2495_v54 = vadd.f32 %v5001_v51, %v2494_v52 }
 0xa22   : > { %v2512_v56 = vpack.c.bf16 %v2495_v54, %v2493_v53 }
 0xa24   : > { %4865 = vmatmul.msk.bf16.vlgmr.msrb.gmra.mxu1 %vm424_vm2, %v2512_v56 }
 0xa2d   : > { %v2497_v26 = vpop.f32.mrf.mxu0 }
 0xa2e   : > { %v2498_v59 = vadd.f32 %v5001_v51, %v2497_v26 }
 0xa35   : > { %v2499_v57 = vpop.f32.mrf.mxu0 }
 0xa36   : > { %v2500_v61 = vadd.f32 %v5001_v51, %v2499_v57 }
 0xa38   : > { %v2513_v60 = vpack.c.bf16 %v2500_v61, %v2498_v59 }
 0xa3a   : > { %4866 = vmatmul.msk.bf16.gmra.mxu1 %vm424_vm2, %v2513_v60 }
 0xa3d   : > { %v2502_v62 = vpop.f32.mrf.mxu0 }
 0xa3e   : > { %v2503_v47 = vadd.f32 %v5001_v51, %v2502_v62 }
 0xa45   : > { %v2504_v63 = vpop.f32.mrf.mxu0 }
 0xa46   : > { %v2505_v2 = vadd.f32 %v5001_v51, %v2504_v63 }
 0xa48   : > { %v2514_v3 = vpack.c.bf16 %v2505_v2, %v2503_v47 }
 0xa4a   : > { %4867 = vmatmul.msk.bf16.gmra.mxu1 %vm424_vm2, %v2514_v3 }
 0xa6b   : > { %v2507_v8 = vpop.f32.mrf.mxu0 }
 0xa6c   : > { %v2508_v27 = vadd.f32 %v5001_v51, %v2507_v8 }
 0xa73   : > { %v2509_v4 = vpop.f32.mrf.mxu0 }
 0xa74   : > { %v2510_v22 = vadd.f32 %v5001_v51, %v2509_v4 }
 0xa76   : > { %v2515_v45 = vpack.c.bf16 %v2510_v22, %v2508_v27 }
 0xa78   : > { %4868 = vmatmul.msk.bf16.gmra.mxu1 %vm424_vm2, %v2515_v45 }
 0xaa1   : > { %v2559_v41 = vpop.f32.mrf.mxu1 }
 0xaa2   : > { %v2560_v30 = vadd.f32 %v5002_v16, %v2559_v41 }
 0xaa4   : > { %v2579_v29 = vpack.c.bf16 %v2560_v30, %v2560_v30 }
 0xaa6   : > { %v2588_v34 = vunpack.c.l.b16 %v2579_v29 }
 0xaa8   : > { %v6085_v1 = vpack.c.b16 %v2588_v34, %v2588_v34 }
 0xaa9   : > { %v2561_v24 = vpop.f32.mrf.mxu1 }
 0xaaa   : > { %v2562_v14 = vadd.f32 %v5002_v16, %v2561_v24  ;;  %2590 = vrot.lane.b32.xlu2 %v6085_v1, %s5269_s26 }
 0xaac   : > { %v2580_v6 = vpack.c.bf16 %v2562_v14, %v2562_v14 }
 0xaae   : > { %v2612_v9 = vunpack.c.l.b16 %v2580_v6 }
 0xab0   : > { %v6089_v38 = vpack.c.b16 %v2612_v9, %v2612_v9 }
 0xab2   : > { %2614 = vrot.lane.b32.xlu0 %v6089_v38, %s5269_s26 }
 0xab7   : > { %v2564_v36 = vpop.f32.mrf.mxu1 }
 0xab8   : > { %v2565_v13 = vadd.f32 %v5002_v16, %v2564_v36 }
 0xaba   : > { %v2581_v18 = vpack.c.bf16 %v2565_v13, %v2565_v13 }
 0xabc   : > { %v2636_v10 = vunpack.c.l.b16 %v2581_v18 }
 0xabe   : > { %v6093_v11 = vpack.c.b16 %v2636_v10, %v2636_v10 }
 0xabf   : > { %v2566_v15 = vpop.f32.mrf.mxu1 }
 0xac0   : > { %v2567_v5 = vadd.f32 %v5002_v16, %v2566_v15  ;;  %2638 = vrot.lane.b32.xlu1 %v6093_v11, %s5269_s26 }
 0xac2   : > { %v2582_v12 = vpack.c.bf16 %v2567_v5, %v2567_v5 }
 0xac4   : > { %v2660_v7 = vunpack.c.l.b16 %v2582_v12 }
 0xac6   : > { %v6097_v55 = vpack.c.b16 %v2660_v7, %v2660_v7 }
 0xac7   : > { %v2569_v19 = vpop.f32.mrf.mxu1 }
 0xac8   : > { %v2570_v20 = vadd.f32 %v5002_v16, %v2569_v19  ;;  %2662 = vrot.lane.b32.xlu2 %v6097_v55, %s5269_s26 }
 0xaca   : > { %v2583_v48 = vpack.c.bf16 %v2570_v20, %v2570_v20 }
 0xacc   : > { %v2684_v21 = vunpack.c.l.b16 %v2583_v48 }
 0xace   : > { %v6101_v28 = vpack.c.b16 %v2684_v21, %v2684_v21 }
 0xacf   : > { %v2571_v0 = vpop.f32.mrf.mxu1 }
 0xad0   : > { %v2572_v31 = vadd.f32 %v5002_v16, %v2571_v0  ;;  %2686 = vrot.lane.b32.xlu0 %v6101_v28, %s5269_s26 }
 0xad2   : > { %v2584_v33 = vpack.c.bf16 %v2572_v31, %v2572_v31 }
 0xad4   : > { %v2708_v42 = vunpack.c.l.b16 %v2584_v33 }
 0xad6   : > { %v6105_v23 = vpack.c.b16 %v2708_v42, %v2708_v42 }
 0xad8   : > { %2710 = vrot.lane.b32.xlu1 %v6105_v23, %s5269_s26 }
 0xae0   : > { %2946 = vrot.lane.b32.xlu1 %v6097_v55, %s5270_s27 }
 0xae8   : > { %3107 = vrot.lane.b32.xlu1 %v6093_v11, %s5271_s28 }
 0xaf0   : > { %3128 = vrot.lane.b32.xlu1 %v6097_v55, %s5272_s29 }
 0xaf5   : > { %v2574_v32 = vpop.f32.mrf.mxu1 }
 0xaf6   : > { %v2575_v35 = vadd.f32 %v5002_v16, %v2574_v32 }
 0xaf8   : > { %v2585_v46 = vpack.c.bf16 %v2575_v35, %v2575_v35 }
 0xafa   : > { %v2732_v58 = vunpack.c.l.b16 %v2585_v46 }
 0xafc   : > { %v6115_v37 = vpack.c.b16 %v2732_v58, %v2732_v58 }
 0xafd   : > { %v2576_v39 = vpop.f32.mrf.mxu1 }
 0xafe   : > { %v2577_v17 = vadd.f32 %v5002_v16, %v2576_v39  ;;  %2734 = vrot.lane.b32.xlu2 %v6115_v37, %s5269_s26 }
 0xb00   : > { %v2586_v43 = vpack.c.bf16 %v2577_v17, %v2577_v17 }
 0xb02   : > { %v2756_v40 = vunpack.c.l.b16 %v2586_v43 }
 0xb04   : > { %v6119_v44 = vpack.c.b16 %v2756_v40, %v2756_v40  ;;  %v2591_v25 = vpop.permute.xlu2 %2590 }
 0xb05   : > { %v2596_v49 = vsel %vm479_vm3, %v2591_v25, 0 }
 0xb06   : > { %2605 = vmatpush.bf16.xpose.msrb.mxu2 %v2596_v49  ;;  %2758 = vrot.lane.b32.xlu0 %v6119_v44, %s5269_s26  ;;  %s6802_s26 = smov 24  }
 0xb07   : > { %2925 = vrot.lane.b32.xlu2 %v6093_v11, %s5270_s27 }
 0xb0d   : > { %4869 = vmatmul.msk.bf16.vlgmr.msrb.gmra.mxu2 %vm479_vm3, %v2579_v29 }
 0xb0e   : > { %2883 = vrot.lane.b32.xlu0 %v6085_v1, %s5270_s27 }
 0xb0f   : > { %2904 = vrot.lane.b32.xlu2 %v6089_v38, %s5270_s27 }
 0xb16   : > { %3009 = vrot.lane.b32.xlu0 %v6115_v37, %s5270_s27 }
 0xb17   : > { %3061 = vrot.lane.b32.xlu2 %v6085_v1, %s5271_s28 }
 0xb1e   : > { %2967 = vrot.lane.b32.xlu0 %v6101_v28, %s5270_s27 }
 0xb22   : > { %v2663_v50 = vpop.permute.xlu2 %2662 }
 0xb23   : > { %v2668_v53 = vsel %vm479_vm3, %v2663_v50, 0 }
 0xb24   : > { %v2615_v51 = vpop.permute.xlu0 %2614 }
 0xb25   : > { %v2620_v52 = vsel %vm479_vm3, %v2615_v51, 0 }
 0xb26   : > { %2988 = vrot.lane.b32.xlu0 %v6105_v23, %s5270_s27  ;;  %2629 = vmatpush.bf16.xpose.msra.mxu3 %v2620_v52 }
 0xb2d   : > { %4870 = vmatmul.msk.bf16.vlgmr.msra.gmra.mxu3 %vm479_vm3, %v2580_v6 }
 0xb2e   : > { %2677 = vmatpush.bf16.xpose.msrb.mxu3 %v2668_v53  ;;  %3130 = vrot.lane.b32.xlu0 %v6097_v55, %s5271_s28 }
 0xb32   : > { %v2639_v54 = vpop.permute.xlu1 %2638 }
 0xb33   : > { %v2644_v56 = vsel %vm479_vm3, %v2639_v54, 0 }
 0xb34   : > { %2653 = vmatpush.bf16.xpose.msra.mxu2 %v2644_v56 }
 0xb36   : > { %3084 = vrot.lane.b32.xlu0 %v6089_v38, %s5271_s28 }
 0xb3b   : > { %4871 = vmatmul.msk.bf16.vlgmr.msra.gmra.mxu2 %vm479_vm3, %v2581_v18 }
 0xb3d   : > { %4872 = vmatmul.msk.bf16.vlgmr.msrb.gmra.mxu3 %vm479_vm3, %v2582_v12 }
 0xb3e   : > { %3105 = vrot.lane.b32.xlu0 %v6093_v11, %s5272_s29 }
 0xb42   : > { %v2687_v26 = vpop.permute.xlu0 %2686 }
 0xb43   : > { %v2692_v57 = vsel %vm479_vm3, %v2687_v26, 0 }
 0xb44   : > { %2701 = vmatpush.bf16.xpose.msrb.mxu2 %v2692_v57 }
 0xb46   : > { %3030 = vrot.lane.b32.xlu0 %v6119_v44, %s5270_s27 }
 0xb4a   : > { %v2711_v59 = vpop.permute.xlu1 %2710 }
 0xb4b   : > { %v2716_v61 = vsel %vm479_vm3, %v2711_v59, 0  ;;  %4873 = vmatmul.msk.bf16.vlgmr.msrb.gmra.mxu2 %vm479_vm3, %v2583_v48 }
 0xb4c   : > { %2725 = vmatpush.bf16.xpose.msra.mxu3 %v2716_v61 }
 0xb52   : > { %v2947_v8 = vpop.permute.xlu1 %2946 }
 0xb53   : > { %4874 = vmatmul.msk.bf16.vlgmr.msra.gmra.mxu3 %vm479_vm3, %v2584_v33  ;;  %v2952_v22 = vsel %vm776_vm4, %v2947_v8, 0 }
 0xb58   : > { %v2735_v60 = vpop.permute.xlu2 %2734 }
 0xb59   : > { %v2740_v62 = vsel %vm479_vm3, %v2735_v60, 0 }
 0xb5a   : > { %2749 = vmatpush.bf16.xpose.msra.mxu2 %v2740_v62 }
 0xb61   : > { %v2926_v63 = vpop.permute.xlu2 %2925  ;;  %4875 = vmatmul.msk.bf16.vlgmr.msra.gmra.mxu2 %vm479_vm3, %v2585_v46 }
 0xb62   : > { %v2931_v47 = vsel %vm776_vm4, %v2926_v63, 0 }
 0xb63   : > { %2940 = vmatpush.bf16.msrb.mxu2 %v2931_v47 }
 0xb69   : > { %v2905_v2 = vpop.permute.xlu2 %2904 }
 0xb6a   : > { %v2910_v3 = vsel %vm776_vm4, %v2905_v2, 0  ;;  %v6192_v2 = vpop.permute.xlu1 %3107 }
 0xb6b   : > { %2919 = vmatpush.bf16.msra.mxu1 %v2910_v3 }
 0xb71   : > { %v6194_v3 = vpop.permute.xlu2 %3061 }
 0xb78   : > { %v2759_v4 = vpop.permute.xlu0 %2758 }
 0xb79   : > { %v2764_v27 = vsel %vm479_vm3, %v2759_v4, 0  ;;  %v6198_v4 = vpop.permute.xlu1 %3128 }
 0xb7a   : > { %2773 = vmatpush.bf16.xpose.msrb.mxu3 %v2764_v27 }
 0xb80   : > { %v2884_v45 = vpop.permute.xlu0 %2883 }
 0xb81   : > { %v2889_v16 = vsel %vm776_vm4, %v2884_v45, 0  ;;  %4876 = vmatmul.msk.bf16.vlgmr.msrb.gmra.mxu3 %vm479_vm3, %v2586_v43 }
 0xb82   : > { %2961 = vmatpush.bf16.msra.mxu3 %v2952_v22  ;;  %2898 = vmatpush.bf16.msrb.mxu0 %v2889_v16 }
 0xb88   : > { %v3010_v41 = vpop.permute.xlu0 %3009 }
 0xb89   : > { %v3015_v30 = vsel %vm776_vm4, %v3010_v41, 0 }
 0xb8a   : > { %3024 = vmatpush.bf16.msra.mxu2 %v3015_v30 }
 0xb90   : > { %v2607_v29 = vpop.f32.mrf.mxu2  ;;  %v2968_v34 = vpop.permute.xlu0 %2967 }
 0xb91   : > { %v2779_v24 = vmul.f32 0.35355338, %v2607_v29  ;;  %v2973_v14 = vsel %vm776_vm4, %v2968_v34, 0 }
 0xb92   : > { %2982 = vmatpush.bf16.msra.mxu0 %v2973_v14 }
 0xb93   : > { %v2787_v6 = vsel %vm479_vm3, %v2779_v24, -inf }
 0xb94   : > { %2788 = vmax.xlane.f32.xlu0 %v2787_v6 }
 0xb98   : > { %v2609_v9 = vpop.f32.mrf.mxu2  ;;  %v2989_v36 = vpop.permute.xlu0 %2988 }
 0xb99   : > { %v2994_v13 = vsel %vm776_vm4, %v2989_v36, 0 }
 0xb9a   : > { %3003 = vmatpush.bf16.msrb.mxu1 %v2994_v13 }
 0xba0   : > { %v6169_v18 = vpop.permute.xlu0 %3130 }
 0xba8   : > { %v6171_v10 = vpop.permute.xlu0 %3084 }
 0xbb0   : > { %v2631_v15 = vpop.f32.mrf.mxu3  ;;  %v6173_v5 = vpop.permute.xlu0 %3105 }
 0xbb1   : > { %v2780_v12 = vmul.f32 0.35355338, %v2631_v15 }
 0xbb3   : > { %v2790_v7 = vsel %vm479_vm3, %v2780_v12, -inf }
 0xbb4   : > { %2791 = vmax.xlane.f32.xlu2 %v2790_v7 }
 0xbb8   : > { %v2633_v19 = vpop.f32.mrf.mxu3  ;;  %v3031_v20 = vpop.permute.xlu0 %3030 }
 0xbb9   : > { %v3036_v48 = vsel %vm776_vm4, %v3031_v20, 0 }
 0xbba   : > { %3045 = vmatpush.bf16.msrb.mxu3 %v3036_v48 }
 0xbbe   : > { %v2655_v21 = vpop.f32.mrf.mxu2 }
 0xbbf   : > { %v2781_v0 = vmul.f32 0.35355338, %v2655_v21 }
 0xbc0   : > { %v2679_v31 = vpop.f32.mrf.mxu3 }
 0xbc1   : > { %v2782_v33 = vmul.f32 0.35355338, %v2679_v31  ;;  %v2793_v42 = vsel %vm479_vm3, %v2781_v0, -inf }
 0xbc2   : > { %2794 = vmax.xlane.f32.xlu1 %v2793_v42 }
 0xbc3   : > { %v2796_v32 = vsel %vm479_vm3, %v2782_v33, -inf }
 0xbc4   : > { %2797 = vmax.xlane.f32.xlu2 %v2796_v32 }
 0xbc6   : > { %v2657_v35 = vpop.f32.mrf.mxu2 }
 0xbc8   : > { %v2681_v46 = vpop.f32.mrf.mxu3 }
 0xbce   : > { %v2703_v58 = vpop.f32.mrf.mxu2 }
 0xbcf   : > { %v2783_v39 = vmul.f32 0.35355338, %v2703_v58 }
 0xbd1   : > { %v2799_v17 = vsel %vm479_vm3, %v2783_v39, -inf }
 0xbd2   : > { %2800 = vmax.xlane.f32.xlu2 %v2799_v17 }
 0xbd6   : > { %v2705_v43 = vpop.f32.mrf.mxu2  ;;  %v2727_v40 = vpop.f32.mrf.mxu3 }
 0xbd7   : > { %v6180_v25 = vmul.f32 0.35355338, %v2727_v40 }
 0xbd9   : > { %v2802_v49 = vsel %vm479_vm3, %v6180_v25, -inf }
 0xbda   : > { %2803 = vmax.xlane.f32.xlu1 %v2802_v49 }
 0xbde   : > { %v2729_v50 = vpop.f32.mrf.mxu3 }
 0xbe4   : > { %v2751_v51 = vpop.f32.mrf.mxu2 }
 0xbe5   : > { %v2785_v52 = vmul.f32 0.35355338, %v2751_v51 }
 0xbe7   : > { %v2805_v53 = vsel %vm479_vm3, %v2785_v52, -inf }
 0xbe8   : > { %2806 = vmax.xlane.f32.xlu1 %v2805_v53  ;;  %v3067_v53 = vsel %vm479_vm3, %v6194_v3, 0  ;;  %v3136_v3 = vsel %vm479_vm3, %v6169_v18, 0  ;;  %v3113_v18 = vsel %vm479_vm3, %v6192_v2, 0 }
 0xbec   : > { %v2753_v54 = vpop.f32.mrf.mxu2 }
 0xc04   : > { %v2775_v56 = vpop.f32.mrf.mxu3 }
 0xc05   : > { %v2786_v26 = vmul.f32 0.35355338, %v2775_v56 }
 0xc07   : > { %v2789_v57 = vpop.xlane.xlu0 %2788  ;;  %v2808_v59 = vsel %vm479_vm3, %v2786_v26, -inf }
 0xc08   : > { %v2811_v61 = vsub.f32 %v2779_v24, %v2789_v57  ;;  %2809 = vmax.xlane.f32.xlu0 %v2808_v59 }
 0xc0a   : > { %v2819_v60 = vmul.f32 1.442695, %v2811_v61 }
 0xc0c   : > { %5133 = vpow2.f32 %v2819_v60  ;;  %v2777_v62 = vpop.f32.mrf.mxu3 }
 0xc12   : > { %v6186_v63 = vpop.eup %5133 }
 0xc13   : > { %v2835_v47 = vsel %vm479_vm3, %v6186_v63, 0.0 }
 0xc14   : > { %2836 = vadd.xlane.f32.xlu1 %v2835_v47 }
 0xc1c   : > { %3059 = vrot.lane.b32.xlu0 %v6085_v1, %s5272_s29 }
 0xc27   : > { %v2792_v8 = vpop.xlane.xlu2 %2791 }
 0xc28   : > { %v2812_v27 = vsub.f32 %v2780_v12, %v2792_v8 }
 0xc2a   : > { %v2821_v22 = vmul.f32 1.442695, %v2812_v27  ;;  %v3090_v27 = vsel %vm479_vm3, %v6171_v10, 0 }
 0xc2c   : > { %5135 = vpow2.f32 %v2821_v22 }
 0xc2d   : > { %3199 = vrot.lane.b32.xlu1 %v6115_v37, %s5271_s28 }
 0xc32   : > { %v6200_v24 = vpop.eup %5135 }
 0xc33   : > { %v2838_v36 = vsel %vm479_vm3, %v6200_v24, 0.0 }
 0xc35   : > { %v2795_v41 = vpop.xlane.xlu1 %2794 }
 0xc36   : > { %v2813_v29 = vsub.f32 %v2781_v0, %v2795_v41 }
 0xc37   : > { %v2798_v45 = vpop.xlane.xlu2 %2797 }
 0xc38   : > { %v2814_v16 = vsub.f32 %v2782_v33, %v2798_v45  ;;  %v2823_v34 = vmul.f32 1.442695, %v2813_v29 }
 0xc3a   : > { %v2825_v30 = vmul.f32 1.442695, %v2814_v16 }
 0xc3c   : > { %5137 = vpow2.f32 %v2825_v30 }
 0xc3d   : > { %5139 = vpow2.f32 %v2823_v34 }
 0xc42   : > { %v6202_v14 = vpop.eup %5137 }
 0xc43   : > { %v2844_v6 = vsel %vm479_vm3, %v6202_v14, 0.0  ;;  %v6208_v12 = vpop.eup %5139 }
 0xc44   : > { %2845 = vadd.xlane.f32.xlu2 %v2844_v6  ;;  %v2841_v7 = vsel %vm479_vm3, %v6208_v12, 0.0 }
 0xc45   : > { %v2801_v9 = vpop.xlane.xlu2 %2800 }
 0xc46   : > { %v2815_v13 = vsub.f32 %v2783_v39, %v2801_v9  ;;  %2839 = vadd.xlane.f32.xlu0 %v2838_v36 }
 0xc48   : > { %v2827_v15 = vmul.f32 1.442695, %v2815_v13 }
 0xc4a   : > { %5141 = vpow2.f32 %v2827_v15 }
 0xc4d   : > { %v2804_v20 = vpop.xlane.xlu1 %2803 }
 0xc4e   : > { %2842 = vadd.xlane.f32.xlu0 %v2841_v7  ;;  %v2816_v32 = vsub.f32 %v6180_v25, %v2804_v20 }
 0xc50   : > { %v6212_v19 = vpop.eup %5141  ;;  %v2829_v35 = vmul.f32 1.442695, %v2816_v32 }
 0xc51   : > { %v2847_v48 = vsel %vm479_vm3, %v6212_v19, 0.0 }
 0xc57   : > { %2848 = vadd.xlane.f32.xlu1 %v2847_v48 }
 0xc5b   : > { %v2807_v21 = vpop.xlane.xlu1 %2806 }
 0xc5c   : > { %v2817_v0 = vsub.f32 %v2785_v52, %v2807_v21  ;;  %3082 = vrot.lane.b32.xlu2 %v6089_v38, %s5272_s29 }
 0xc5e   : > { %v2831_v31 = vmul.f32 1.442695, %v2817_v0 }
 0xc60   : > { %5143 = vpow2.f32 %v2831_v31 }
 0xc61   : > { %5145 = vpow2.f32 %v2829_v35 }
 0xc66   : > { %v6218_v33 = vpop.eup %5143 }
 0xc67   : > { %v2853_v42 = vsel %vm479_vm3, %v6218_v33, 0.0  ;;  %v6229_v17 = vpop.eup %5145 }
 0xc68   : > { %2854 = vadd.xlane.f32.xlu0 %v2853_v42  ;;  %v2850_v43 = vsel %vm479_vm3, %v6229_v17, 0.0 }
 0xc70   : > { %3176 = vrot.lane.b32.xlu1 %v6105_v23, %s5271_s28 }
 0xc78   : > { %3151 = vrot.lane.b32.xlu1 %v6101_v28, %s5272_s29 }
 0xc7b   : > { %v2810_v46 = vpop.xlane.xlu0 %2809 }
 0xc7c   : > { %v2818_v58 = vsub.f32 %v2786_v26, %v2810_v46 }
 0xc7e   : > { %v2833_v39 = vmul.f32 1.442695, %v2818_v58 }
 0xc80   : > { %5147 = vpow2.f32 %v2833_v39  ;;  %3410 = vrot.lane.b32.xlu1 %v6097_v55, %s5273_s10 }
 0xc85   : > { %2851 = vadd.xlane.f32.xlu2 %v2850_v43 }
 0xc86   : > { %v6233_v40 = vpop.eup %5147 }
 0xc87   : > { %v2837_v25 = vpop.xlane.xlu1 %2836  ;;  %v2856_v49 = vsel %vm479_vm3, %v6233_v40, 0.0 }
 0xc88   : > { %5149 = vrcp.f32 %v2837_v25  ;;  %3473 = vrot.lane.b32.xlu1 %v6115_v37, %s5273_s10  ;;  %2857 = vadd.xlane.f32.xlu0 %v2856_v49 }
 0xc8e   : > { %v5150_v50 = vpop.eup %5149  ;;  %v3060_v54 = vpop.permute.xlu0 %3059 }
 0xc8f   : > { %v2867_v51 = vmul.f32 %v5150_v50, %v6186_v63 }
 0xc90   : > { %3603 = vrot.lane.b32.xlu1 %v6093_v11, %s5274_s11 }
 0xc91   : > { %v2875_v52 = vpack.c.bf16 %v2867_v51, %v2867_v51 }
 0xc93   : > { %4877 = vmatmul.msk.bf16.vlgmr.msrb.gmra.mxu0 %vm479_vm3, %v2875_v52 }
 0xc94   : > { %3076 = vmatpush.bf16.xpose.msrb.mxu0 %v3067_v53 }
 0xc98   : > { %3580 = vrot.lane.b32.xlu1 %v6089_v38, %s5274_s11 }
 0xc9c   : > { %3222 = vrot.lane.b32.xlu0 %v6119_v44, %s5271_s28 }
 0xc9d   : > { %3153 = vrot.lane.b32.xlu2 %v6101_v28, %s5271_s28 }
 0xc9f   : > { %v3200_v47 = vpop.permute.xlu1 %3199 }
 0xca0   : > { %v3205_v9 = vsel %vm479_vm3, %v3200_v47, 0 }
 0xca4   : > { %3197 = vrot.lane.b32.xlu0 %v6115_v37, %s5272_s29 }
 0xca5   : > { %3220 = vrot.lane.b32.xlu2 %v6119_v44, %s5272_s29 }
 0xcac   : > { %3174 = vrot.lane.b32.xlu0 %v6105_v23, %s5272_s29 }
 0xcad   : > { %3389 = vrot.lane.b32.xlu2 %v6093_v11, %s5273_s10 }
 0xcb4   : > { %3347 = vrot.lane.b32.xlu0 %v6085_v1, %s5273_s10 }
 0xcb5   : > { %3368 = vrot.lane.b32.xlu2 %v6089_v38, %s5273_s10 }
 0xcb7   : > { %v2846_v56 = vpop.xlane.xlu2 %2845 }
 0xcb8   : > { %5151 = vrcp.f32 %v2846_v56 }
 0xcb9   : > { %v2840_v26 = vpop.xlane.xlu0 %2839 }
 0xcba   : > { %5153 = vrcp.f32 %v2840_v26 }
 0xcbc   : > { %3431 = vrot.lane.b32.xlu0 %v6101_v28, %s5273_s10 }
 0xcbd   : > { %3494 = vrot.lane.b32.xlu2 %v6119_v44, %s5273_s10 }
 0xcbe   : > { %v5152_v57 = vpop.eup %5151 }
 0xcbf   : > { %v2870_v59 = vmul.f32 %v5152_v57, %v6202_v14  ;;  %v3083_v2 = vpop.permute.xlu2 %3082 }
 0xcc0   : > { %v5154_v61 = vpop.eup %5153 }
 0xcc1   : > { %v2878_v60 = vpack.c.bf16 %v2870_v59, %v2870_v59  ;;  %v2868_v62 = vmul.f32 %v5154_v61, %v6200_v24  ;;  %v2843_v63 = vpop.xlane.xlu0 %2842 }
 0xcc2   : > { %5155 = vrcp.f32 %v2843_v63 }
 0xcc3   : > { %v2876_v8 = vpack.c.bf16 %v2868_v62, %v2868_v62  ;;  %4880 = vmatmul.msk.bf16.vlgmr.msra.gmra.mxu3 %vm479_vm3, %v2878_v60 }
 0xcc4   : > { %3145 = vmatpush.bf16.xpose.msra.mxu3 %v3136_v3  ;;  %3452 = vrot.lane.b32.xlu0 %v6105_v23, %s5273_s10 }
 0xcc5   : > { %4878 = vmatmul.msk.bf16.vlgmr.msra.gmra.mxu1 %vm479_vm3, %v2876_v8 }
 0xcc6   : > { %3099 = vmatpush.bf16.xpose.msra.mxu1 %v3090_v27 }
 0xcc8   : > { %v5156_v22 = vpop.eup %5155 }
 0xcc9   : > { %v2869_v45 = vmul.f32 %v5156_v22, %v6208_v12 }
 0xcca   : > { %v2849_v16 = vpop.xlane.xlu1 %2848 }
 0xccb   : > { %v2877_v41 = vpack.c.bf16 %v2869_v45, %v2869_v45  ;;  %5157 = vrcp.f32 %v2849_v16 }
 0xccd   : > { %4879 = vmatmul.msk.bf16.vlgmr.msrb.gmra.mxu2 %vm479_vm3, %v2877_v41 }
 0xcce   : > { %3122 = vmatpush.bf16.xpose.msrb.mxu2 %v3113_v18 }
 0xcd1   : > { %v5158_v30 = vpop.eup %5157 }
 0xcd2   : > { %v2871_v29 = vmul.f32 %v5158_v30, %v6212_v19 }
 0xcd4   : > { %v2879_v34 = vpack.c.bf16 %v2871_v29, %v2871_v29 }
 0xcd6   : > { %4881 = vmatmul.msk.bf16.vlgmr.msra.gmra.mxu0 %vm479_vm3, %v2879_v34 }
 0xcdb   : > { %v2855_v10 = vpop.xlane.xlu0 %2854 }
 0xcdc   : > { %5159 = vrcp.f32 %v2855_v10 }
 0xce2   : > { %v5160_v24 = vpop.eup %5159  ;;  %v3177_v36 = vpop.permute.xlu1 %3176 }
 0xce3   : > { %v2873_v14 = vmul.f32 %v5160_v24, %v6218_v33  ;;  %v3182_v33 = vsel %vm479_vm3, %v3177_v36, 0 }
 0xce5   : > { %v2881_v6 = vpack.c.bf16 %v2873_v14, %v2873_v14 }
 0xce6   : > { %4885 = vmatmul.msk.bf16.vlgmr.msrb.gmra.mxu0 %vm479_vm3, %v3060_v54 }
 0xce7   : > { %4883 = vmatmul.msk.bf16.vlgmr.msra.gmra.mxu2 %vm479_vm3, %v2881_v6 }
 0xce8   : > { %3214 = vmatpush.bf16.xpose.msra.mxu2 %v3205_v9 }
 0xcea   : > { %v3152_v7 = vpop.permute.xlu1 %3151 }
 0xcf2   : > { %v3411_v32 = vpop.permute.xlu1 %3410 }
 0xcf3   : > { %v3416_v25 = vsel %vm776_vm4, %v3411_v32, 0 }
 0xcf7   : > { %4887 = vmatmul.msk.bf16.vlgmr.msrb.gmra.mxu2 %vm479_vm3, %v6173_v5 }
 0xcf8   : > { %v2852_v13 = vpop.xlane.xlu2 %2851 }
 0xcf9   : > { %5161 = vrcp.f32 %v2852_v13 }
 0xcfa   : > { %v3474_v43 = vpop.permute.xlu1 %3473 }
 0xcfb   : > { %v2858_v15 = vpop.xlane.xlu0 %2857  ;;  %v3479_v49 = vsel %vm776_vm4, %v3474_v43, 0 }
 0xcfc   : > { %5163 = vrcp.f32 %v2858_v15 }
 0xcff   : > { %v5162_v12 = vpop.eup %5161 }
 0xd00   : > { %v2872_v19 = vmul.f32 %v5162_v12, %v6229_v17  ;;  %v3154_v20 = vpop.permute.xlu2 %3153 }
 0xd01   : > { %v3159_v48 = vsel %vm479_vm3, %v3154_v20, 0 }
 0xd02   : > { %v5164_v21 = vpop.eup %5163  ;;  %v2880_v0 = vpack.c.bf16 %v2872_v19, %v2872_v19  ;;  %3168 = vmatpush.bf16.xpose.msra.mxu0 %v3159_v48 }
 0xd03   : > { %v2874_v31 = vmul.f32 %v5164_v21, %v6233_v40 }
 0xd04   : > { %4882 = vmatmul.msk.bf16.vlgmr.msrb.gmra.mxu1 %vm479_vm3, %v2880_v0 }
 0xd05   : > { %v2882_v5 = vpack.c.bf16 %v2874_v31, %v2874_v31  ;;  %3191 = vmatpush.bf16.xpose.msrb.mxu1 %v3182_v33 }
 0xd07   : > { %4884 = vmatmul.msk.bf16.vlgmr.msrb.gmra.mxu3 %vm479_vm3, %v2882_v5 }
 0xd08   : > { %v3221_v42 = vpop.permute.xlu2 %3220 }
 0xd09   : > { %4889 = vmatmul.msk.bf16.vlgmr.msra.gmra.mxu0 %vm479_vm3, %v3152_v7 }
 0xd0e   : > { %v3223_v35 = vpop.permute.xlu0 %3222 }
 0xd0f   : > { %v3228_v46 = vsel %vm479_vm3, %v3223_v35, 0 }
 0xd10   : > { %v3390_v58 = vpop.permute.xlu2 %3389  ;;  %v2900_v39 = vpop.f32.mrf.mxu0  ;;  %3237 = vmatpush.bf16.xpose.msrb.mxu3 %v3228_v46 }
 0xd11   : > { %v3395_v17 = vsel %vm776_vm4, %v3390_v58, 0  ;;  %3051 = vst.msk [vmem:[#allocation2] sm:$0xff] %vm479_vm3, %v2900_v39 }
 0xd12   : > { %3404 = vmatpush.bf16.msrb.mxu2 %v3395_v17 }
 0xd14   : > { %4886 = vmatmul.msk.bf16.vlgmr.msra.gmra.mxu1 %vm479_vm3, %v3083_v2 }
 0xd16   : > { %v3198_v40 = vpop.permute.xlu0 %3197 }
 0xd17   : > { %4888 = vmatmul.msk.bf16.vlgmr.msra.gmra.mxu3 %vm479_vm3, %v6198_v4  ;;  %4891 = vmatmul.msk.bf16.vlgmr.msra.gmra.mxu2 %vm479_vm3, %v3198_v40 }
 0xd18   : > { %3425 = vmatpush.bf16.msra.mxu3 %v3416_v25  ;;  %3488 = vmatpush.bf16.msra.mxu2 %v3479_v49  ;;  %v3369_v50 = vpop.permute.xlu2 %3368  ;;  %v2902_v51 = vpop.f32.mrf.mxu0 }
 0xd19   : > { %v3374_v52 = vsel %vm776_vm4, %v3369_v50, 0 }
 0xd1a   : > { %3383 = vmatpush.bf16.msra.mxu1 %v3374_v52 }
 0xd1e   : > { %v3175_v53 = vpop.permute.xlu0 %3174 }
 0xd20   : > { %v3495_v54 = vpop.permute.xlu2 %3494 }
 0xd21   : > { %v3500_v26 = vsel %vm776_vm4, %v3495_v54, 0 }
 0xd24   : > { %4890 = vmatmul.msk.bf16.vlgmr.msrb.gmra.mxu1 %vm479_vm3, %v3175_v53 }
 0xd26   : > { %v3348_v56 = vpop.permute.xlu0 %3347 }
 0xd27   : > { %v3353_v57 = vsel %vm776_vm4, %v3348_v56, 0  ;;  %4892 = vmatmul.msk.bf16.vlgmr.msrb.gmra.mxu3 %vm479_vm3, %v3221_v42 }
 0xd28   : > { %3509 = vmatpush.bf16.msrb.mxu3 %v3500_v26  ;;  %3362 = vmatpush.bf16.msrb.mxu0 %v3353_v57  ;;  %v6340_v57 = vpop.permute.xlu1 %3603 }
 0xd2e   : > { %v3432_v4 = vpop.permute.xlu0 %3431 }
 0xd2f   : > { %v3437_v59 = vsel %vm776_vm4, %v3432_v4, 0 }
 0xd30   : > { %3446 = vmatpush.bf16.msra.mxu0 %v3437_v59 }
 0xd36   : > { %v3453_v61 = vpop.permute.xlu0 %3452 }
 0xd37   : > { %v3458_v60 = vsel %vm776_vm4, %v3453_v61, 0 }
 0xd38   : > { %3467 = vmatpush.bf16.msrb.mxu1 %v3458_v60  ;;  %v6344_v60 = vpop.permute.xlu1 %3580 }
 0xd42   : > { %v2921_v62 = vpop.f32.mrf.mxu1 }
 0xd43   : > { %3052 = vst.msk [vmem:[#allocation2 + $0x8] sm:$0xff] %vm479_vm3, %v2921_v62 }
 0xd46   : > { %v2963_v63 = vpop.f32.mrf.mxu3 }
 0xd47   : > { %3054 = vst.msk [vmem:[#allocation2 + $0x18] sm:$0xff] %vm479_vm3, %v2963_v63 }
 0xd4a   : > { %v2923_v47 = vpop.f32.mrf.mxu1 }
 0xd4e   : > { %v2965_v3 = vpop.f32.mrf.mxu3 }
 0xd50   : > { %v2942_v8 = vpop.f32.mrf.mxu2 }
 0xd51   : > { %3053 = vst.msk [vmem:[#allocation2 + $0x10] sm:$0xff] %vm479_vm3, %v2942_v8 }
 0xd53   : > { %v2984_v27 = vpop.f32.mrf.mxu0 }
 0xd54   : > { %3055 = vst.msk [vmem:[#allocation2 + $0x20] sm:$0xff] %vm479_vm3, %v2984_v27 }
 0xd58   : > { %v2944_v22 = vpop.f32.mrf.mxu2 }
 0xd5b   : > { %v2986_v45 = vpop.f32.mrf.mxu0 }
 0xd63   : > { %v3078_v16 = vpop.f32.mrf.mxu0 }
 0xd64   : > { %v3243_v41 = vmul.f32 0.35355338, %v3078_v16 }
 0xd66   : > { %v3251_v18 = vsel %vm479_vm3, %v3243_v41, -inf }
 0xd67   : > { %3252 = vmax.xlane.f32.xlu0 %v3251_v18 }
 0xd6a   : > { %v3026_v30 = vpop.f32.mrf.mxu2 }
 0xd6b   : > { %3057 = vst.msk [vmem:[#allocation2 + $0x30] sm:$0xff] %vm479_vm3, %v3026_v30  ;;  %v3080_v29 = vpop.f32.mrf.mxu0 }
 0xd72   : > { %v3028_v34 = vpop.f32.mrf.mxu2 }
 0xd7a   : > { %v3124_v10 = vpop.f32.mrf.mxu2 }
 0xd7b   : > { %3557 = vrot.lane.b32.xlu0 %v6085_v1, %s5274_s11  ;;  %v3245_v31 = vmul.f32 0.35355338, %v3124_v10 }
 0xd7d   : > { %v3257_v35 = vsel %vm479_vm3, %v3245_v31, -inf }
 0xd81   : > { %v3005_v24 = vpop.f32.mrf.mxu1 }
 0xd82   : > { %3056 = vst.msk [vmem:[#allocation2 + $0x28] sm:$0xff] %vm479_vm3, %v3005_v24  ;;  %v3126_v14 = vpop.f32.mrf.mxu2 }
 0xd86   : > { %v3170_v6 = vpop.f32.mrf.mxu0 }
 0xd87   : > { %v3247_v19 = vmul.f32 0.35355338, %v3170_v6 }
 0xd89   : > { %v3007_v9 = vpop.f32.mrf.mxu1  ;;  %v3263_v0 = vsel %vm479_vm3, %v3247_v19, -inf }
 0xd8a   : > { %v3047_v2 = vpop.f32.mrf.mxu3 }
 0xd8b   : > { %3058 = vst.msk [vmem:[#allocation2 + $0x38] sm:$0xff] %vm479_vm3, %v3047_v2 }
 0xd8e   : > { %v3172_v36 = vpop.f32.mrf.mxu0 }
 0xd91   : > { %v3101_v13 = vpop.f32.mrf.mxu1 }
 0xd92   : > { %v3244_v15 = vmul.f32 0.35355338, %v3101_v13  ;;  %v3049_v12 = vpop.f32.mrf.mxu3 }
 0xd94   : > { %v3254_v7 = vsel %vm479_vm3, %v3244_v15, -inf }
 0xd95   : > { %3255 = vmax.xlane.f32.xlu2 %v3254_v7 }
 0xd99   : > { %v3103_v20 = vpop.f32.mrf.mxu1 }
 0xd9a   : > { %v3147_v48 = vpop.f32.mrf.mxu3  ;;  %v3216_v21 = vpop.f32.mrf.mxu2 }
 0xd9b   : > { %v3246_v58 = vmul.f32 0.35355338, %v3147_v48  ;;  %v6328_v49 = vmul.f32 0.35355338, %v3216_v21 }
 0xd9d   : > { %3264 = vmax.xlane.f32.xlu2 %v3263_v0  ;;  %v3260_v40 = vsel %vm479_vm3, %v3246_v58, -inf  ;;  %v3269_v51 = vsel %vm479_vm3, %v6328_v49, -inf }
 0xda1   : > { %v3193_v33 = vpop.f32.mrf.mxu1 }
 0xda2   : > { %v3248_v5 = vmul.f32 0.35355338, %v3193_v33  ;;  %v3149_v42 = vpop.f32.mrf.mxu3  ;;  %v3218_v32 = vpop.f32.mrf.mxu2 }
 0xda4   : > { %v3266_v46 = vsel %vm479_vm3, %v3248_v5, -inf }
 0xda5   : > { %3258 = vmax.xlane.f32.xlu2 %v3257_v35  ;;  %3267 = vmax.xlane.f32.xlu1 %v3266_v46 }
 0xda9   : > { %v3195_v39 = vpop.f32.mrf.mxu1 }
 0xdaa   : > { %v3239_v17 = vpop.f32.mrf.mxu3 }
 0xdab   : > { %v3250_v43 = vmul.f32 0.35355338, %v3239_v17 }
 0xdad   : > { %3261 = vmax.xlane.f32.xlu1 %v3260_v40  ;;  %v3272_v25 = vsel %vm479_vm3, %v3250_v43, -inf }
 0xdae   : > { %3273 = vmax.xlane.f32.xlu0 %v3272_v25 }
 0xdb2   : > { %v3241_v50 = vpop.f32.mrf.mxu3 }
 0xdb3   : > { %v3586_v50 = vsel %vm479_vm3, %v6344_v60, 0 }
 0xdb5   : > { %3270 = vmax.xlane.f32.xlu1 %v3269_v51 }
 0xdbd   : > { %3626 = vrot.lane.b32.xlu2 %v6097_v55, %s5274_s11 }
 0xdda   : > { %v3253_v52 = vpop.xlane.xlu0 %3252 }
 0xddb   : > { %v3275_v53 = vsub.f32 %v3243_v41, %v3253_v52 }
 0xddd   : > { %v3283_v54 = vmul.f32 1.442695, %v3275_v53 }
 0xddf   : > { %5165 = vpow2.f32 %v3283_v54 }
 0xde5   : > { %v6334_v56 = vpop.eup %5165 }
 0xde6   : > { %v3299_v26 = vsel %vm479_vm3, %v6334_v56, 0.0 }
 0xde7   : > { %3300 = vadd.xlane.f32.xlu1 %v3299_v26 }
 0xded   : > { %v3558_v45 = vpop.permute.xlu0 %3557 }
 0xdee   : > { %v3563_v35 = vsel %vm479_vm3, %v3558_v45, 0 }
 0xe00   : > { %3555 = vrot.lane.b32.xlu1 %v6085_v1, %s5275_s12 }
 0xe08   : > { %v3256_v4 = vpop.xlane.xlu2 %3255  ;;  %3718 = vrot.lane.b32.xlu1 %v6119_v44, %s5274_s11 }
 0xe09   : > { %v3276_v59 = vsub.f32 %v3244_v15, %v3256_v4 }
 0xe0b   : > { %v3285_v61 = vmul.f32 1.442695, %v3276_v59 }
 0xe0d   : > { %5167 = vpow2.f32 %v3285_v61 }
 0xe10   : > { %v3265_v62 = vpop.xlane.xlu2 %3264 }
 0xe11   : > { %v3279_v63 = vsub.f32 %v3247_v19, %v3265_v62 }
 0xe13   : > { %v6346_v47 = vpop.eup %5167  ;;  %v3291_v3 = vmul.f32 1.442695, %v3279_v63  ;;  %v3609_v63 = vsel %vm479_vm3, %v6340_v57, 0 }
 0xe14   : > { %v3302_v8 = vsel %vm479_vm3, %v6346_v47, 0.0 }
 0xe15   : > { %5169 = vpow2.f32 %v3291_v3  ;;  %3303 = vadd.xlane.f32.xlu0 %v3302_v8 }
 0xe18   : > { %v3259_v27 = vpop.xlane.xlu2 %3258  ;;  %v3268_v22 = vpop.xlane.xlu1 %3267 }
 0xe19   : > { %v3277_v16 = vsub.f32 %v3245_v31, %v3259_v27  ;;  %v3280_v30 = vsub.f32 %v3248_v5, %v3268_v22 }
 0xe1b   : > { %v6350_v41 = vpop.eup %5169  ;;  %v3287_v18 = vmul.f32 1.442695, %v3277_v16  ;;  %v3293_v34 = vmul.f32 1.442695, %v3280_v30 }
 0xe1c   : > { %v3311_v29 = vsel %vm479_vm3, %v6350_v41, 0.0 }
 0xe1d   : > { %5171 = vpow2.f32 %v3287_v18  ;;  %3312 = vadd.xlane.f32.xlu2 %v3311_v29 }
 0xe1e   : > { %5173 = vpow2.f32 %v3293_v34 }
 0xe20   : > { %v3262_v10 = vpop.xlane.xlu1 %3261  ;;  %v3627_v39 = vpop.permute.xlu2 %3626 }
 0xe21   : > { %v3278_v24 = vsub.f32 %v3246_v58, %v3262_v10  ;;  %v3274_v14 = vpop.xlane.xlu0 %3273  ;;  %v3632_v18 = vsel %vm479_vm3, %v3627_v39, 0 }
 0xe22   : > { %v3282_v6 = vsub.f32 %v3250_v43, %v3274_v14 }
 0xe23   : > { %v6354_v9 = vpop.eup %5171  ;;  %v3289_v2 = vmul.f32 1.442695, %v3278_v24 }
 0xe24   : > { %v3297_v36 = vmul.f32 1.442695, %v3282_v6  ;;  %v3305_v13 = vsel %vm479_vm3, %v6354_v9, 0.0  ;;  %v6358_v15 = vpop.eup %5173 }
 0xe25   : > { %5175 = vpow2.f32 %v3289_v2  ;;  %3306 = vadd.xlane.f32.xlu0 %v3305_v13  ;;  %v3314_v7 = vsel %vm479_vm3, %v6358_v15, 0.0 }
 0xe26   : > { %5177 = vpow2.f32 %v3297_v36 }
 0xe28   : > { %v3271_v21 = vpop.xlane.xlu1 %3270 }
 0xe29   : > { %v3281_v33 = vsub.f32 %v6328_v49, %v3271_v21 }
 0xe2b   : > { %v6360_v12 = vpop.eup %5175  ;;  %v3295_v32 = vmul.f32 1.442695, %v3281_v33 }
 0xe2c   : > { %v3308_v19 = vsel %vm479_vm3, %v6360_v12, 0.0  ;;  %v6366_v20 = vpop.eup %5177 }
 0xe2d   : > { %3315 = vadd.xlane.f32.xlu0 %v3314_v7  ;;  %3309 = vadd.xlane.f32.xlu2 %v3308_v19  ;;  %v3320_v48 = vsel %vm479_vm3, %v6366_v20, 0.0 }
 0xe32   : > { %3321 = vadd.xlane.f32.xlu1 %v3320_v48 }
 0xe41   : > { %3624 = vrot.lane.b32.xlu0 %v6097_v55, %s5275_s12 }
 0xe45   : > { %3601 = vrot.lane.b32.xlu2 %v6093_v11, %s5275_s12 }
 0xe49   : > { %3695 = vrot.lane.b32.xlu0 %v6115_v37, %s5274_s11 }
 0xe4b   : > { %3693 = vrot.lane.b32.xlu1 %v6115_v37, %s5275_s12 }
 0xe4d   : > { %3578 = vrot.lane.b32.xlu2 %v6089_v38, %s5275_s12 }
 0xe53   : > { %3670 = vrot.lane.b32.xlu1 %v6105_v23, %s5275_s12 }
 0xe55   : > { %3649 = vrot.lane.b32.xlu2 %v6101_v28, %s5274_s11 }
 0xe5a   : > { %v3301_v0 = vpop.xlane.xlu1 %3300 }
 0xe5b   : > { %5179 = vrcp.f32 %v3301_v0  ;;  %3843 = vrot.lane.b32.xlu1 %v6085_v1, %s5276_s15 }
 0xe5c   : > { %5181 = vpow2.f32 %v3295_v32 }
 0xe5d   : > { %3716 = vrot.lane.b32.xlu2 %v6119_v44, %s5275_s12 }
 0xe61   : > { %v5180_v31 = vpop.eup %5179 }
 0xe62   : > { %v3331_v5 = vmul.f32 %v5180_v31, %v6334_v56  ;;  %v6400_v46 = vpop.eup %5181 }
 0xe63   : > { %3906 = vrot.lane.b32.xlu1 %v6097_v55, %s5276_s15  ;;  %v3317_v58 = vsel %vm479_vm3, %v6400_v46, 0.0 }
 0xe64   : > { %v3339_v42 = vpack.c.bf16 %v3331_v5, %v3331_v5 }
 0xe65   : > { %3864 = vrot.lane.b32.xlu2 %v6089_v38, %s5276_s15 }
 0xe66   : > { %4893 = vmatmul.msk.bf16.vlgmr.msrb.gmra.mxu0 %vm479_vm3, %v3339_v42 }
 0xe67   : > { %3572 = vmatpush.bf16.xpose.msrb.mxu0 %v3563_v35 }
 0xe6b   : > { %3948 = vrot.lane.b32.xlu1 %v6105_v23, %s5276_s15 }
 0xe6d   : > { %3927 = vrot.lane.b32.xlu2 %v6101_v28, %s5276_s15 }
 0xe72   : > { %v3556_v52 = vpop.permute.xlu1 %3555 }
 0xe73   : > { %3318 = vadd.xlane.f32.xlu0 %v3317_v58  ;;  %4076 = vrot.lane.b32.xlu1 %v6089_v38, %s5277_s16 }
 0xe75   : > { %3990 = vrot.lane.b32.xlu2 %v6119_v44, %s5276_s15 }
 0xe7a   : > { %v3719_v60 = vpop.permute.xlu1 %3718 }
 0xe7b   : > { %v3724_v14 = vsel %vm479_vm3, %v3719_v60, 0 }
 0xe87   : > { %3672 = vrot.lane.b32.xlu0 %v6105_v23, %s5274_s11 }
 0xe88   : > { %v3304_v17 = vpop.xlane.xlu0 %3303 }
 0xe89   : > { %5183 = vrcp.f32 %v3304_v17 }
 0xe8f   : > { %v5184_v43 = vpop.eup %5183  ;;  %3647 = vrot.lane.b32.xlu0 %v6101_v28, %s5275_s12 }
 0xe90   : > { %v3332_v40 = vmul.f32 %v5184_v43, %v6346_v47  ;;  %v3313_v25 = vpop.xlane.xlu2 %3312 }
 0xe91   : > { %5185 = vrcp.f32 %v3313_v25 }
 0xe92   : > { %v3340_v49 = vpack.c.bf16 %v3332_v40, %v3332_v40 }
 0xe94   : > { %4894 = vmatmul.msk.bf16.vlgmr.msra.gmra.mxu1 %vm479_vm3, %v3340_v49 }
 0xe95   : > { %3595 = vmatpush.bf16.xpose.msra.mxu1 %v3586_v50 }
 0xe97   : > { %v5186_v51 = vpop.eup %5185  ;;  %3885 = vrot.lane.b32.xlu0 %v6093_v11, %s5276_s15 }
 0xe98   : > { %v3335_v53 = vmul.f32 %v5186_v51, %v6350_v41  ;;  %v3307_v54 = vpop.xlane.xlu0 %3306 }
 0xe99   : > { %5187 = vrcp.f32 %v3307_v54 }
 0xe9a   : > { %v3343_v56 = vpack.c.bf16 %v3335_v53, %v3335_v53 }
 0xe9c   : > { %4897 = vmatmul.msk.bf16.vlgmr.msra.gmra.mxu0 %vm479_vm3, %v3343_v56 }
 0xe9f   : > { %v5188_v26 = vpop.eup %5187  ;;  %3969 = vrot.lane.b32.xlu0 %v6115_v37, %s5276_s15 }
 0xea0   : > { %v3333_v4 = vmul.f32 %v5188_v26, %v6354_v9  ;;  %v3310_v59 = vpop.xlane.xlu2 %3309  ;;  %v3316_v61 = vpop.xlane.xlu0 %3315 }
 0xea1   : > { %5189 = vrcp.f32 %v3310_v59 }
 0xea2   : > { %v3341_v62 = vpack.c.bf16 %v3333_v4, %v3333_v4  ;;  %5191 = vrcp.f32 %v3316_v61 }
 0xea4   : > { %4895 = vmatmul.msk.bf16.vlgmr.msrb.gmra.mxu2 %vm479_vm3, %v3341_v62 }
 0xea5   : > { %3618 = vmatpush.bf16.xpose.msrb.mxu2 %v3609_v63  ;;  %v3322_v16 = vpop.xlane.xlu1 %3321 }
 0xea6   : > { %5193 = vrcp.f32 %v3322_v16 }
 0xea7   : > { %v5190_v47 = vpop.eup %5189  ;;  %4053 = vrot.lane.b32.xlu0 %v6085_v1, %s5277_s16 }
 0xea8   : > { %v5192_v3 = vpop.eup %5191  ;;  %v3334_v8 = vmul.f32 %v5190_v47, %v6360_v12  ;;  %v3602_v27 = vpop.permute.xlu2 %3601 }
 0xea9   : > { %v3336_v22 = vmul.f32 %v5192_v3, %v6358_v15 }
 0xeaa   : > { %v3342_v45 = vpack.c.bf16 %v3334_v8, %v3334_v8 }
 0xeab   : > { %v3344_v41 = vpack.c.bf16 %v3336_v22, %v3336_v22 }
 0xeac   : > { %4896 = vmatmul.msk.bf16.vlgmr.msra.gmra.mxu3 %vm479_vm3, %v3342_v45  ;;  %4901 = vmatmul.msk.bf16.vlgmr.msrb.gmra.mxu0 %vm479_vm3, %v3556_v52  ;;  %v5194_v30 = vpop.eup %5193 }
 0xead   : > { %4898 = vmatmul.msk.bf16.vlgmr.msrb.gmra.mxu1 %vm479_vm3, %v3344_v41  ;;  %3641 = vmatpush.bf16.xpose.msra.mxu3 %v3632_v18  ;;  %v3338_v29 = vmul.f32 %v5194_v30, %v6366_v20 }
 0xeaf   : > { %v3346_v24 = vpack.c.bf16 %v3338_v29, %v3338_v29 }
 0xeb0   : > { %v3579_v57 = vpop.permute.xlu2 %3578 }
 0xeb3   : > { %v3625_v13 = vpop.permute.xlu0 %3624 }
 0xeb8   : > { %v3650_v34 = vpop.permute.xlu2 %3649 }
 0xeb9   : > { %v3655_v10 = vsel %vm479_vm3, %v3650_v34, 0 }
 0xeba   : > { %3664 = vmatpush.bf16.xpose.msra.mxu0 %v3655_v10 }
 0xebb   : > { %v3696_v0 = vpop.permute.xlu0 %3695 }
 0xebc   : > { %4900 = vmatmul.msk.bf16.vlgmr.msrb.gmra.mxu3 %vm479_vm3, %v3346_v24  ;;  %v3701_v58 = vsel %vm479_vm3, %v3696_v0, 0 }
 0xebd   : > { %4902 = vmatmul.msk.bf16.vlgmr.msra.gmra.mxu1 %vm479_vm3, %v3579_v57  ;;  %3733 = vmatpush.bf16.xpose.msrb.mxu3 %v3724_v14  ;;  %v3694_v6 = vpop.permute.xlu1 %3693 }
 0xec0   : > { %v3717_v9 = vpop.permute.xlu2 %3716 }
 0xec5   : > { %v3671_v2 = vpop.permute.xlu1 %3670 }
 0xec8   : > { %v3865_v36 = vpop.permute.xlu2 %3864 }
 0xec9   : > { %v3870_v43 = vsel %vm776_vm4, %v3865_v36, 0 }
 0xecc   : > { %4904 = vmatmul.msk.bf16.vlgmr.msra.gmra.mxu3 %vm479_vm3, %v3625_v13 }
 0xecd   : > { %v3844_v15 = vpop.permute.xlu1 %3843 }
 0xece   : > { %v3849_v12 = vsel %vm776_vm4, %v3844_v15, 0 }
 0xecf   : > { %3858 = vmatpush.bf16.msrb.mxu0 %v3849_v12 }
 0xed0   : > { %v3928_v7 = vpop.permute.xlu2 %3927 }
 0xed1   : > { %v3933_v49 = vsel %vm776_vm4, %v3928_v7, 0 }
 0xed5   : > { %v3907_v19 = vpop.permute.xlu1 %3906 }
 0xed6   : > { %v3912_v20 = vsel %vm776_vm4, %v3907_v19, 0 }
 0xed7   : > { %3921 = vmatpush.bf16.msra.mxu3 %v3912_v20 }
 0xed8   : > { %v3991_v48 = vpop.permute.xlu2 %3990 }
 0xed9   : > { %v3996_v21 = vsel %vm776_vm4, %v3991_v48, 0 }
 0xedc   : > { %4908 = vmatmul.msk.bf16.vlgmr.msrb.gmra.mxu3 %vm479_vm3, %v3717_v9 }
 0xedd   : > { %4005 = vmatpush.bf16.msrb.mxu3 %v3996_v21  ;;  %v3949_v40 = vpop.permute.xlu1 %3948 }
 0xee3   : > { %v6444_v31 = vpop.f32.mrf.mxu0 }
 0xee6   : > { %v3319_v33 = vpop.xlane.xlu0 %3318 }
 0xee7   : > { %5195 = vrcp.f32 %v3319_v33 }
 0xeeb   : > { %v3366_v5 = vpop.f32.mrf.mxu0 }
 0xeed   : > { %v5196_v42 = vpop.eup %5195 }
 0xeee   : > { %v3337_v32 = vmul.f32 %v5196_v42, %v6400_v46  ;;  %v3954_v46 = vsel %vm776_vm4, %v3949_v40, 0 }
 0xef0   : > { %v3345_v35 = vpack.c.bf16 %v3337_v32, %v3337_v32 }
 0xef2   : > { %4899 = vmatmul.msk.bf16.vlgmr.msra.gmra.mxu2 %vm479_vm3, %v3345_v35 }
 0xef3   : > { %3710 = vmatpush.bf16.xpose.msra.mxu2 %v3701_v58 }
 0xef9   : > { %v3673_v39 = vpop.permute.xlu0 %3672 }
 0xefa   : > { %v3678_v17 = vsel %vm479_vm3, %v3673_v39, 0 }
 0xefb   : > { %3687 = vmatpush.bf16.xpose.msrb.mxu1 %v3678_v17 }
 0xf01   : > { %v3648_v25 = vpop.permute.xlu0 %3647 }
 0xf02   : > { %4903 = vmatmul.msk.bf16.vlgmr.msrb.gmra.mxu2 %vm479_vm3, %v3602_v27  ;;  %4905 = vmatmul.msk.bf16.vlgmr.msra.gmra.mxu0 %vm479_vm3, %v3648_v25 }
 0xf03   : > { %3879 = vmatpush.bf16.msra.mxu1 %v3870_v43  ;;  %3942 = vmatpush.bf16.msra.mxu0 %v3933_v49 }
 0xf04   : > { %4906 = vmatmul.msk.bf16.vlgmr.msrb.gmra.mxu1 %vm479_vm3, %v3671_v2 }
 0xf07   : > { %3963 = vmatpush.bf16.msrb.mxu1 %v3954_v46 }
 0xf09   : > { %v3886_v50 = vpop.permute.xlu0 %3885 }
 0xf0a   : > { %v3891_v51 = vsel %vm776_vm4, %v3886_v50, 0 }
 0xf0b   : > { %3900 = vmatpush.bf16.msrb.mxu2 %v3891_v51 }
 0xf11   : > { %v6457_v52 = vpop.f32.mrf.mxu1  ;;  %v3970_v53 = vpop.permute.xlu0 %3969 }
 0xf12   : > { %v3975_v54 = vsel %vm776_vm4, %v3970_v53, 0  ;;  %4907 = vmatmul.msk.bf16.vlgmr.msra.gmra.mxu2 %vm479_vm3, %v3694_v6 }
 0xf13   : > { %3984 = vmatpush.bf16.msra.mxu2 %v3975_v54 }
 0xf19   : > { %v3387_v56 = vpop.f32.mrf.mxu1  ;;  %v6461_v26 = vpop.f32.mrf.mxu0 }
 0xf1a   : > { %v6489_v46 = vpop.permute.xlu0 %4053 }
 0xf21   : > { %v3450_v4 = vpop.f32.mrf.mxu0 }
 0xf27   : > { %v6463_v59 = vpop.f32.mrf.mxu2 }
 0xf29   : > { %v3574_v61 = vpop.f32.mrf.mxu0 }
 0xf2a   : > { %v6465_v60 = vpop.f32.mrf.mxu1  ;;  %v3739_v62 = vmul.f32 0.35355338, %v3574_v61  ;;  %v6497_v61 = vpop.permute.xlu1 %4076 }
 0xf2c   : > { %v3747_v63 = vsel %vm479_vm3, %v3739_v62, -inf }
 0xf2d   : > { %3748 = vmax.xlane.f32.xlu2 %v3747_v63 }
 0xf2f   : > { %v3408_v47 = vpop.f32.mrf.mxu2  ;;  %v6468_v3 = vpop.f32.mrf.mxu3 }
 0xf31   : > { %v3576_v8 = vpop.f32.mrf.mxu0 }
 0xf32   : > { %v3471_v27 = vpop.f32.mrf.mxu1 }
 0xf37   : > { %v3429_v22 = vpop.f32.mrf.mxu3 }
 0xf3a   : > { %v3597_v45 = vpop.f32.mrf.mxu1 }
 0xf3b   : > { %v3740_v16 = vmul.f32 0.35355338, %v3597_v45 }
 0xf3d   : > { %v3750_v41 = vsel %vm479_vm3, %v3740_v16, -inf }
 0xf3e   : > { %3751 = vmax.xlane.f32.xlu0 %v3750_v41 }
 0xf3f   : > { %v6471_v18 = vpop.f32.mrf.mxu3 }
 0xf42   : > { %v3599_v57 = vpop.f32.mrf.mxu1 }
 0xf47   : > { %v3513_v30 = vpop.f32.mrf.mxu3 }
 0xf4f   : > { %v3643_v29 = vpop.f32.mrf.mxu3 }
 0xf50   : > { %v3742_v19 = vmul.f32 0.35355338, %v3643_v29 }
 0xf52   : > { %v3756_v33 = vsel %vm479_vm3, %v3742_v19, -inf }
 0xf57   : > { %v3645_v34 = vpop.f32.mrf.mxu3 }
 0xf5f   : > { %v3735_v10 = vpop.f32.mrf.mxu3 }
 0xf60   : > { %v3746_v42 = vmul.f32 0.35355338, %v3735_v10 }
 0xf62   : > { %v3768_v32 = vsel %vm479_vm3, %v3746_v42, -inf }
 0xf67   : > { %v3737_v24 = vpop.f32.mrf.mxu3 }
 0xf75   : > { %v6473_v14 = vpop.f32.mrf.mxu2 }
 0xf7d   : > { %v3492_v6 = vpop.f32.mrf.mxu2 }
 0xf7f   : > { %v3666_v9 = vpop.f32.mrf.mxu0 }
 0xf80   : > { %v3743_v2 = vmul.f32 0.35355338, %v3666_v9 }
 0xf81   : > { %v3689_v36 = vpop.f32.mrf.mxu1 }
 0xf82   : > { %v3744_v13 = vmul.f32 0.35355338, %v3689_v36  ;;  %v3759_v15 = vsel %vm479_vm3, %v3743_v2, -inf }
 0xf83   : > { %3760 = vmax.xlane.f32.xlu2 %v3759_v15 }
 0xf84   : > { %v3762_v12 = vsel %vm479_vm3, %v3744_v13, -inf }
 0xf85   : > { %3763 = vmax.xlane.f32.xlu0 %v3762_v12  ;;  %v3620_v7 = vpop.f32.mrf.mxu2 }
 0xf86   : > { %v3741_v20 = vmul.f32 0.35355338, %v3620_v7 }
 0xf87   : > { %v3668_v48 = vpop.f32.mrf.mxu0 }
 0xf88   : > { %v3753_v0 = vsel %vm479_vm3, %v3741_v20, -inf }
 0xf89   : > { %v3691_v21 = vpop.f32.mrf.mxu1  ;;  %3754 = vmax.xlane.f32.xlu1 %v3753_v0 }
 0xf8b   : > { %3757 = vmax.xlane.f32.xlu2 %v3756_v33 }
 0xf8d   : > { %v3622_v5 = vpop.f32.mrf.mxu2 }
 0xf93   : > { %3769 = vmax.xlane.f32.xlu2 %v3768_v32 }
 0xf95   : > { %v3712_v35 = vpop.f32.mrf.mxu2 }
 0xf96   : > { %v3745_v58 = vmul.f32 0.35355338, %v3712_v35 }
 0xf98   : > { %v3765_v39 = vsel %vm479_vm3, %v3745_v58, -inf }
 0xf99   : > { %4122 = vrot.lane.b32.xlu0 %v6097_v55, %s5277_s16  ;;  %3766 = vmax.xlane.f32.xlu1 %v3765_v39 }
 0xf9d   : > { %v3714_v17 = vpop.f32.mrf.mxu2 }
 0xf9e   : > { %v4059_v17 = vsel %vm479_vm3, %v6489_v46, 0 }
 0xfa0   : > { %v3749_v43 = vpop.xlane.xlu2 %3748 }
 0xfa1   : > { %v3771_v40 = vsub.f32 %v3739_v62, %v3749_v43 }
 0xfa3   : > { %v3779_v25 = vmul.f32 1.442695, %v3771_v40 }
 0xfa5   : > { %5197 = vpow2.f32 %v3779_v25 }
 0xfab   : > { %4099 = vrot.lane.b32.xlu2 %v6093_v11, %s5277_s16  ;;  %v6487_v49 = vpop.eup %5197 }
 0xfac   : > { %v3795_v50 = vsel %vm479_vm3, %v6487_v49, 0.0 }
 0xfb1   : > { %v3752_v51 = vpop.xlane.xlu0 %3751 }
 0xfb2   : > { %4051 = vrot.lane.b32.xlu1 %v6085_v1, %s5278_s17  ;;  %v3772_v53 = vsub.f32 %v3740_v16, %v3752_v51  ;;  %v4082_v51 = vsel %vm479_vm3, %v6497_v61, 0 }
 0xfb4   : > { %v3781_v54 = vmul.f32 1.442695, %v3772_v53 }
 0xfb6   : > { %5199 = vpow2.f32 %v3781_v54 }
 0xfbc   : > { %v6493_v56 = vpop.eup %5199 }
 0xfbd   : > { %v3798_v4 = vsel %vm479_vm3, %v6493_v56, 0.0 }
 0xfc3   : > { %3796 = vadd.xlane.f32.xlu0 %v3795_v50 }
 0xfdc   : > { %3799 = vadd.xlane.f32.xlu1 %v3798_v4 }
 0xff6   : > { %v3761_v62 = vpop.xlane.xlu2 %3760 }
 0xff7   : > { %v3775_v63 = vsub.f32 %v3743_v2, %v3761_v62 }
 0xff8   : > { %v3764_v47 = vpop.xlane.xlu0 %3763 }
 0xff9   : > { %v3776_v8 = vsub.f32 %v3744_v13, %v3764_v47  ;;  %v3787_v27 = vmul.f32 1.442695, %v3775_v63 }
 0xffb   : > { %v3789_v22 = vmul.f32 1.442695, %v3776_v8  ;;  %5201 = vpow2.f32 %v3787_v27 }
 0xffc   : > { %v3755_v45 = vpop.xlane.xlu1 %3754 }
 0xffd   : > { %5203 = vpow2.f32 %v3789_v22  ;;  %v3773_v16 = vsub.f32 %v3741_v20, %v3755_v45 }
 0xffe   : > { %v3758_v41 = vpop.xlane.xlu2 %3757 }
 0xfff   : > { %v3783_v57 = vmul.f32 1.442695, %v3773_v16  ;;  %v3774_v30 = vsub.f32 %v3742_v19, %v3758_v41 }
0x1001   : > { %v6499_v29 = vpop.eup %5201  ;;  %v3785_v34 = vmul.f32 1.442695, %v3774_v30  ;;  %5205 = vpow2.f32 %v3783_v57 }
0x1002   : > { %v3807_v24 = vsel %vm479_vm3, %v6499_v29, 0.0 }
0x1003   : > { %v6501_v10 = vpop.eup %5203  ;;  %5207 = vpow2.f32 %v3785_v34  ;;  %3808 = vadd.xlane.f32.xlu0 %v3807_v24 }
0x1004   : > { %v3810_v6 = vsel %vm479_vm3, %v6501_v10, 0.0 }
0x1005   : > { %3811 = vadd.xlane.f32.xlu2 %v3810_v6 }
0x1006   : > { %v3770_v9 = vpop.xlane.xlu2 %3769 }
0x1007   : > { %v3778_v2 = vsub.f32 %v3746_v42, %v3770_v9  ;;  %v6507_v36 = vpop.eup %5205 }
0x1008   : > { %v3801_v7 = vsel %vm479_vm3, %v6507_v36, 0.0 }
0x1009   : > { %v6509_v13 = vpop.eup %5207  ;;  %v3793_v15 = vmul.f32 1.442695, %v3778_v2 }
0x100a   : > { %v3804_v12 = vsel %vm479_vm3, %v6509_v13, 0.0 }
0x100b   : > { %5209 = vpow2.f32 %v3793_v15  ;;  %3805 = vadd.xlane.f32.xlu0 %v3804_v12  ;;  %v4123_v42 = vpop.permute.xlu0 %4122 }
0x100c   : > { %v3767_v19 = vpop.xlane.xlu1 %3766 }
0x100d   : > { %3802 = vadd.xlane.f32.xlu2 %v3801_v7  ;;  %v3777_v20 = vsub.f32 %v3745_v58, %v3767_v19 }
0x100e   : > { %v4100_v46 = vpop.permute.xlu2 %4099 }
0x100f   : > { %v3791_v48 = vmul.f32 1.442695, %v3777_v20  ;;  %v4105_v24 = vsel %vm479_vm3, %v4100_v46, 0 }
0x1011   : > { %v6515_v21 = vpop.eup %5209  ;;  %5211 = vpow2.f32 %v3791_v48 }
0x1012   : > { %v3816_v0 = vsel %vm479_vm3, %v6515_v21, 0.0 }
0x1013   : > { %3817 = vadd.xlane.f32.xlu0 %v3816_v0 }
0x1017   : > { %v6519_v33 = vpop.eup %5211 }
0x1018   : > { %v3813_v5 = vsel %vm479_vm3, %v6519_v33, 0.0 }
0x1019   : > { %3814 = vadd.xlane.f32.xlu1 %v3813_v5 }
0x1024   : > { %v4052_v43 = vpop.permute.xlu1 %4051 }
0x1025   : > { %4074 = vrot.lane.b32.xlu2 %v6089_v38, %s5278_s17 }
0x1027   : > { %4097 = vrot.lane.b32.xlu0 %v6093_v11, %s5278_s17 }
0x102d   : > { %4145 = vrot.lane.b32.xlu2 %v6101_v28, %s5277_s16 }
0x102f   : > { %4168 = vrot.lane.b32.xlu0 %v6105_v23, %s5277_s16 }
0x1032   : > { %4120 = vrot.lane.b32.xlu1 %v6097_v55, %s5278_s17 }
0x1035   : > { %4214 = vrot.lane.b32.xlu2 %v6119_v44, %s5277_s16 }
0x1036   : > { %v3797_v32 = vpop.xlane.xlu0 %3796 }
0x1037   : > { %5213 = vrcp.f32 %v3797_v32  ;;  %4143 = vrot.lane.b32.xlu0 %v6101_v28, %s5278_s17 }
0x103a   : > { %4191 = vrot.lane.b32.xlu1 %v6115_v37, %s5277_s16 }
0x103d   : > { %v5214_v35 = vpop.eup %5213  ;;  %4189 = vrot.lane.b32.xlu2 %v6115_v37, %s5278_s17 }
0x103e   : > { %v3827_v58 = vmul.f32 %v5214_v35, %v6487_v49 }
0x103f   : > { %4212 = vrot.lane.b32.xlu0 %v6119_v44, %s5278_s17 }
0x1040   : > { %v3835_v39 = vpack.c.bf16 %v3827_v58, %v3827_v58 }
0x1042   : > { %4909 = vmatmul.msk.bf16.vlgmr.msrb.gmra.mxu0 %vm479_vm3, %v3835_v39  ;;  %4166 = vrot.lane.b32.xlu1 %v6105_v23, %s5278_s17 }
0x1043   : > { %4068 = vmatpush.bf16.xpose.msrb.mxu0 %v4059_v17 }
0x104f   : > { %v3800_v40 = vpop.xlane.xlu1 %3799 }
0x1050   : > { %5215 = vrcp.f32 %v3800_v40 }
0x1056   : > { %v5216_v25 = vpop.eup %5215 }
0x1057   : > { %v3828_v50 = vmul.f32 %v5216_v25, %v6493_v56 }
0x1059   : > { %v3836_v49 = vpack.c.bf16 %v3828_v50, %v3828_v50 }
0x105b   : > { %4910 = vmatmul.msk.bf16.vlgmr.msra.gmra.mxu1 %vm479_vm3, %v3836_v49 }
0x105c   : > { %4091 = vmatpush.bf16.xpose.msra.mxu1 %v4082_v51 }
0x1076   : > { %v3809_v53 = vpop.xlane.xlu0 %3808 }
0x1077   : > { %5217 = vrcp.f32 %v3809_v53 }
0x1078   : > { %v3812_v54 = vpop.xlane.xlu2 %3811 }
0x1079   : > { %5219 = vrcp.f32 %v3812_v54 }
0x107d   : > { %v5218_v4 = vpop.eup %5217 }
0x107e   : > { %v3831_v63 = vmul.f32 %v5218_v4, %v6499_v29  ;;  %v3806_v47 = vpop.xlane.xlu0 %3805 }
0x107f   : > { %v5220_v62 = vpop.eup %5219  ;;  %5221 = vrcp.f32 %v3806_v47 }
0x1080   : > { %v3832_v8 = vmul.f32 %v5220_v62, %v6501_v10  ;;  %v3803_v56 = vpop.xlane.xlu2 %3802  ;;  %v3839_v27 = vpack.c.bf16 %v3831_v63, %v3831_v63  ;;  %v4128_v10 = vsel %vm479_vm3, %v4123_v42, 0 }
0x1081   : > { %5223 = vrcp.f32 %v3803_v56 }
0x1082   : > { %v3840_v61 = vpack.c.bf16 %v3832_v8, %v3832_v8  ;;  %4913 = vmatmul.msk.bf16.vlgmr.msra.gmra.mxu0 %vm479_vm3, %v3839_v27 }
0x1084   : > { %4914 = vmatmul.msk.bf16.vlgmr.msrb.gmra.mxu1 %vm479_vm3, %v3840_v61 }
0x1085   : > { %v5222_v22 = vpop.eup %5221 }
0x1086   : > { %v3830_v16 = vmul.f32 %v5222_v22, %v6509_v13  ;;  %v3818_v29 = vpop.xlane.xlu0 %3817 }
0x1087   : > { %v5224_v45 = vpop.eup %5223  ;;  %5225 = vrcp.f32 %v3818_v29 }
0x1088   : > { %v3829_v41 = vmul.f32 %v5224_v45, %v6507_v36  ;;  %v4075_v57 = vpop.permute.xlu2 %4074  ;;  %v3838_v30 = vpack.c.bf16 %v3830_v16, %v3830_v16 }
0x108a   : > { %v3837_v34 = vpack.c.bf16 %v3829_v41, %v3829_v41  ;;  %4912 = vmatmul.msk.bf16.vlgmr.msra.gmra.mxu3 %vm479_vm3, %v3838_v30 }
0x108b   : > { %4137 = vmatpush.bf16.xpose.msra.mxu3 %v4128_v10 }
0x108c   : > { %4911 = vmatmul.msk.bf16.vlgmr.msrb.gmra.mxu2 %vm479_vm3, %v3837_v34  ;;  %v3815_v6 = vpop.xlane.xlu1 %3814 }
0x108d   : > { %4114 = vmatpush.bf16.xpose.msrb.mxu2 %v4105_v24  ;;  %5227 = vrcp.f32 %v3815_v6  ;;  %v5226_v36 = vpop.eup %5225 }
0x108e   : > { %v3834_v15 = vmul.f32 %v5226_v36, %v6515_v21 }
0x1090   : > { %v4146_v9 = vpop.permute.xlu2 %4145  ;;  %v3842_v19 = vpack.c.bf16 %v3834_v15, %v3834_v15 }
0x1091   : > { %v4151_v2 = vsel %vm479_vm3, %v4146_v9, 0 }
0x1092   : > { %4160 = vmatpush.bf16.xpose.msra.mxu0 %v4151_v2 }
0x1093   : > { %4917 = vmatmul.msk.bf16.vlgmr.msrb.gmra.mxu0 %vm479_vm3, %v4052_v43  ;;  %v5228_v13 = vpop.eup %5227 }
0x1094   : > { %4918 = vmatmul.msk.bf16.vlgmr.msra.gmra.mxu1 %vm479_vm3, %v4075_v57  ;;  %v3833_v12 = vmul.f32 %v5228_v13, %v6519_v33 }
0x1096   : > { %v3841_v20 = vpack.c.bf16 %v3833_v12, %v3833_v12 }
0x1098   : > { %v4215_v7 = vpop.permute.xlu2 %4214 }
0x1099   : > { %v4098_v48 = vpop.permute.xlu0 %4097  ;;  %v4220_v0 = vsel %vm479_vm3, %v4215_v7, 0 }
0x109a   : > { %4916 = vmatmul.msk.bf16.vlgmr.msrb.gmra.mxu3 %vm479_vm3, %v3842_v19 }
0x109b   : > { %4229 = vmatpush.bf16.xpose.msrb.mxu3 %v4220_v0 }
0x109c   : > { %4915 = vmatmul.msk.bf16.vlgmr.msra.gmra.mxu2 %vm479_vm3, %v3841_v20 }
0x10a0   : > { %v4190_v17 = vpop.permute.xlu2 %4189 }
0x10a1   : > { %v4169_v5 = vpop.permute.xlu0 %4168 }
0x10a2   : > { %v4174_v42 = vsel %vm479_vm3, %v4169_v5, 0 }
0x10a3   : > { %4183 = vmatpush.bf16.xpose.msrb.mxu1 %v4174_v42 }
0x10a4   : > { %v4121_v32 = vpop.permute.xlu1 %4120 }
0x10a9   : > { %v4144_v35 = vpop.permute.xlu0 %4143 }
0x10aa   : > { %4920 = vmatmul.msk.bf16.vlgmr.msra.gmra.mxu3 %vm479_vm3, %v4121_v32  ;;  %4921 = vmatmul.msk.bf16.vlgmr.msra.gmra.mxu0 %vm479_vm3, %v4144_v35 }
0x10ac   : > { %4919 = vmatmul.msk.bf16.vlgmr.msrb.gmra.mxu2 %vm479_vm3, %v4098_v48  ;;  %v4192_v21 = vpop.permute.xlu1 %4191 }
0x10ad   : > { %v4197_v33 = vsel %vm479_vm3, %v4192_v21, 0 }
0x10ae   : > { %4206 = vmatpush.bf16.xpose.msra.mxu2 %v4197_v33 }
0x10b1   : > { %v4213_v39 = vpop.permute.xlu0 %4212 }
0x10b4   : > { %v4167_v58 = vpop.permute.xlu1 %4166 }
0x10b5   : > { %4922 = vmatmul.msk.bf16.vlgmr.msrb.gmra.mxu1 %vm479_vm3, %v4167_v58 }
0x10ba   : > { %4924 = vmatmul.msk.bf16.vlgmr.msrb.gmra.mxu3 %vm479_vm3, %v4213_v39 }
0x10bc   : > { %4923 = vmatmul.msk.bf16.vlgmr.msra.gmra.mxu2 %vm479_vm3, %v4190_v17 }
0x10bf   : > { %v6579_v43 = vpop.f32.mrf.mxu0 }
0x10c7   : > { %v3862_v40 = vpop.f32.mrf.mxu0 }
0x10d8   : > { %v6581_v25 = vpop.f32.mrf.mxu1 }
0x10e0   : > { %v3883_v50 = vpop.f32.mrf.mxu1 }
0x10ff   : > { %v6583_v49 = vpop.f32.mrf.mxu0 }
0x1101   : > { %v6585_v51 = vpop.f32.mrf.mxu1 }
0x1107   : > { %v3946_v46 = vpop.f32.mrf.mxu0 }
0x1109   : > { %v3967_v53 = vpop.f32.mrf.mxu1 }
0x110d   : > { %v6587_v54 = vpop.f32.mrf.mxu3 }
0x110f   : > { %v6589_v4 = vpop.f32.mrf.mxu2 }
0x1110   : > { %v4070_v62 = vpop.f32.mrf.mxu0 }
0x1111   : > { %v4235_v63 = vmul.f32 0.35355338, %v4070_v62  ;;  %v4093_v47 = vpop.f32.mrf.mxu1 }
0x1112   : > { %v4236_v8 = vmul.f32 0.35355338, %v4093_v47 }
0x1113   : > { %v4243_v56 = vsel %vm479_vm3, %v4235_v63, -inf }
0x1114   : > { %v4246_v27 = vsel %vm479_vm3, %v4236_v8, -inf  ;;  %4244 = vmax.xlane.f32.xlu1 %v4243_v56 }
0x1115   : > { %4247 = vmax.xlane.f32.xlu2 %v4246_v27  ;;  %v3925_v61 = vpop.f32.mrf.mxu3 }
0x1117   : > { %v3904_v22 = vpop.f32.mrf.mxu2 }
0x1118   : > { %v4072_v45 = vpop.f32.mrf.mxu0 }
0x1119   : > { %v4095_v16 = vpop.f32.mrf.mxu1 }
0x111d   : > { %v6593_v41 = vpop.f32.mrf.mxu3 }
0x111f   : > { %v6595_v57 = vpop.f32.mrf.mxu2 }
0x1125   : > { %v4009_v30 = vpop.f32.mrf.mxu3 }
0x1127   : > { %v3988_v29 = vpop.f32.mrf.mxu2  ;;  %v4162_v34 = vpop.f32.mrf.mxu0 }
0x1128   : > { %v4239_v10 = vmul.f32 0.35355338, %v4162_v34 }
0x112a   : > { %v4255_v24 = vsel %vm479_vm3, %v4239_v10, -inf }
0x112b   : > { %4256 = vmax.xlane.f32.xlu2 %v4255_v24 }
0x112d   : > { %v4139_v6 = vpop.f32.mrf.mxu3 }
0x112e   : > { %v6598_v2 = vmul.f32 0.35355338, %v4139_v6 }
0x112f   : > { %v4116_v9 = vpop.f32.mrf.mxu2  ;;  %v4164_v36 = vpop.f32.mrf.mxu0 }
0x1130   : > { %v4252_v13 = vsel %vm479_vm3, %v6598_v2, -inf  ;;  %v4237_v48 = vmul.f32 0.35355338, %v4116_v9 }
0x1131   : > { %4253 = vmax.xlane.f32.xlu1 %v4252_v13 }
0x1132   : > { %v4185_v15 = vpop.f32.mrf.mxu1  ;;  %v4249_v42 = vsel %vm479_vm3, %v4237_v48, -inf }
0x1133   : > { %v4240_v12 = vmul.f32 0.35355338, %v4185_v15 }
0x1135   : > { %v4141_v7 = vpop.f32.mrf.mxu3  ;;  %v4258_v19 = vsel %vm479_vm3, %v4240_v12, -inf }
0x1136   : > { %4259 = vmax.xlane.f32.xlu0 %v4258_v19 }
0x1137   : > { %v4118_v20 = vpop.f32.mrf.mxu2 }
0x113a   : > { %v4187_v0 = vpop.f32.mrf.mxu1 }
0x113d   : > { %v4231_v5 = vpop.f32.mrf.mxu3 }
0x113e   : > { %v4242_v35 = vmul.f32 0.35355338, %v4231_v5  ;;  %4250 = vmax.xlane.f32.xlu0 %v4249_v42 }
0x113f   : > { %v4208_v32 = vpop.f32.mrf.mxu2 }
0x1140   : > { %v6604_v21 = vmul.f32 0.35355338, %v4208_v32  ;;  %v4264_v33 = vsel %vm479_vm3, %v4242_v35, -inf }
0x1141   : > { %4265 = vmax.xlane.f32.xlu2 %v4264_v33 }
0x1142   : > { %v4261_v58 = vsel %vm479_vm3, %v6604_v21, -inf }
0x1143   : > { %4262 = vmax.xlane.f32.xlu1 %v4261_v58 }
0x1145   : > { %v4233_v39 = vpop.f32.mrf.mxu3 }
0x1147   : > { %v4210_v17 = vpop.f32.mrf.mxu2 }
0x1152   : > { %4360 = vrot.lane.b32.xlu0 %v6089_v38, %s5279_s18 }
0x1159   : > { %4339 = vrot.lane.b32.xlu2 %v6085_v1, %s5279_s18 }
0x115a   : > { %4402 = vrot.lane.b32.xlu0 %v6097_v55, %s5279_s18 }
0x115c   : > { %4381 = vrot.lane.b32.xlu1 %v6093_v11, %s5279_s18 }
0x1164   : > { %4423 = vrot.lane.b32.xlu1 %v6101_v28, %s5279_s18 }
0x1187   : > { %v4245_v40 = vpop.xlane.xlu1 %4244 }
0x1188   : > { %v4248_v50 = vpop.xlane.xlu2 %4247  ;;  %v4267_v46 = vsub.f32 %v4235_v63, %v4245_v40 }
0x1189   : > { %v4268_v53 = vsub.f32 %v4236_v8, %v4248_v50 }
0x118a   : > { %v4275_v62 = vmul.f32 1.442695, %v4267_v46 }
0x118b   : > { %v4277_v47 = vmul.f32 1.442695, %v4268_v53 }
0x118c   : > { %5229 = vpow2.f32 %v4275_v62 }
0x118d   : > { %5231 = vpow2.f32 %v4277_v47 }
0x1192   : > { %v6619_v38 = vpop.eup %5229 }
0x1193   : > { %v6621_v1 = vpop.eup %5231  ;;  %v4291_v55 = vsel %vm479_vm3, %v6619_v38, 0.0 }
0x1194   : > { %v4294_v11 = vsel %vm479_vm3, %v6621_v1, 0.0  ;;  %4292 = vadd.xlane.f32.xlu0 %v4291_v55 }
0x1195   : > { %4295 = vadd.xlane.f32.xlu1 %v4294_v11 }
0x119e   : > { %v4257_v28 = vpop.xlane.xlu2 %4256 }
0x119f   : > { %v4271_v56 = vsub.f32 %v4239_v10, %v4257_v28 }
0x11a1   : > { %v4283_v63 = vmul.f32 1.442695, %v4271_v56 }
0x11a3   : > { %5233 = vpow2.f32 %v4283_v63 }
0x11a4   : > { %v4254_v16 = vpop.xlane.xlu1 %4253 }
0x11a5   : > { %v4270_v24 = vsub.f32 %v6598_v2, %v4254_v16 }
0x11a7   : > { %v4281_v15 = vmul.f32 1.442695, %v4270_v24 }
0x11a9   : > { %v6627_v8 = vpop.eup %5233  ;;  %v4260_v27 = vpop.xlane.xlu0 %4259 }
0x11aa   : > { %v4272_v61 = vsub.f32 %v4240_v12, %v4260_v27  ;;  %v4303_v22 = vsel %vm479_vm3, %v6627_v8, 0.0 }
0x11ab   : > { %4304 = vadd.xlane.f32.xlu2 %v4303_v22 }
0x11ac   : > { %v4285_v45 = vmul.f32 1.442695, %v4272_v61 }
0x11ae   : > { %5235 = vpow2.f32 %v4285_v45 }
0x11b1   : > { %v4251_v30 = vpop.xlane.xlu0 %4250 }
0x11b2   : > { %v4269_v29 = vsub.f32 %v4237_v48, %v4251_v30 }
0x11b4   : > { %v6631_v34 = vpop.eup %5235  ;;  %v4279_v10 = vmul.f32 1.442695, %v4269_v29  ;;  %v4266_v6 = vpop.xlane.xlu2 %4265 }
0x11b5   : > { %v4274_v9 = vsub.f32 %v4242_v35, %v4266_v6  ;;  %v4306_v36 = vsel %vm479_vm3, %v6631_v34, 0.0 }
0x11b6   : > { %5237 = vpow2.f32 %v4279_v10  ;;  %4307 = vadd.xlane.f32.xlu0 %v4306_v36  ;;  %v4263_v42 = vpop.xlane.xlu1 %4262 }
0x11b7   : > { %v4289_v13 = vmul.f32 1.442695, %v4274_v9 }
0x11b9   : > { %5239 = vpow2.f32 %v4289_v13 }
0x11ba   : > { %5241 = vpow2.f32 %v4281_v15 }
0x11bc   : > { %v6636_v12 = vpop.eup %5237  ;;  %v4340_v7 = vpop.permute.xlu2 %4339 }
0x11bd   : > { %v4345_v19 = vsel %vm776_vm4, %v4340_v7, 0  ;;  %v4297_v2 = vsel %vm479_vm3, %v6636_v12, 0.0 }
0x11be   : > { %4354 = vmatpush.bf16.msrb.mxu0 %v4345_v19  ;;  %4298 = vadd.xlane.f32.xlu1 %v4297_v2 }
0x11bf   : > { %v6641_v20 = vpop.eup %5239 }
0x11c0   : > { %v4312_v48 = vsel %vm479_vm3, %v6641_v20, 0.0  ;;  %v6645_v0 = vpop.eup %5241 }
0x11c1   : > { %4313 = vadd.xlane.f32.xlu2 %v4312_v48  ;;  %v4300_v35 = vsel %vm479_vm3, %v6645_v0, 0.0 }
0x11c4   : > { %v4361_v5 = vpop.permute.xlu0 %4360 }
0x11c5   : > { %v4366_v32 = vsel %vm776_vm4, %v4361_v5, 0 }
0x11c6   : > { %4301 = vadd.xlane.f32.xlu1 %v4300_v35  ;;  %4375 = vmatpush.bf16.msra.mxu1 %v4366_v32 }
0x11ca   : > { %4465 = vrot.lane.b32.xlu0 %v6115_v37, %s5279_s18  ;;  %v4273_v37 = vsub.f32 %v6604_v21, %v4263_v42 }
0x11cc   : > { %v4403_v33 = vpop.permute.xlu0 %4402 }
0x11cd   : > { %v4408_v39 = vsel %vm776_vm4, %v4403_v33, 0 }
0x11ce   : > { %v4382_v58 = vpop.permute.xlu1 %4381  ;;  %4417 = vmatpush.bf16.msra.mxu3 %v4408_v39 }
0x11cf   : > { %v4387_v17 = vsel %vm776_vm4, %v4382_v58, 0 }
0x11d0   : > { %4396 = vmatpush.bf16.msrb.mxu2 %v4387_v17 }
0x11d2   : > { %3523 = vrot.lane.b32.xlu0 %v6444_v31, %s5280_s19  ;;  %v4287_v31 = vmul.f32 1.442695, %v4273_v37 }
0x11d4   : > { %5243 = vpow2.f32 %v4287_v31 }
0x11d6   : > { %v4424_v40 = vpop.permute.xlu1 %4423 }
0x11d7   : > { %v4429_v50 = vsel %vm776_vm4, %v4424_v40, 0 }
0x11d8   : > { %4438 = vmatpush.bf16.msra.mxu0 %v4429_v50 }
0x11d9   : > { %4486 = vrot.lane.b32.xlu2 %v6119_v44, %s5279_s18 }
0x11da   : > { %4019 = vrot.lane.b32.xlu0 %v6579_v43, %s5281_s20  ;;  %v6668_v46 = vpop.eup %5243 }
0x11db   : > { %v4309_v43 = vsel %vm479_vm3, %v6668_v46, 0.0 }
0x11df   : > { %4444 = vrot.lane.b32.xlu1 %v6105_v23, %s5279_s18 }
0x11e1   : > { %3525 = vrot.lane.b32.xlu2 %v6457_v52, %s5280_s19 }
0x11e9   : > { %3527 = vrot.lane.b32.xlu2 %v6463_v59, %s5280_s19 }
0x1207   : > { %v4293_v53 = vpop.xlane.xlu0 %4292 }
0x1208   : > { %v4296_v44 = vpop.xlane.xlu1 %4295  ;;  %5245 = vrcp.f32 %v4293_v53 }
0x1209   : > { %5247 = vrcp.f32 %v4296_v44  ;;  %4310 = vadd.xlane.f32.xlu1 %v4309_v43 }
0x120e   : > { %v5246_v23 = vpop.eup %5245 }
0x120f   : > { %v5248_v62 = vpop.eup %5247  ;;  %v4323_v52 = vmul.f32 %v5246_v23, %v6619_v38 }
0x1210   : > { %v4324_v59 = vmul.f32 %v5248_v62, %v6621_v1 }
0x1211   : > { %v4331_v47 = vpack.c.bf16 %v4323_v52, %v4323_v52 }
0x1212   : > { %v4332_v21 = vpack.c.bf16 %v4324_v59, %v4324_v59 }
0x1213   : > { %4925 = vmatmul.msk.bf16.vlgmr.msrb.gmra.mxu0 %vm479_vm3, %v4331_v47 }
0x1214   : > { %4926 = vmatmul.msk.bf16.vlgmr.msra.gmra.mxu1 %vm479_vm3, %v4332_v21 }
0x121e   : > { %v4305_v55 = vpop.xlane.xlu2 %4304 }
0x121f   : > { %5249 = vrcp.f32 %v4305_v55 }
0x1222   : > { %4021 = vrot.lane.b32.xlu1 %v6581_v25, %s5281_s20 }
0x1225   : > { %v5250_v11 = vpop.eup %5249 }
0x1226   : > { %v4327_v28 = vmul.f32 %v5250_v11, %v6627_v8 }
0x1228   : > { %v4335_v56 = vpack.c.bf16 %v4327_v28, %v4327_v28 }
0x1229   : > { %v4308_v1 = vpop.xlane.xlu0 %4307 }
0x122a   : > { %4929 = vmatmul.msk.bf16.vlgmr.msra.gmra.mxu0 %vm479_vm3, %v4335_v56 }
0x1231   : > { %v4299_v38 = vpop.xlane.xlu1 %4298 }
0x1232   : > { %5251 = vrcp.f32 %v4299_v38 }
0x1234   : > { %v4314_v63 = vpop.xlane.xlu2 %4313 }
0x1238   : > { %v5252_v27 = vpop.eup %5251 }
0x1239   : > { %v4325_v61 = vmul.f32 %v5252_v27, %v6636_v12  ;;  %v4302_v22 = vpop.xlane.xlu1 %4301 }
0x123a   : > { %5253 = vrcp.f32 %v4302_v22 }
0x123b   : > { %v4333_v45 = vpack.c.bf16 %v4325_v61, %v4325_v61  ;;  %5255 = vrcp.f32 %v4314_v63 }
0x123c   : > { %v4487_v16 = vpop.permute.xlu2 %4486  ;;  %v4466_v30 = vpop.permute.xlu0 %4465  ;;  %5257 = vrcp.f32 %v4308_v1 }
0x123d   : > { %v4492_v25 = vsel %vm776_vm4, %v4487_v16, 0  ;;  %v4471_v29 = vsel %vm776_vm4, %v4466_v30, 0  ;;  %4927 = vmatmul.msk.bf16.vlgmr.msrb.gmra.mxu2 %vm479_vm3, %v4333_v45 }
0x123e   : > { %4480 = vmatpush.bf16.msra.mxu2 %v4471_v29  ;;  %4501 = vmatpush.bf16.msrb.mxu3 %v4492_v25 }
0x1240   : > { %v5254_v8 = vpop.eup %5253 }
0x1241   : > { %v4326_v24 = vmul.f32 %v5254_v8, %v6645_v0  ;;  %v5256_v36 = vpop.eup %5255 }
0x1242   : > { %v5258_v12 = vpop.eup %5257  ;;  %v4330_v7 = vmul.f32 %v5256_v36, %v6641_v20 }
0x1243   : > { %v4334_v10 = vpack.c.bf16 %v4326_v24, %v4326_v24  ;;  %v4328_v19 = vmul.f32 %v5258_v12, %v6631_v34  ;;  %v4973_v24 = vld [vmem:[%s6796_s7 + $0x8] sm:$0xff]  ;;  %v5003_v12 = vld [vmem:[%s6795_s6 + $0x1] ss:$0 sm:$0xff] }
0x1244   : > { %v3526_v6 = vpop.permute.xlu2 %3525  ;;  %v3524_v9 = vpop.permute.xlu0 %3523  ;;  %v4338_v0 = vpack.c.bf16 %v4330_v7, %v4330_v7 }
0x1245   : > { %3548 = vst.msk [vmem:[#allocation2 + $0x8] sm:$0xff] %vm1436_vm5, %v3526_v6  ;;  %4928 = vmatmul.msk.bf16.vlgmr.msra.gmra.mxu3 %vm479_vm3, %v4334_v10  ;;  %v4336_v5 = vpack.c.bf16 %v4328_v19, %v4328_v19  ;;  %v4972_v10 = vld [vmem:[%s6796_s7] sm:$0xff] }
0x1246   : > { %3547 = vst.msk [vmem:[#allocation2] sm:$0xff] %vm1436_vm5, %v3524_v9 }
0x124c   : > { %v3528_v13 = vpop.permute.xlu2 %3527  ;;  %v4020_v15 = vpop.permute.xlu0 %4019 }
0x124d   : > { %3549 = vst.msk [vmem:[#allocation2 + $0x10] sm:$0xff] %vm1436_vm5, %v3528_v13 }
0x124e   : > { %4043 = vst.msk [vmem:[#allocation2] sm:$0xff] %vm1933_vm6, %v4020_v15 }
0x1251   : > { %v4445_v2 = vpop.permute.xlu1 %4444 }
0x1252   : > { %v4450_v48 = vsel %vm776_vm4, %v4445_v2, 0 }
0x1253   : > { %4459 = vmatpush.bf16.msrb.mxu1 %v4450_v48 }
0x1255   : > { %4932 = vmatmul.msk.bf16.vlgmr.msrb.gmra.mxu3 %vm479_vm3, %v4338_v0 }
0x1256   : > { %4930 = vmatmul.msk.bf16.vlgmr.msrb.gmra.mxu1 %vm479_vm3, %v4336_v5 }
0x1257   : > { %4664 = vmatpush.bf16.msra.mxu1 %v4973_v24 }
0x125b   : > { %4665 = vmatpush.bf16.msra.mxu1 %v4972_v10 }
0x127c   : > { %v4311_v42 = vpop.xlane.xlu1 %4310 }
0x127d   : > { %5259 = vrcp.f32 %v4311_v42 }
0x1283   : > { %v5260_v32 = vpop.eup %5259 }
0x1284   : > { %v4329_v35 = vmul.f32 %v5260_v32, %v6668_v46 }
0x1286   : > { %v4337_v33 = vpack.c.bf16 %v4329_v35, %v4329_v35 }
0x1288   : > { %4931 = vmatmul.msk.bf16.vlgmr.msra.gmra.mxu2 %vm479_vm3, %v4337_v33 }
0x1290   : > { %v4356_v20 = vpop.f32.mrf.mxu0 }
0x1291   : > { %v4377_v34 = vpop.f32.mrf.mxu1  ;;  %4515 = vrot.lane.b32.xlu2 %v4356_v20, %s6802_s26 }
0x1292   : > { %4517 = vrot.lane.b32.xlu0 %v4377_v34, %s6802_s26 }
0x1294   : > { %v4022_v58 = vpop.permute.xlu1 %4021 }
0x1295   : > { %4044 = vst.msk [vmem:[#allocation2 + $0x8] sm:$0xff] %vm1933_vm6, %v4022_v58 }
0x1298   : > { %v4358_v39 = vpop.f32.mrf.mxu0 }
0x1299   : > { %v4379_v17 = vpop.f32.mrf.mxu1  ;;  %4023 = vrot.lane.b32.xlu2 %v6589_v4, %s5281_s20 }
0x129a   : > { %3529 = vrot.lane.b32.xlu0 %v6468_v3, %s5280_s19 }
0x12a2   : > { %4025 = vrot.lane.b32.xlu0 %v6587_v54, %s5281_s20 }
0x12a7   : > { %v4440_v40 = vpop.f32.mrf.mxu0 }
0x12aa   : > { %3531 = vrot.lane.b32.xlu0 %v6461_v26, %s5280_s19 }
0x12af   : > { %v4442_v50 = vpop.f32.mrf.mxu0 }
0x12b2   : > { %4029 = vrot.lane.b32.xlu0 %v6585_v51, %s5281_s20 }
0x12ba   : > { %3535 = vrot.lane.b32.xlu0 %v6473_v14, %s5280_s19 }
0x12c0   : > { %v4398_v37 = vpop.f32.mrf.mxu2 }
0x12c1   : > { %4519 = vrot.lane.b32.xlu1 %v4398_v37, %s6802_s26 }
0x12c2   : > { %4033 = vrot.lane.b32.xlu0 %v6593_v41, %s5281_s20 }
0x12c8   : > { %v4400_v3 = vpop.f32.mrf.mxu2  ;;  %v4419_v4 = vpop.f32.mrf.mxu3 }
0x12c9   : > { %3533 = vrot.lane.b32.xlu1 %v6465_v60, %s5280_s19  ;;  %4521 = vrot.lane.b32.xlu2 %v4419_v4, %s6802_s26  ;;  %v4971_v60 = vld [vmem:[%s6794_s5 + $0x18] sm:$0xff]  ;;  %v5004_v4 = vld [vmem:[%s6797_s8] ss:$0 sm:$0xff] }
0x12ca   : > { %4599 = vmatpush.bf16.msrb.mxu0 %v4971_v60 }
0x12d0   : > { %v4421_v26 = vpop.f32.mrf.mxu3 }
0x12d1   : > { %4027 = vrot.lane.b32.xlu2 %v6583_v49, %s5281_s20  ;;  %4523 = vrot.lane.b32.xlu1 %v4440_v40, %s6802_s26  ;;  %v4970_v49 = vld [vmem:[%s6794_s5 + $0x10] sm:$0xff] }
0x12d2   : > { %4600 = vmatpush.bf16.msrb.mxu0 %v4970_v49 }
0x12d3   : > { %v4461_v14 = vpop.f32.mrf.mxu1 }
0x12d8   : > { %v4503_v51 = vpop.f32.mrf.mxu3 }
0x12d9   : > { %3537 = vrot.lane.b32.xlu1 %v6471_v18, %s5280_s19  ;;  %4525 = vrot.lane.b32.xlu2 %v4461_v14, %s6802_s26 }
0x12db   : > { %v4463_v54 = vpop.f32.mrf.mxu1 }
0x12e0   : > { %v4505_v41 = vpop.f32.mrf.mxu3 }
0x12e1   : > { %4031 = vrot.lane.b32.xlu2 %v6595_v57, %s5281_s20 }
0x12e9   : > { %4529 = vrot.lane.b32.xlu2 %v4503_v51, %s6802_s26 }
0x12eb   : > { %v4516_v31 = vpop.permute.xlu2 %4515 }
0x12ec   : > { %4539 = vst.msk [vmem:[#allocation2] sm:$0xff] %vm2430_vm7, %v4516_v31 }
0x12f3   : > { %v4024_v18 = vpop.permute.xlu2 %4023  ;;  %v4547_v44 = vld [vmem:[#allocation2] sm:$0xff] }
0x12f4   : > { %4045 = vst.msk [vmem:[#allocation2 + $0x10] sm:$0xff] %vm1933_vm6, %v4024_v18 }
0x1304   : > { %v4518_v46 = vpop.permute.xlu0 %4517 }
0x1305   : > { %4540 = vst.msk [vmem:[#allocation2 + $0x8] sm:$0xff] %vm2430_vm7, %v4518_v46 }
0x130b   : > { %v4482_v53 = vpop.f32.mrf.mxu2 }
0x130c   : > { %v3530_v57 = vpop.permute.xlu0 %3529  ;;  %v4548_v43 = vld [vmem:[#allocation2 + $0x8] sm:$0xff]  ;;  %4527 = vrot.lane.b32.xlu1 %v4482_v53, %s6802_s26 }
0x130d   : > { %3550 = vst.msk [vmem:[#allocation2 + $0x18] sm:$0xff] %vm1436_vm5, %v3530_v57  ;;  %v4555_v23 = vpack.c.bf16 %v4548_v43, %v4547_v44 }
0x130f   : > { %4946 = vmatmul.msk.bf16.vlgmr.msrb.gmra.mxu0 %vm424_vm2, %v4555_v23 }
0x1313   : > { %v4484_v52 = vpop.f32.mrf.mxu2 }
0x1314   : > { %v4026_v62 = vpop.permute.xlu0 %4025 }
0x1315   : > { %4046 = vst.msk [vmem:[#allocation2 + $0x18] sm:$0xff] %vm1933_vm6, %v4026_v62 }
0x131c   : > { %v3532_v59 = vpop.permute.xlu0 %3531 }
0x131d   : > { %3551 = vst.msk [vmem:[#allocation2 + $0x20] sm:$0xff] %vm1436_vm5, %v3532_v59 }
0x1323   : > { %v4522_v21 = vpop.permute.xlu2 %4521 }
0x1324   : > { %v4030_v47 = vpop.permute.xlu0 %4029  ;;  %4542 = vst.msk [vmem:[#allocation2 + $0x18] sm:$0xff] %vm2430_vm7, %v4522_v21 }
0x132b   : > { %v4028_v11 = vpop.permute.xlu2 %4027  ;;  %v4550_v63 = vld [vmem:[#allocation2 + $0x18] sm:$0xff] }
0x132c   : > { %v3536_v55 = vpop.permute.xlu0 %3535  ;;  %4047 = vst.msk [vmem:[#allocation2 + $0x20] sm:$0xff] %vm1933_vm6, %v4028_v11 }
0x132d   : > { %3553 = vst.msk [vmem:[#allocation2 + $0x30] sm:$0xff] %vm1436_vm5, %v3536_v55 }
0x1333   : > { %v4520_v28 = vpop.permute.xlu1 %4519  ;;  %v4526_v56 = vpop.permute.xlu2 %4525 }
0x1334   : > { %4541 = vst.msk [vmem:[#allocation2 + $0x10] sm:$0xff] %vm2430_vm7, %v4520_v28  ;;  %v4034_v25 = vpop.permute.xlu0 %4033 }
0x133b   : > { %v3534_v38 = vpop.permute.xlu1 %3533  ;;  %v4549_v1 = vld [vmem:[#allocation2 + $0x10] sm:$0xff]  ;;  %v4032_v27 = vpop.permute.xlu2 %4031 }
0x133c   : > { %3552 = vst.msk [vmem:[#allocation2 + $0x28] sm:$0xff] %vm1436_vm5, %v3534_v38  ;;  %v4556_v61 = vpack.c.bf16 %v4550_v63, %v4549_v1 }
0x133d   : > { %4048 = vst.msk [vmem:[#allocation2 + $0x28] sm:$0xff] %vm1933_vm6, %v4030_v47 }
0x133e   : > { %4544 = vst.msk [vmem:[#allocation2 + $0x28] sm:$0xff] %vm2430_vm7, %v4526_v56  ;;  %4947 = vmatmul.msk.bf16.gmra.mxu0 %vm424_vm2, %v4556_v61 }
0x133f   : > { %4049 = vst.msk [vmem:[#allocation2 + $0x30] sm:$0xff] %vm1933_vm6, %v4032_v27 }
0x1343   : > { %v4524_v22 = vpop.permute.xlu1 %4523  ;;  %v4530_v8 = vpop.permute.xlu2 %4529 }
0x1344   : > { %4543 = vst.msk [vmem:[#allocation2 + $0x20] sm:$0xff] %vm2430_vm7, %v4524_v22 }
0x1345   : > { %v4552_v30 = vld [vmem:[#allocation2 + $0x28] sm:$0xff] }
0x134b   : > { %v3538_v45 = vpop.permute.xlu1 %3537  ;;  %v4551_v16 = vld [vmem:[#allocation2 + $0x20] sm:$0xff] }
0x134c   : > { %3554 = vst.msk [vmem:[#allocation2 + $0x38] sm:$0xff] %vm1436_vm5, %v3538_v45  ;;  %v4557_v29 = vpack.c.bf16 %v4552_v30, %v4551_v16 }
0x134d   : > { %4050 = vst.msk [vmem:[#allocation2 + $0x38] sm:$0xff] %vm1933_vm6, %v4034_v25 }
0x134e   : > { %4546 = vst.msk [vmem:[#allocation2 + $0x38] sm:$0xff] %vm2430_vm7, %v4530_v8  ;;  %4948 = vmatmul.msk.bf16.gmra.mxu0 %vm424_vm2, %v4557_v29 }
0x1355   : > { %v4554_v36 = vld [vmem:[#allocation2 + $0x38] sm:$0xff] }
0x137e   : > { %v4528_v6 = vpop.permute.xlu1 %4527 }
0x137f   : > { %4545 = vst.msk [vmem:[#allocation2 + $0x30] sm:$0xff] %vm2430_vm7, %v4528_v6 }
0x1386   : > { %v4553_v9 = vld [vmem:[#allocation2 + $0x30] sm:$0xff] }
0x1387   : > { %v4558_v13 = vpack.c.bf16 %v4554_v36, %v4553_v9 }
0x1389   : > { %4949 = vmatmul.msk.bf16.gmra.mxu0 %vm424_vm2, %v4558_v13 }
0x138c   : > { %v4602_v15 = vpop.f32.mrf.mxu0 }
0x138d   : > { %v4603_v19 = vadd.f32 %v5003_v12, %v4602_v15 }
0x1394   : > { %v4604_v7 = vpop.f32.mrf.mxu0 }
0x1395   : > { %v4605_v2 = vadd.f32 %v5003_v12, %v4604_v7 }
0x1397   : > { %v4622_v48 = vpack.c.bf16 %v4605_v2, %v4603_v19 }
0x1399   : > { %4958 = vmatmul.msk.bf16.vlgmr.msra.gmra.mxu1 %vm424_vm2, %v4622_v48 }
0x13bb   : > { %v4607_v0 = vpop.f32.mrf.mxu0 }
0x13bc   : > { %v4608_v42 = vadd.f32 %v5003_v12, %v4607_v0 }
0x13c3   : > { %v4609_v5 = vpop.f32.mrf.mxu0 }
0x13c4   : > { %v4610_v32 = vadd.f32 %v5003_v12, %v4609_v5 }
0x13c6   : > { %v4623_v35 = vpack.c.bf16 %v4610_v32, %v4608_v42 }
0x13c8   : > { %4959 = vmatmul.msk.bf16.gmra.mxu1 %vm424_vm2, %v4623_v35 }
0x13cb   : > { %v4612_v33 = vpop.f32.mrf.mxu0 }
0x13cc   : > { %v4613_v34 = vadd.f32 %v5003_v12, %v4612_v33 }
0x13d3   : > { %v4614_v20 = vpop.f32.mrf.mxu0 }
0x13d4   : > { %v4615_v58 = vadd.f32 %v5003_v12, %v4614_v20 }
0x13d6   : > { %v4624_v39 = vpack.c.bf16 %v4615_v58, %v4613_v34 }
0x13d8   : > { %4960 = vmatmul.msk.bf16.gmra.mxu1 %vm424_vm2, %v4624_v39 }
0x1406   : > { %v4617_v17 = vpop.f32.mrf.mxu0 }
0x1407   : > { %v4618_v50 = vadd.f32 %v5003_v12, %v4617_v17 }
0x140e   : > { %v4619_v40 = vpop.f32.mrf.mxu0 }
0x140f   : > { %v4620_v37 = vadd.f32 %v5003_v12, %v4619_v40 }
0x1411   : > { %v4625_v3 = vpack.c.bf16 %v4620_v37, %v4618_v50 }
0x1413   : > { %4961 = vmatmul.msk.bf16.gmra.mxu1 %vm424_vm2, %v4625_v3 }
0x1416   : > { %v4667_v26 = vpop.f32.mrf.mxu1 }
0x1417   : > { %v4668_v14 = vadd.f32 %v5004_v4, %v4667_v26 }
0x1419   : > { %4687 = vst.msk [vmem:[%s334_s25] sm:$0xff] %vm354_vm1, %v4668_v14 }
0x141e   : > { %v4669_v51 = vpop.f32.mrf.mxu1 }
0x141f   : > { %v4670_v54 = vadd.f32 %v5004_v4, %v4669_v51 }
0x1421   : > { %4688 = vst.msk [vmem:[%s334_s25 + $0x8] sm:$0xff] %vm354_vm1, %v4670_v54 }
0x1445   : > { %v4672_v41 = vpop.f32.mrf.mxu1 }
0x1446   : > { %v4673_v60 = vadd.f32 %v5004_v4, %v4672_v41 }
0x1448   : > { %4689 = vst.msk [vmem:[%s334_s25 + $0x10] sm:$0xff] %vm354_vm1, %v4673_v60 }
0x144d   : > { %v4674_v49 = vpop.f32.mrf.mxu1 }
0x144e   : > { %v4675_v31 = vadd.f32 %v5004_v4, %v4674_v49 }
0x1450   : > { %4690 = vst.msk [vmem:[%s334_s25 + $0x18] sm:$0xff] %vm354_vm1, %v4675_v31 }
0x1455   : > { %v4677_v18 = vpop.f32.mrf.mxu1 }
0x1456   : > { %v4678_v46 = vadd.f32 %v5004_v4, %v4677_v18 }
0x1458   : > { %4691 = vst.msk [vmem:[%s334_s25 + $0x20] sm:$0xff] %vm354_vm1, %v4678_v46 }
0x145d   : > { %v4679_v57 = vpop.f32.mrf.mxu1 }
0x145e   : > { %v4680_v53 = vadd.f32 %v5004_v4, %v4679_v57 }
0x1460   : > { %4692 = vst.msk [vmem:[%s334_s25 + $0x28] sm:$0xff] %vm354_vm1, %v4680_v53 }
0x1490   : > { %v4682_v44 = vpop.f32.mrf.mxu1 }
0x1491   : > { %v4683_v43 = vadd.f32 %v5004_v4, %v4682_v44 }
0x1493   : > { %4693 = vst.msk [vmem:[%s334_s25 + $0x30] sm:$0xff] %vm354_vm1, %v4683_v43 }
0x1498   : > { %v4684_v23 = vpop.f32.mrf.mxu1 }
0x1499   : > { %v4685_v62 = vadd.f32 %v5004_v4, %v4684_v23 }
0x149b   : > { %4694 = vst.msk [vmem:[%s334_s25 + $0x38] sm:$0xff] %vm354_vm1, %v4685_v62 }
0x149c PF: > { %s19_s30 = sadd.s32 1, %s5267_s30  }
0x149d   : > { %p16_p4 = scmp.ge.s32.totalorder %s19_s30, 4  }
0x149f   :  { %18 = sbr.rel (!%p16_p4) target bundleno = 1 (0x1), region = 90 }

</bundles_post_ra>
